<compile_context>
chip_gen: v6e
topology: v6e:2x2x1
jax: 0.10.0
libtpu: 0.0.40
codegen_flags: <defaults>
</compile_context>

<pallas_src>
import jax
import jax.numpy as jnp
from jax.experimental import pallas as pl
from jax.experimental.pallas import tpu as pltpu


# ---------------------------------------------------------------------------
# Kernel
# ---------------------------------------------------------------------------
def _conv3x3_bias_relu(xpad_ref, w_ref, b_ref, H, W, Cin, Cout):
    """3x3 conv (halo already in xpad_ref) + bias + ReLU -> (H*W, Cout) f32.

    xpad_ref: (H+2, W+2, Cin) VMEM ref with zero border.
    w_ref:    (9, Cin, Cout)  taps flattened row-major over (dy, dx).
    b_ref:    (1, Cout)       bias.
    """
    acc = jnp.zeros((H * W, Cout), dtype=jnp.float32)
    for dx in range(3):
        # One strided materialisation per dx; the dy shift is then a cheap,
        # contiguous (sublane-aligned when W % 8 == 0) row slice.
        xs = xpad_ref[:, pl.ds(dx, W), :].reshape((H + 2) * W, Cin)
        for dy in range(3):
            rows = xs[dy * W:dy * W + H * W, :]
            acc = acc + jnp.dot(
                rows, w_ref[dy * 3 + dx], preferred_element_type=jnp.float32
            )
    return jnp.maximum(acc + b_ref[...], 0.0)


def _unet_block_kernel(x_ref, w1_ref, b1_ref, w2_ref, b2_ref, o_ref,
                       xpad_ref, midpad_ref):
    # x_ref:      (1, H, W, Cin)    input tile (one batch element), NHWC
    # w1_ref:     (9, Cin, Cmid)    conv1 taps
    # b1_ref:     (1, Cmid)
    # w2_ref:     (9, Cmid, Cout)   conv2 taps
    # b2_ref:     (1, Cout)
    # o_ref:      (1, H, W, Cout)   output tile
    # xpad_ref:   (H+2, W+2, Cin)   VMEM halo buffer for the input
    # midpad_ref: (H+2, W+2, Cmid)  VMEM halo buffer for the intermediate
    H, W = o_ref.shape[1], o_ref.shape[2]
    Cin = x_ref.shape[3]
    Cmid = w1_ref.shape[2]
    Cout = o_ref.shape[3]

    # Stage the unpadded tile into a zero-initialised halo buffer
    # (replaces the HBM-level jnp.pad of the previous version).
    xpad_ref[...] = jnp.zeros_like(xpad_ref)
    xpad_ref[pl.ds(1, H), pl.ds(1, W), :] = x_ref[0].astype(jnp.float32)

    mid = _conv3x3_bias_relu(xpad_ref, w1_ref, b1_ref, H, W, Cin, Cmid)

    # Intermediate activation stays in VMEM -- no HBM round trip between convs.
    midpad_ref[...] = jnp.zeros_like(midpad_ref)
    midpad_ref[pl.ds(1, H), pl.ds(1, W), :] = mid.reshape(H, W, Cmid)

    out = _conv3x3_bias_relu(midpad_ref, w2_ref, b2_ref, H, W, Cmid, Cout)
    o_ref[...] = out.reshape(1, H, W, Cout).astype(o_ref.dtype)


# ---------------------------------------------------------------------------
# Wrappers
# ---------------------------------------------------------------------------
def _round_up(v, m):
    return ((v + m - 1) // m) * m


def _vmem_limit_bytes(H, W, Cin, Cmid, Cout):
    f32 = 4
    tile_in = H * W * _round_up(Cin, 128) * f32
    tile_out = H * W * _round_up(Cout, 128) * f32
    weights = 9 * (_round_up(Cin, 8) * _round_up(Cmid, 128)
                   + _round_up(Cmid, 8) * _round_up(Cout, 128)) * f32
    scratch = (H + 2) * (W + 2) * (_round_up(Cin, 128)
                                   + _round_up(Cmid, 128)) * f32
    est = 2 * (tile_in + tile_out) + weights + scratch  # double-buffered I/O
    # Generous headroom, but never above v7x's 64 MiB physical VMEM.
    return int(min(64 * 1024 * 1024, max(32 * 1024 * 1024, 2 * est)))


def unet_basic_block_nhwc(x_nhwc, params):
    """Fused UNetBasicBlock forward on NHWC input (single pallas_call)."""
    w1, b1, w2, b2 = params                    # w*: (3, 3, Cin, Cout) HWIO
    N, H, W, Cin = x_nhwc.shape
    Cmid = w1.shape[-1]
    Cout = w2.shape[-1]

    # One-time weight/bias re-layout (lane-dense tap slabs).
    w1r = w1.reshape(9, Cin, Cmid).astype(jnp.float32)
    w2r = w2.reshape(9, Cmid, Cout).astype(jnp.float32)
    b1r = b1.reshape(1, Cmid).astype(jnp.float32)
    b2r = b2.reshape(1, Cout).astype(jnp.float32)

    return pl.pallas_call(
        _unet_block_kernel,
        out_shape=jax.ShapeDtypeStruct((N, H, W, Cout), x_nhwc.dtype),
        grid_spec=pltpu.PrefetchScalarGridSpec(
            num_scalar_prefetch=0,
            grid=(N,),
            in_specs=[
                pl.BlockSpec((1, H, W, Cin), lambda n: (n, 0, 0, 0)),
                pl.BlockSpec((9, Cin, Cmid), lambda n: (0, 0, 0)),
                pl.BlockSpec((1, Cmid), lambda n: (0, 0)),
                pl.BlockSpec((9, Cmid, Cout), lambda n: (0, 0, 0)),
                pl.BlockSpec((1, Cout), lambda n: (0, 0)),
            ],
            out_specs=pl.BlockSpec((1, H, W, Cout), lambda n: (n, 0, 0, 0)),
            scratch_shapes=[
                pltpu.VMEM((H + 2, W + 2, Cin), jnp.float32),
                pltpu.VMEM((H + 2, W + 2, Cmid), jnp.float32),
            ],
        ),
        compiler_params=pltpu.CompilerParams(
            dimension_semantics=("parallel",),
            vmem_limit_bytes=_vmem_limit_bytes(H, W, Cin, Cmid, Cout),
        ),
    )(x_nhwc, w1r, b1r, w2r, b2r)


def unet_basic_block(x_nchw, params):
    """PyTorch-convention entry point: NCHW in / NCHW out.

    Transposes happen once here (the network boundary); use
    unet_basic_block_nhwc to keep a full UNet in NHWC without per-block
    transposes.
    """
    x = jnp.transpose(x_nchw, (0, 2, 3, 1))           # NCHW -> NHWC
    y = unet_basic_block_nhwc(x, params)
    return jnp.transpose(y, (0, 3, 1, 2))             # NHWC -> NCHW


def init_params(key, in_channels, out_channels, dtype=jnp.float32):
    """Deterministic synthetic parameter init (HWIO weights: (3,3,Cin,Cout))."""
    k1, k2, k3, k4 = jax.random.split(key, 4)
    fan_in1 = in_channels * 9
    fan_in2 = out_channels * 9
    w1 = jax.random.normal(k1, (3, 3, in_channels, out_channels), dtype) / jnp.sqrt(fan_in1)
    b1 = jax.random.normal(k2, (out_channels,), dtype) * 0.01
    w2 = jax.random.normal(k3, (3, 3, out_channels, out_channels), dtype) / jnp.sqrt(fan_in2)
    b2 = jax.random.normal(k4, (out_channels,), dtype) * 0.01
    return (w1, b1, w2, b2)


# ---------------------------------------------------------------------------
# Plain-JAX reference (for a correctness cross-check)
# ---------------------------------------------------------------------------
def _reference_block_nchw(x_nchw, params):
    w1, b1, w2, b2 = params
    dn = ("NHWC", "HWIO", "NHWC")
    x = jnp.transpose(x_nchw, (0, 2, 3, 1))
    y = jax.lax.conv_general_dilated(x, w1, (1, 1), "SAME", dimension_numbers=dn,
                                     precision=jax.lax.Precision.HIGHEST)
    y = jnp.maximum(y + b1[None, None, None, :], 0.0)
    y = jax.lax.conv_general_dilated(y, w2, (1, 1), "SAME", dimension_numbers=dn,
                                     precision=jax.lax.Precision.HIGHEST)
    y = jnp.maximum(y + b2[None, None, None, :], 0.0)
    return jnp.transpose(y, (0, 3, 1, 2))


if __name__ == "__main__":
    key = jax.random.PRNGKey(0)
    kx, kp = jax.random.split(key)

    N, Cin, H, W = 2, 4, 16, 16
    Cout = 8

    x = jax.random.normal(kx, (N, Cin, H, W), jnp.float32)   # NCHW like PyTorch
    params = init_params(kp, Cin, Cout)

    out = unet_basic_block(x, params)
    out = jax.block_until_ready(out)
    assert out.shape == (N, Cout, H, W), out.shape

    ref = _reference_block_nchw(x, params)
    max_err = float(jnp.max(jnp.abs(out - ref)))
    assert jnp.allclose(out, ref, atol=1e-3, rtol=1e-3), max_err

    print("KERNEL_OK")
</pallas_src>

<mosaic_0001>
module attributes {stable_mosaic.version = 11 : i64} {
  func.func @_unet_block_kernel(%arg0: i32, %arg1: memref<1x16x16x4xf32, #tpu.memory_space<vmem>>, %arg2: memref<9x4x8xf32, #tpu.memory_space<vmem>>, %arg3: memref<1x8xf32, #tpu.memory_space<vmem>>, %arg4: memref<9x8x8xf32, #tpu.memory_space<vmem>>, %arg5: memref<1x8xf32, #tpu.memory_space<vmem>>, %arg6: memref<1x16x16x8xf32, #tpu.memory_space<vmem>>, %arg7: memref<18x18x4xf32, #tpu.memory_space<vmem>>, %arg8: memref<18x18x8xf32, #tpu.memory_space<vmem>>) attributes {dimension_semantics = [#tpu.dimension_semantics<parallel>], iteration_bounds = array<i64: 2>, scalar_prefetch = 0 : i64, scratch_operands = 2 : i64, tpu.core_type = #tpu.core_type<tc>, window_params = [{transform_indices = @transform_0, window_bounds = array<i64: 1, 16, 16, 4>}, {pipeline_mode = #tpu.pipeline_mode<synchronous>, transform_indices = @transform_1, window_bounds = array<i64: 9, 4, 8>}, {pipeline_mode = #tpu.pipeline_mode<synchronous>, transform_indices = @transform_2, window_bounds = array<i64: 1, 8>}, {pipeline_mode = #tpu.pipeline_mode<synchronous>, transform_indices = @transform_3, window_bounds = array<i64: 9, 8, 8>}, {pipeline_mode = #tpu.pipeline_mode<synchronous>, transform_indices = @transform_4, window_bounds = array<i64: 1, 8>}, {transform_indices = @transform_5, window_bounds = array<i64: 1, 16, 16, 8>}]} {
    %cst = arith.constant 0.000000e+00 : f32
    %0 = vector.broadcast %cst : f32 to vector<18x18x4xf32>
    %c0 = arith.constant 0 : index
    %c0_0 = arith.constant 0 : index
    %c0_1 = arith.constant 0 : index
    %1 = vector.load %arg7[%c0, %c0_0, %c0_1] : memref<18x18x4xf32, #tpu.memory_space<vmem>>, vector<18x18x4xf32>
    tpu.vector_store %arg7[%c0, %c0_0, %c0_1], %0 {strides = array<i32>} : memref<18x18x4xf32, #tpu.memory_space<vmem>>, vector<18x18x4xf32>,
    %c0_2 = arith.constant 0 : index
    %c0_3 = arith.constant 0 : index
    %c0_4 = arith.constant 0 : index
    %c0_5 = arith.constant 0 : index
    %2 = vector.load %arg1[%c0_2, %c0_3, %c0_4, %c0_5] : memref<1x16x16x4xf32, #tpu.memory_space<vmem>>, vector<1x16x16x4xf32>
    %3 = vector.shape_cast %2 : vector<1x16x16x4xf32> to vector<16x16x4xf32>
    %c1 = arith.constant 1 : index
    %c1_6 = arith.constant 1 : index
    %c0_7 = arith.constant 0 : index
    %4 = vector.load %arg7[%c1, %c1_6, %c0_7] : memref<18x18x4xf32, #tpu.memory_space<vmem>>, vector<16x16x4xf32>
    tpu.vector_store %arg7[%c1, %c1_6, %c0_7], %3 {strides = array<i32>} : memref<18x18x4xf32, #tpu.memory_space<vmem>>, vector<16x16x4xf32>,
    %cst_8 = arith.constant 0.000000e+00 : f32
    %5 = vector.broadcast %cst_8 : f32 to vector<256x8xf32>
    %c0_9 = arith.constant 0 : index
    %c0_10 = arith.constant 0 : index
    %c0_11 = arith.constant 0 : index
    %6 = vector.load %arg7[%c0_9, %c0_10, %c0_11] : memref<18x18x4xf32, #tpu.memory_space<vmem>>, vector<18x16x4xf32>
    %7 = vector.shape_cast %6 : vector<18x16x4xf32> to vector<288x4xf32>
    %8 = vector.extract_strided_slice %7 {offsets = [0, 0], sizes = [256, 4], strides = [1, 1]} : vector<288x4xf32> to vector<256x4xf32>
    %c0_12 = arith.constant 0 : index
    %c0_13 = arith.constant 0 : index
    %c0_14 = arith.constant 0 : index
    %9 = vector.load %arg2[%c0_12, %c0_13, %c0_14] : memref<9x4x8xf32, #tpu.memory_space<vmem>>, vector<1x4x8xf32>
    %10 = vector.shape_cast %9 : vector<1x4x8xf32> to vector<4x8xf32>
    %cst_15 = arith.constant dense<0.000000e+00> : vector<256x8xf32>
    %11 = tpu.matmul %8, %10, %cst_15 {dimension_numbers = #tpu.dot_dimension_numbers<[1], [0], [0], [1], [0, 0, 1, 1], [], []>} : vector<256x4xf32>, vector<4x8xf32>, vector<256x8xf32> -> vector<256x8xf32>
    %12 = arith.addf %5, %11 : vector<256x8xf32>
    %13 = vector.extract_strided_slice %7 {offsets = [16, 0], sizes = [256, 4], strides = [1, 1]} : vector<288x4xf32> to vector<256x4xf32>
    %c3 = arith.constant 3 : index
    %c0_16 = arith.constant 0 : index
    %c0_17 = arith.constant 0 : index
    %14 = vector.load %arg2[%c3, %c0_16, %c0_17] : memref<9x4x8xf32, #tpu.memory_space<vmem>>, vector<1x4x8xf32>
    %15 = vector.shape_cast %14 : vector<1x4x8xf32> to vector<4x8xf32>
    %cst_18 = arith.constant dense<0.000000e+00> : vector<256x8xf32>
    %16 = tpu.matmul %13, %15, %cst_18 {dimension_numbers = #tpu.dot_dimension_numbers<[1], [0], [0], [1], [0, 0, 1, 1], [], []>} : vector<256x4xf32>, vector<4x8xf32>, vector<256x8xf32> -> vector<256x8xf32>
    %17 = arith.addf %12, %16 : vector<256x8xf32>
    %18 = vector.extract_strided_slice %7 {offsets = [32, 0], sizes = [256, 4], strides = [1, 1]} : vector<288x4xf32> to vector<256x4xf32>
    %c6 = arith.constant 6 : index
    %c0_19 = arith.constant 0 : index
    %c0_20 = arith.constant 0 : index
    %19 = vector.load %arg2[%c6, %c0_19, %c0_20] : memref<9x4x8xf32, #tpu.memory_space<vmem>>, vector<1x4x8xf32>
    %20 = vector.shape_cast %19 : vector<1x4x8xf32> to vector<4x8xf32>
    %cst_21 = arith.constant dense<0.000000e+00> : vector<256x8xf32>
    %21 = tpu.matmul %18, %20, %cst_21 {dimension_numbers = #tpu.dot_dimension_numbers<[1], [0], [0], [1], [0, 0, 1, 1], [], []>} : vector<256x4xf32>, vector<4x8xf32>, vector<256x8xf32> -> vector<256x8xf32>
    %22 = arith.addf %17, %21 : vector<256x8xf32>
    %c0_22 = arith.constant 0 : index
    %c1_23 = arith.constant 1 : index
    %c0_24 = arith.constant 0 : index
    %23 = vector.load %arg7[%c0_22, %c1_23, %c0_24] : memref<18x18x4xf32, #tpu.memory_space<vmem>>, vector<18x16x4xf32>
    %24 = vector.shape_cast %23 : vector<18x16x4xf32> to vector<288x4xf32>
    %25 = vector.extract_strided_slice %24 {offsets = [0, 0], sizes = [256, 4], strides = [1, 1]} : vector<288x4xf32> to vector<256x4xf32>
    %c1_25 = arith.constant 1 : index
    %c0_26 = arith.constant 0 : index
    %c0_27 = arith.constant 0 : index
    %26 = vector.load %arg2[%c1_25, %c0_26, %c0_27] : memref<9x4x8xf32, #tpu.memory_space<vmem>>, vector<1x4x8xf32>
    %27 = vector.shape_cast %26 : vector<1x4x8xf32> to vector<4x8xf32>
    %cst_28 = arith.constant dense<0.000000e+00> : vector<256x8xf32>
    %28 = tpu.matmul %25, %27, %cst_28 {dimension_numbers = #tpu.dot_dimension_numbers<[1], [0], [0], [1], [0, 0, 1, 1], [], []>} : vector<256x4xf32>, vector<4x8xf32>, vector<256x8xf32> -> vector<256x8xf32>
    %29 = arith.addf %22, %28 : vector<256x8xf32>
    %30 = vector.extract_strided_slice %24 {offsets = [16, 0], sizes = [256, 4], strides = [1, 1]} : vector<288x4xf32> to vector<256x4xf32>
    %c4 = arith.constant 4 : index
    %c0_29 = arith.constant 0 : index
    %c0_30 = arith.constant 0 : index
    %31 = vector.load %arg2[%c4, %c0_29, %c0_30] : memref<9x4x8xf32, #tpu.memory_space<vmem>>, vector<1x4x8xf32>
    %32 = vector.shape_cast %31 : vector<1x4x8xf32> to vector<4x8xf32>
    %cst_31 = arith.constant dense<0.000000e+00> : vector<256x8xf32>
    %33 = tpu.matmul %30, %32, %cst_31 {dimension_numbers = #tpu.dot_dimension_numbers<[1], [0], [0], [1], [0, 0, 1, 1], [], []>} : vector<256x4xf32>, vector<4x8xf32>, vector<256x8xf32> -> vector<256x8xf32>
    %34 = arith.addf %29, %33 : vector<256x8xf32>
    %35 = vector.extract_strided_slice %24 {offsets = [32, 0], sizes = [256, 4], strides = [1, 1]} : vector<288x4xf32> to vector<256x4xf32>
    %c7 = arith.constant 7 : index
    %c0_32 = arith.constant 0 : index
    %c0_33 = arith.constant 0 : index
    %36 = vector.load %arg2[%c7, %c0_32, %c0_33] : memref<9x4x8xf32, #tpu.memory_space<vmem>>, vector<1x4x8xf32>
    %37 = vector.shape_cast %36 : vector<1x4x8xf32> to vector<4x8xf32>
    %cst_34 = arith.constant dense<0.000000e+00> : vector<256x8xf32>
    %38 = tpu.matmul %35, %37, %cst_34 {dimension_numbers = #tpu.dot_dimension_numbers<[1], [0], [0], [1], [0, 0, 1, 1], [], []>} : vector<256x4xf32>, vector<4x8xf32>, vector<256x8xf32> -> vector<256x8xf32>
    %39 = arith.addf %34, %38 : vector<256x8xf32>
    %c0_35 = arith.constant 0 : index
    %c2 = arith.constant 2 : index
    %c0_36 = arith.constant 0 : index
    %40 = vector.load %arg7[%c0_35, %c2, %c0_36] : memref<18x18x4xf32, #tpu.memory_space<vmem>>, vector<18x16x4xf32>
    %41 = vector.shape_cast %40 : vector<18x16x4xf32> to vector<288x4xf32>
    %42 = vector.extract_strided_slice %41 {offsets = [0, 0], sizes = [256, 4], strides = [1, 1]} : vector<288x4xf32> to vector<256x4xf32>
    %c2_37 = arith.constant 2 : index
    %c0_38 = arith.constant 0 : index
    %c0_39 = arith.constant 0 : index
    %43 = vector.load %arg2[%c2_37, %c0_38, %c0_39] : memref<9x4x8xf32, #tpu.memory_space<vmem>>, vector<1x4x8xf32>
    %44 = vector.shape_cast %43 : vector<1x4x8xf32> to vector<4x8xf32>
    %cst_40 = arith.constant dense<0.000000e+00> : vector<256x8xf32>
    %45 = tpu.matmul %42, %44, %cst_40 {dimension_numbers = #tpu.dot_dimension_numbers<[1], [0], [0], [1], [0, 0, 1, 1], [], []>} : vector<256x4xf32>, vector<4x8xf32>, vector<256x8xf32> -> vector<256x8xf32>
    %46 = arith.addf %39, %45 : vector<256x8xf32>
    %47 = vector.extract_strided_slice %41 {offsets = [16, 0], sizes = [256, 4], strides = [1, 1]} : vector<288x4xf32> to vector<256x4xf32>
    %c5 = arith.constant 5 : index
    %c0_41 = arith.constant 0 : index
    %c0_42 = arith.constant 0 : index
    %48 = vector.load %arg2[%c5, %c0_41, %c0_42] : memref<9x4x8xf32, #tpu.memory_space<vmem>>, vector<1x4x8xf32>
    %49 = vector.shape_cast %48 : vector<1x4x8xf32> to vector<4x8xf32>
    %cst_43 = arith.constant dense<0.000000e+00> : vector<256x8xf32>
    %50 = tpu.matmul %47, %49, %cst_43 {dimension_numbers = #tpu.dot_dimension_numbers<[1], [0], [0], [1], [0, 0, 1, 1], [], []>} : vector<256x4xf32>, vector<4x8xf32>, vector<256x8xf32> -> vector<256x8xf32>
    %51 = arith.addf %46, %50 : vector<256x8xf32>
    %52 = vector.extract_strided_slice %41 {offsets = [32, 0], sizes = [256, 4], strides = [1, 1]} : vector<288x4xf32> to vector<256x4xf32>
    %c8 = arith.constant 8 : index
    %c0_44 = arith.constant 0 : index
    %c0_45 = arith.constant 0 : index
    %53 = vector.load %arg2[%c8, %c0_44, %c0_45] : memref<9x4x8xf32, #tpu.memory_space<vmem>>, vector<1x4x8xf32>
    %54 = vector.shape_cast %53 : vector<1x4x8xf32> to vector<4x8xf32>
    %cst_46 = arith.constant dense<0.000000e+00> : vector<256x8xf32>
    %55 = tpu.matmul %52, %54, %cst_46 {dimension_numbers = #tpu.dot_dimension_numbers<[1], [0], [0], [1], [0, 0, 1, 1], [], []>} : vector<256x4xf32>, vector<4x8xf32>, vector<256x8xf32> -> vector<256x8xf32>
    %56 = arith.addf %51, %55 : vector<256x8xf32>
    %c0_47 = arith.constant 0 : index
    %c0_48 = arith.constant 0 : index
    %57 = vector.load %arg3[%c0_47, %c0_48] : memref<1x8xf32, #tpu.memory_space<vmem>>, vector<1x8xf32>
    %58 = vector.broadcast %57 : vector<1x8xf32> to vector<256x8xf32>
    %59 = arith.addf %56, %58 : vector<256x8xf32>
    %cst_49 = arith.constant 0.000000e+00 : f32
    %60 = vector.broadcast %cst_49 : f32 to vector<256x8xf32>
    %61 = arith.maximumf %59, %60 : vector<256x8xf32>
    %cst_50 = arith.constant 0.000000e+00 : f32
    %62 = vector.broadcast %cst_50 : f32 to vector<18x18x8xf32>
    %c0_51 = arith.constant 0 : index
    %c0_52 = arith.constant 0 : index
    %c0_53 = arith.constant 0 : index
    %63 = vector.load %arg8[%c0_51, %c0_52, %c0_53] : memref<18x18x8xf32, #tpu.memory_space<vmem>>, vector<18x18x8xf32>
    tpu.vector_store %arg8[%c0_51, %c0_52, %c0_53], %62 {strides = array<i32>} : memref<18x18x8xf32, #tpu.memory_space<vmem>>, vector<18x18x8xf32>,
    %64 = vector.shape_cast %61 : vector<256x8xf32> to vector<16x16x8xf32>
    %c1_54 = arith.constant 1 : index
    %c1_55 = arith.constant 1 : index
    %c0_56 = arith.constant 0 : index
    %65 = vector.load %arg8[%c1_54, %c1_55, %c0_56] : memref<18x18x8xf32, #tpu.memory_space<vmem>>, vector<16x16x8xf32>
    tpu.vector_store %arg8[%c1_54, %c1_55, %c0_56], %64 {strides = array<i32>} : memref<18x18x8xf32, #tpu.memory_space<vmem>>, vector<16x16x8xf32>,
    %cst_57 = arith.constant 0.000000e+00 : f32
    %66 = vector.broadcast %cst_57 : f32 to vector<256x8xf32>
    %c0_58 = arith.constant 0 : index
    %c0_59 = arith.constant 0 : index
    %c0_60 = arith.constant 0 : index
    %67 = vector.load %arg8[%c0_58, %c0_59, %c0_60] : memref<18x18x8xf32, #tpu.memory_space<vmem>>, vector<18x16x8xf32>
    %68 = vector.shape_cast %67 : vector<18x16x8xf32> to vector<288x8xf32>
    %69 = vector.extract_strided_slice %68 {offsets = [0, 0], sizes = [256, 8], strides = [1, 1]} : vector<288x8xf32> to vector<256x8xf32>
    %c0_61 = arith.constant 0 : index
    %c0_62 = arith.constant 0 : index
    %c0_63 = arith.constant 0 : index
    %70 = vector.load %arg4[%c0_61, %c0_62, %c0_63] : memref<9x8x8xf32, #tpu.memory_space<vmem>>, vector<1x8x8xf32>
    %71 = vector.shape_cast %70 : vector<1x8x8xf32> to vector<8x8xf32>
    %cst_64 = arith.constant dense<0.000000e+00> : vector<256x8xf32>
    %72 = tpu.matmul %69, %71, %cst_64 {dimension_numbers = #tpu.dot_dimension_numbers<[1], [0], [0], [1], [0, 0, 1, 1], [], []>} : vector<256x8xf32>, vector<8x8xf32>, vector<256x8xf32> -> vector<256x8xf32>
    %73 = arith.addf %66, %72 : vector<256x8xf32>
    %74 = vector.extract_strided_slice %68 {offsets = [16, 0], sizes = [256, 8], strides = [1, 1]} : vector<288x8xf32> to vector<256x8xf32>
    %c3_65 = arith.constant 3 : index
    %c0_66 = arith.constant 0 : index
    %c0_67 = arith.constant 0 : index
    %75 = vector.load %arg4[%c3_65, %c0_66, %c0_67] : memref<9x8x8xf32, #tpu.memory_space<vmem>>, vector<1x8x8xf32>
    %76 = vector.shape_cast %75 : vector<1x8x8xf32> to vector<8x8xf32>
    %cst_68 = arith.constant dense<0.000000e+00> : vector<256x8xf32>
    %77 = tpu.matmul %74, %76, %cst_68 {dimension_numbers = #tpu.dot_dimension_numbers<[1], [0], [0], [1], [0, 0, 1, 1], [], []>} : vector<256x8xf32>, vector<8x8xf32>, vector<256x8xf32> -> vector<256x8xf32>
    %78 = arith.addf %73, %77 : vector<256x8xf32>
    %79 = vector.extract_strided_slice %68 {offsets = [32, 0], sizes = [256, 8], strides = [1, 1]} : vector<288x8xf32> to vector<256x8xf32>
    %c6_69 = arith.constant 6 : index
    %c0_70 = arith.constant 0 : index
    %c0_71 = arith.constant 0 : index
    %80 = vector.load %arg4[%c6_69, %c0_70, %c0_71] : memref<9x8x8xf32, #tpu.memory_space<vmem>>, vector<1x8x8xf32>
    %81 = vector.shape_cast %80 : vector<1x8x8xf32> to vector<8x8xf32>
    %cst_72 = arith.constant dense<0.000000e+00> : vector<256x8xf32>
    %82 = tpu.matmul %79, %81, %cst_72 {dimension_numbers = #tpu.dot_dimension_numbers<[1], [0], [0], [1], [0, 0, 1, 1], [], []>} : vector<256x8xf32>, vector<8x8xf32>, vector<256x8xf32> -> vector<256x8xf32>
    %83 = arith.addf %78, %82 : vector<256x8xf32>
    %c0_73 = arith.constant 0 : index
    %c1_74 = arith.constant 1 : index
    %c0_75 = arith.constant 0 : index
    %84 = vector.load %arg8[%c0_73, %c1_74, %c0_75] : memref<18x18x8xf32, #tpu.memory_space<vmem>>, vector<18x16x8xf32>
    %85 = vector.shape_cast %84 : vector<18x16x8xf32> to vector<288x8xf32>
    %86 = vector.extract_strided_slice %85 {offsets = [0, 0], sizes = [256, 8], strides = [1, 1]} : vector<288x8xf32> to vector<256x8xf32>
    %c1_76 = arith.constant 1 : index
    %c0_77 = arith.constant 0 : index
    %c0_78 = arith.constant 0 : index
    %87 = vector.load %arg4[%c1_76, %c0_77, %c0_78] : memref<9x8x8xf32, #tpu.memory_space<vmem>>, vector<1x8x8xf32>
    %88 = vector.shape_cast %87 : vector<1x8x8xf32> to vector<8x8xf32>
    %cst_79 = arith.constant dense<0.000000e+00> : vector<256x8xf32>
    %89 = tpu.matmul %86, %88, %cst_79 {dimension_numbers = #tpu.dot_dimension_numbers<[1], [0], [0], [1], [0, 0, 1, 1], [], []>} : vector<256x8xf32>, vector<8x8xf32>, vector<256x8xf32> -> vector<256x8xf32>
    %90 = arith.addf %83, %89 : vector<256x8xf32>
    %91 = vector.extract_strided_slice %85 {offsets = [16, 0], sizes = [256, 8], strides = [1, 1]} : vector<288x8xf32> to vector<256x8xf32>
    %c4_80 = arith.constant 4 : index
    %c0_81 = arith.constant 0 : index
    %c0_82 = arith.constant 0 : index
    %92 = vector.load %arg4[%c4_80, %c0_81, %c0_82] : memref<9x8x8xf32, #tpu.memory_space<vmem>>, vector<1x8x8xf32>
    %93 = vector.shape_cast %92 : vector<1x8x8xf32> to vector<8x8xf32>
    %cst_83 = arith.constant dense<0.000000e+00> : vector<256x8xf32>
    %94 = tpu.matmul %91, %93, %cst_83 {dimension_numbers = #tpu.dot_dimension_numbers<[1], [0], [0], [1], [0, 0, 1, 1], [], []>} : vector<256x8xf32>, vector<8x8xf32>, vector<256x8xf32> -> vector<256x8xf32>
    %95 = arith.addf %90, %94 : vector<256x8xf32>
    %96 = vector.extract_strided_slice %85 {offsets = [32, 0], sizes = [256, 8], strides = [1, 1]} : vector<288x8xf32> to vector<256x8xf32>
    %c7_84 = arith.constant 7 : index
    %c0_85 = arith.constant 0 : index
    %c0_86 = arith.constant 0 : index
    %97 = vector.load %arg4[%c7_84, %c0_85, %c0_86] : memref<9x8x8xf32, #tpu.memory_space<vmem>>, vector<1x8x8xf32>
    %98 = vector.shape_cast %97 : vector<1x8x8xf32> to vector<8x8xf32>
    %cst_87 = arith.constant dense<0.000000e+00> : vector<256x8xf32>
    %99 = tpu.matmul %96, %98, %cst_87 {dimension_numbers = #tpu.dot_dimension_numbers<[1], [0], [0], [1], [0, 0, 1, 1], [], []>} : vector<256x8xf32>, vector<8x8xf32>, vector<256x8xf32> -> vector<256x8xf32>
    %100 = arith.addf %95, %99 : vector<256x8xf32>
    %c0_88 = arith.constant 0 : index
    %c2_89 = arith.constant 2 : index
    %c0_90 = arith.constant 0 : index
    %101 = vector.load %arg8[%c0_88, %c2_89, %c0_90] : memref<18x18x8xf32, #tpu.memory_space<vmem>>, vector<18x16x8xf32>
    %102 = vector.shape_cast %101 : vector<18x16x8xf32> to vector<288x8xf32>
    %103 = vector.extract_strided_slice %102 {offsets = [0, 0], sizes = [256, 8], strides = [1, 1]} : vector<288x8xf32> to vector<256x8xf32>
    %c2_91 = arith.constant 2 : index
    %c0_92 = arith.constant 0 : index
    %c0_93 = arith.constant 0 : index
    %104 = vector.load %arg4[%c2_91, %c0_92, %c0_93] : memref<9x8x8xf32, #tpu.memory_space<vmem>>, vector<1x8x8xf32>
    %105 = vector.shape_cast %104 : vector<1x8x8xf32> to vector<8x8xf32>
    %cst_94 = arith.constant dense<0.000000e+00> : vector<256x8xf32>
    %106 = tpu.matmul %103, %105, %cst_94 {dimension_numbers = #tpu.dot_dimension_numbers<[1], [0], [0], [1], [0, 0, 1, 1], [], []>} : vector<256x8xf32>, vector<8x8xf32>, vector<256x8xf32> -> vector<256x8xf32>
    %107 = arith.addf %100, %106 : vector<256x8xf32>
    %108 = vector.extract_strided_slice %102 {offsets = [16, 0], sizes = [256, 8], strides = [1, 1]} : vector<288x8xf32> to vector<256x8xf32>
    %c5_95 = arith.constant 5 : index
    %c0_96 = arith.constant 0 : index
    %c0_97 = arith.constant 0 : index
    %109 = vector.load %arg4[%c5_95, %c0_96, %c0_97] : memref<9x8x8xf32, #tpu.memory_space<vmem>>, vector<1x8x8xf32>
    %110 = vector.shape_cast %109 : vector<1x8x8xf32> to vector<8x8xf32>
    %cst_98 = arith.constant dense<0.000000e+00> : vector<256x8xf32>
    %111 = tpu.matmul %108, %110, %cst_98 {dimension_numbers = #tpu.dot_dimension_numbers<[1], [0], [0], [1], [0, 0, 1, 1], [], []>} : vector<256x8xf32>, vector<8x8xf32>, vector<256x8xf32> -> vector<256x8xf32>
    %112 = arith.addf %107, %111 : vector<256x8xf32>
    %113 = vector.extract_strided_slice %102 {offsets = [32, 0], sizes = [256, 8], strides = [1, 1]} : vector<288x8xf32> to vector<256x8xf32>
    %c8_99 = arith.constant 8 : index
    %c0_100 = arith.constant 0 : index
    %c0_101 = arith.constant 0 : index
    %114 = vector.load %arg4[%c8_99, %c0_100, %c0_101] : memref<9x8x8xf32, #tpu.memory_space<vmem>>, vector<1x8x8xf32>
    %115 = vector.shape_cast %114 : vector<1x8x8xf32> to vector<8x8xf32>
    %cst_102 = arith.constant dense<0.000000e+00> : vector<256x8xf32>
    %116 = tpu.matmul %113, %115, %cst_102 {dimension_numbers = #tpu.dot_dimension_numbers<[1], [0], [0], [1], [0, 0, 1, 1], [], []>} : vector<256x8xf32>, vector<8x8xf32>, vector<256x8xf32> -> vector<256x8xf32>
    %117 = arith.addf %112, %116 : vector<256x8xf32>
    %c0_103 = arith.constant 0 : index
    %c0_104 = arith.constant 0 : index
    %118 = vector.load %arg5[%c0_103, %c0_104] : memref<1x8xf32, #tpu.memory_space<vmem>>, vector<1x8xf32>
    %119 = vector.broadcast %118 : vector<1x8xf32> to vector<256x8xf32>
    %120 = arith.addf %117, %119 : vector<256x8xf32>
    %cst_105 = arith.constant 0.000000e+00 : f32
    %121 = vector.broadcast %cst_105 : f32 to vector<256x8xf32>
    %122 = arith.maximumf %120, %121 : vector<256x8xf32>
    %123 = vector.shape_cast %122 : vector<256x8xf32> to vector<1x16x16x8xf32>
    %c0_106 = arith.constant 0 : index
    %c0_107 = arith.constant 0 : index
    %c0_108 = arith.constant 0 : index
    %c0_109 = arith.constant 0 : index
    %124 = vector.load %arg6[%c0_106, %c0_107, %c0_108, %c0_109] : memref<1x16x16x8xf32, #tpu.memory_space<vmem>>, vector<1x16x16x8xf32>
    tpu.vector_store %arg6[%c0_106, %c0_107, %c0_108, %c0_109], %123 {strides = array<i32>} : memref<1x16x16x8xf32, #tpu.memory_space<vmem>>, vector<1x16x16x8xf32>,
    return
  }
  func.func @transform_0(%arg0: i32) -> (i32, i32, i32, i32) {
    %c0_i32 = arith.constant 0 : i32
    %c0_i32_0 = arith.constant 0 : i32
    %c0_i32_1 = arith.constant 0 : i32
    %c0_i32_2 = arith.constant 0 : i32
    return %arg0, %c0_i32, %c0_i32_0, %c0_i32_1 : i32, i32, i32, i32
  }
  func.func @transform_1(%arg0: i32) -> (i32, i32, i32) {
    %c0_i32 = arith.constant 0 : i32
    %c0_i32_0 = arith.constant 0 : i32
    %c0_i32_1 = arith.constant 0 : i32
    %c0_i32_2 = arith.constant 0 : i32
    return %c0_i32, %c0_i32_0, %c0_i32_1 : i32, i32, i32
  }
  func.func @transform_2(%arg0: i32) -> (i32, i32) {
    %c0_i32 = arith.constant 0 : i32
    %c0_i32_0 = arith.constant 0 : i32
    %c0_i32_1 = arith.constant 0 : i32
    return %c0_i32, %c0_i32_0 : i32, i32
  }
  func.func @transform_3(%arg0: i32) -> (i32, i32, i32) {
    %c0_i32 = arith.constant 0 : i32
    %c0_i32_0 = arith.constant 0 : i32
    %c0_i32_1 = arith.constant 0 : i32
    %c0_i32_2 = arith.constant 0 : i32
    return %c0_i32, %c0_i32_0, %c0_i32_1 : i32, i32, i32
  }
  func.func @transform_4(%arg0: i32) -> (i32, i32) {
    %c0_i32 = arith.constant 0 : i32
    %c0_i32_0 = arith.constant 0 : i32
    %c0_i32_1 = arith.constant 0 : i32
    return %c0_i32, %c0_i32_0 : i32, i32
  }
  func.func @transform_5(%arg0: i32) -> (i32, i32, i32, i32) {
    %c0_i32 = arith.constant 0 : i32
    %c0_i32_0 = arith.constant 0 : i32
    %c0_i32_1 = arith.constant 0 : i32
    %c0_i32_2 = arith.constant 0 : i32
    return %arg0, %c0_i32, %c0_i32_0, %c0_i32_1 : i32, i32, i32, i32
  }
}

</mosaic_0001>

<bundles_post_ra>
// kernel: tpu_custom_call.1
= control target key start
LH: loop header
LB: loop body
LE: loop exit
PB: predicated region body
PF: predicated region fallthrough
CT: control target
= control target key end

     0   :  { %s8246_s18 = smov 0   ;;  %s11484_s0 = inlined_call_operand.vmem [shape: f32[2,16,16,4], index: 0, kind: input, shape index: {}]   ;;  %s11485_s1 = inlined_call_operand.vmem [shape: f32[9,4,8], index: 1, kind: input, shape index: {}]   ;;  %s11486_s2 = inlined_call_operand.vmem [shape: f32[1,8], index: 2, kind: input, shape index: {}]   ;;  %s11487_s3 = inlined_call_operand.vmem [shape: f32[9,8,8], index: 3, kind: input, shape index: {}]   ;;  %s11488_s4 = inlined_call_operand.vmem [shape: f32[1,8], index: 4, kind: input, shape index: {}]   ;;  %s11489_s5 = inlined_call_operand.vmem [shape: f32[2,16,16,8], index: 5, kind: output, shape index: {}]  }
   0x1 LB: > { %s6088_s19 = sadd.s32 4294967295, %s8213_s18   ;;  %p6092_p0 = scmp.ge.s32.totalorder %s8213_s18, 1  ;;  %s8213_s18 = sphi %s8246_s18, %s15_s18  }
   0x2   : > { %p187_p1 = scmp.lt.s32.totalorder %s8213_s18, 3 }
   0x4   : > { %p188_p2 = pnand %p6092_p0, %p187_p1 }
   0x6   : > { %191 = sbr.rel (%p188_p2) target bundleno = 1033 (0x409), region = 40 }
   0xb   : > { %v6097_v0 = vld [vmem:[%s11485_s1 + $0xc] sm:$0xf]  ;;  %vm481_vm0 = vcmask 1043456   ;;  %v382_v1 = vld [vmem:[%s11485_s1] sm:$0xf]  ;;  %p215_p3 = scmp.lt.s32.totalorder %s6088_s19, 1 }
   0xc   : > { %7298 = vmatprep.subr.msk.mxu0 %vm481_vm0, %v6097_v0  ;;  %7348 = vmatprep.subr.msk.mxu1 %vm481_vm0, %v382_v1  ;;  %vm225_vm1 = vcmask 31744   ;;  %v8265_v2 = vld [vmem:[%s11485_s1 + $0x18] sm:$0xf]  ;;  %vm228_vm2 = vcmask 25600   ;;  %v11490_v3 = vmov 0.0   ;;  %vm3143_vm3 = vcmask 64512  }
   0xd   : > { %7299 = vmatpush3.msk.msra.mxu0 %vm481_vm0, %v6097_v0  ;;  %s11833_s19 = smov (!%p215_p3, %s6088_s19), 1  ;;  %230 = vst.msk [vmem:[#allocation2 + $0x18] sm:$0xff] %vm225_vm1, %v11490_v3  ;;  %231 = vst.msk [vmem:[#allocation2 + $0x20] sm:$0xff] %vm225_vm1, %v11490_v3  ;;  %7349 = vmatpush3.msk.msra.mxu1 %vm481_vm0, %v382_v1  ;;  %v6198_v4 = vld [vmem:[%s11485_s1 + $0x4] sm:$0xf]  ;;  %vm3146_vm4 = vcmask 58368  }
   0xe   : > { %226 = vst.msk [vmem:[#allocation2] sm:$0xff] %vm225_vm1, %v11490_v3  ;;  %227 = vst.msk [vmem:[#allocation2 + $0x8] sm:$0xff] %vm225_vm1, %v11490_v3  ;;  %7398 = vmatprep.subr.msk.mxu0 %vm481_vm0, %v8265_v2  ;;  %7448 = vmatprep.subr.msk.mxu1 %vm481_vm0, %v6198_v4  ;;  %s6702_s28 = sshll.u32 %s11833_s19, 8  ;;  %v8447_v32 = vld [vmem:[%s11485_s1 + $0x10] sm:$0xf] }
   0xf   : > { %233 = vst.msk [vmem:[#allocation2 + $0x30] sm:$0xff] %vm225_vm1, %v11490_v3  ;;  %234 = vst.msk [vmem:[#allocation2 + $0x38] sm:$0xff] %vm225_vm1, %v11490_v3  ;;  %s8391_s6 = scalar_lea.vmem %s11484_s0, %s6702_s28  ;;  %v8546_v55 = vld [vmem:[%s11485_s1 + $0x1c] sm:$0xf]  ;;  %s11275_s21 = scalar_lea.vmem %s11489_s5, %s6702_s28 }
  0x10   : > { %236 = vst.msk [vmem:[#allocation2 + $0x48] sm:$0xff] %vm225_vm1, %v11490_v3  ;;  %237 = vst.msk [vmem:[#allocation2 + $0x50] sm:$0xff] %vm225_vm1, %v11490_v3  ;;  %v281_v5 = vld [vmem:[%s8391_s6] sm:$0xff]  ;;  %v282_v6 = vld [vmem:[%s8391_s6 + $0x8] sm:$0xff] }
  0x11   : > { %239 = vst.msk [vmem:[#allocation2 + $0x60] sm:$0xff] %vm225_vm1, %v11490_v3  ;;  %240 = vst.msk [vmem:[#allocation2 + $0x68] sm:$0xff] %vm225_vm1, %v11490_v3  ;;  %v283_v7 = vld [vmem:[%s8391_s6 + $0x10] sm:$0xff]  ;;  %v284_v8 = vld [vmem:[%s8391_s6 + $0x18] sm:$0xff] }
  0x12   : > { %242 = vst.msk [vmem:[#allocation2 + $0x78] sm:$0xff] %vm225_vm1, %v11490_v3  ;;  %243 = vst.msk [vmem:[#allocation2 + $0x80] sm:$0xff] %vm225_vm1, %v11490_v3  ;;  %v285_v9 = vld [vmem:[%s8391_s6 + $0x20] sm:$0xff]  ;;  %v286_v10 = vld [vmem:[%s8391_s6 + $0x28] sm:$0xff] }
  0x13   : > { %245 = vst.msk [vmem:[#allocation2 + $0x90] sm:$0xff] %vm225_vm1, %v11490_v3  ;;  %246 = vst.msk [vmem:[#allocation2 + $0x98] sm:$0xff] %vm225_vm1, %v11490_v3  ;;  %v287_v11 = vld [vmem:[%s8391_s6 + $0x30] sm:$0xff]  ;;  %v288_v12 = vld [vmem:[%s8391_s6 + $0x38] sm:$0xff] }
  0x14   : > { %248 = vst.msk [vmem:[#allocation2 + $0xa8] sm:$0xff] %vm225_vm1, %v11490_v3  ;;  %249 = vst.msk [vmem:[#allocation2 + $0xb0] sm:$0xff] %vm225_vm1, %v11490_v3  ;;  %v289_v13 = vld [vmem:[%s8391_s6 + $0x40] sm:$0xff]  ;;  %v290_v16 = vld [vmem:[%s8391_s6 + $0x48] sm:$0xff] }
  0x15   : > { %251 = vst.msk [vmem:[#allocation2 + $0xc0] sm:$0xff] %vm225_vm1, %v11490_v3  ;;  %252 = vst.msk [vmem:[#allocation2 + $0xc8] sm:$0xff] %vm225_vm1, %v11490_v3  ;;  %v346_v14 = vld [vmem:[#allocation2] sm:$0xff]  ;;  %v347_v15 = vld [vmem:[#allocation2 + $0x8] sm:$0xff] }
  0x16   : > { %254 = vst.msk [vmem:[#allocation2 + $0xd8] sm:$0xff] %vm225_vm1, %v11490_v3  ;;  %255 = vst.msk [vmem:[#allocation2 + $0xe0] sm:$0xff] %vm225_vm1, %v11490_v3  ;;  %7350 = vmatprep.mubr.msk.f32.mxu1 %vm225_vm1, %v346_v14  ;;  %v291_v17 = vld [vmem:[%s8391_s6 + $0x50] sm:$0xff]  ;;  %v292_v18 = vld [vmem:[%s8391_s6 + $0x58] sm:$0xff] }
  0x17   : > { %257 = vst.msk [vmem:[#allocation2 + $0xf0] sm:$0xff] %vm225_vm1, %v11490_v3  ;;  %258 = vst.msk [vmem:[#allocation2 + $0xf8] sm:$0xff] %vm225_vm1, %v11490_v3  ;;  %v293_v19 = vld [vmem:[%s8391_s6 + $0x60] sm:$0xff]  ;;  %7351 = vmatmul.mubr.msk.f32.vlgmr.msra.gmra.mxu1 %vm225_vm1, %v347_v15  ;;  %v294_v20 = vld [vmem:[%s8391_s6 + $0x68] sm:$0xff] }
  0x18   : > { %260 = vst.msk [vmem:[#allocation2 + $0x108] sm:$0xff] %vm225_vm1, %v11490_v3  ;;  %261 = vst.msk [vmem:[#allocation2 + $0x110] sm:$0xff] %vm225_vm1, %v11490_v3  ;;  %v295_v21 = vld [vmem:[%s8391_s6 + $0x70] sm:$0xff]  ;;  %v296_v22 = vld [vmem:[%s8391_s6 + $0x78] sm:$0xff]  ;;  %7449 = vmatpush3.msk.msra.mxu1 %vm481_vm0, %v6198_v4 }
  0x19   : > { %263 = vst.msk [vmem:[#allocation2 + $0x120] sm:$0xff] %vm225_vm1, %v11490_v3  ;;  %264 = vst.msk [vmem:[#allocation2 + $0x128] sm:$0xff] %vm225_vm1, %v11490_v3  ;;  %v297_v23 = vld [vmem:[%s8391_s6 + $0x80] sm:$0xff]  ;;  %v298_v24 = vld [vmem:[%s8391_s6 + $0x88] sm:$0xff]  ;;  %7548 = vmatprep.subr.msk.mxu1 %vm481_vm0, %v8546_v55 }
  0x1a   : > { %266 = vst.msk [vmem:[#allocation2 + $0x138] sm:$0xff] %vm225_vm1, %v11490_v3  ;;  %267 = vst.msk [vmem:[#allocation2 + $0x140] sm:$0xff] %vm225_vm1, %v11490_v3  ;;  %v299_v25 = vld [vmem:[%s8391_s6 + $0x90] sm:$0xff]  ;;  %v300_v26 = vld [vmem:[%s8391_s6 + $0x98] sm:$0xff] }
  0x1b   : > { %269 = vst.msk [vmem:[#allocation2 + $0x150] sm:$0xff] %vm225_vm1, %v11490_v3  ;;  %270 = vst.msk [vmem:[#allocation2 + $0x158] sm:$0xff] %vm225_vm1, %v11490_v3  ;;  %v301_v27 = vld [vmem:[%s8391_s6 + $0xa0] sm:$0xff]  ;;  %v302_v28 = vld [vmem:[%s8391_s6 + $0xa8] sm:$0xff] }
  0x1c   : > { %272 = vst.msk [vmem:[#allocation2 + $0x168] sm:$0xff] %vm225_vm1, %v11490_v3  ;;  %273 = vst.msk [vmem:[#allocation2 + $0x170] sm:$0xff] %vm225_vm1, %v11490_v3  ;;  %v303_v34 = vld [vmem:[%s8391_s6 + $0xb0] sm:$0xff]  ;;  %v304_v35 = vld [vmem:[%s8391_s6 + $0xb8] sm:$0xff] }
  0x1d   : > { %275 = vst.msk [vmem:[#allocation2 + $0x180] sm:$0xff] %vm225_vm1, %v11490_v3  ;;  %276 = vst.msk [vmem:[#allocation2 + $0x188] sm:$0xff] %vm225_vm1, %v11490_v3  ;;  %v305_v39 = vld [vmem:[%s8391_s6 + $0xc0] sm:$0xff]  ;;  %v306_v40 = vld [vmem:[%s8391_s6 + $0xc8] sm:$0xff] }
  0x1e   : > { %278 = vst.msk [vmem:[#allocation2 + $0x198] sm:$0xff] %vm225_vm1, %v11490_v3  ;;  %279 = vst.msk [vmem:[#allocation2 + $0x1a0] sm:$0xff] %vm225_vm1, %v11490_v3  ;;  %v307_v41 = vld [vmem:[%s8391_s6 + $0xd0] sm:$0xff]  ;;  %v308_v42 = vld [vmem:[%s8391_s6 + $0xd8] sm:$0xff] }
  0x1f   : > { %232 = vst.msk [vmem:[#allocation2 + $0x28] sm:$0x3] %vm228_vm2, %v11490_v3  ;;  %229 = vst.msk [vmem:[#allocation2 + $0x10] sm:$0x3] %vm228_vm2, %v11490_v3  ;;  %v309_v43 = vld [vmem:[%s8391_s6 + $0xe0] sm:$0xff]  ;;  %v310_v44 = vld [vmem:[%s8391_s6 + $0xe8] sm:$0xff] }
  0x20   : > { %235 = vst.msk [vmem:[#allocation2 + $0x40] sm:$0x3] %vm228_vm2, %v11490_v3  ;;  %238 = vst.msk [vmem:[#allocation2 + $0x58] sm:$0x3] %vm228_vm2, %v11490_v3  ;;  %v311_v45 = vld [vmem:[%s8391_s6 + $0xf0] sm:$0xff]  ;;  %v312_v46 = vld [vmem:[%s8391_s6 + $0xf8] sm:$0xff] }
  0x21   : > { %241 = vst.msk [vmem:[#allocation2 + $0x70] sm:$0x3] %vm228_vm2, %v11490_v3  ;;  %244 = vst.msk [vmem:[#allocation2 + $0x88] sm:$0x3] %vm228_vm2, %v11490_v3 }
  0x22   : > { %247 = vst.msk [vmem:[#allocation2 + $0xa0] sm:$0x3] %vm228_vm2, %v11490_v3  ;;  %250 = vst.msk [vmem:[#allocation2 + $0xb8] sm:$0x3] %vm228_vm2, %v11490_v3 }
  0x23   : > { %253 = vst.msk [vmem:[#allocation2 + $0xd0] sm:$0x3] %vm228_vm2, %v11490_v3  ;;  %256 = vst.msk [vmem:[#allocation2 + $0xe8] sm:$0x3] %vm228_vm2, %v11490_v3 }
  0x24   : > { %259 = vst.msk [vmem:[#allocation2 + $0x100] sm:$0x3] %vm228_vm2, %v11490_v3  ;;  %262 = vst.msk [vmem:[#allocation2 + $0x118] sm:$0x3] %vm228_vm2, %v11490_v3 }
  0x25   : > { %265 = vst.msk [vmem:[#allocation2 + $0x130] sm:$0x3] %vm228_vm2, %v11490_v3  ;;  %268 = vst.msk [vmem:[#allocation2 + $0x148] sm:$0x3] %vm228_vm2, %v11490_v3 }
  0x26   : > { %271 = vst.msk [vmem:[#allocation2 + $0x160] sm:$0x3] %vm228_vm2, %v11490_v3  ;;  %274 = vst.msk [vmem:[#allocation2 + $0x178] sm:$0x3] %vm228_vm2, %v11490_v3 }
  0x27   : > { %277 = vst.msk [vmem:[#allocation2 + $0x190] sm:$0x3] %vm228_vm2, %v11490_v3  ;;  %280 = vst.msk [vmem:[#allocation2 + $0x1a8] sm:$0x3] %vm228_vm2, %v11490_v3 }
  0x28   : > { %314 = vst.msk [vmem:[#allocation2 + $0x19] sm:$0xff] %vm225_vm1, %v281_v5  ;;  %315 = vst.msk [vmem:[#allocation2 + $0x21] sm:$0xff] %vm225_vm1, %v282_v6 }
  0x29   : > { %316 = vst.msk [vmem:[#allocation2 + $0x31] sm:$0xff] %vm225_vm1, %v283_v7  ;;  %317 = vst.msk [vmem:[#allocation2 + $0x39] sm:$0xff] %vm225_vm1, %v284_v8 }
  0x2a   : > { %318 = vst.msk [vmem:[#allocation2 + $0x49] sm:$0xff] %vm225_vm1, %v285_v9  ;;  %319 = vst.msk [vmem:[#allocation2 + $0x51] sm:$0xff] %vm225_vm1, %v286_v10  ;;  %v1212_v9 = vld [vmem:[#allocation2 + $0x1] sm:$0xff] }
  0x2b   : > { %320 = vst.msk [vmem:[#allocation2 + $0x61] sm:$0xff] %vm225_vm1, %v287_v11  ;;  %321 = vst.msk [vmem:[#allocation2 + $0x69] sm:$0xff] %vm225_vm1, %v288_v12  ;;  %v1213_v11 = vld [vmem:[#allocation2 + $0x9] sm:$0xff] }
  0x2c   : > { %322 = vst.msk [vmem:[#allocation2 + $0x79] sm:$0xff] %vm225_vm1, %v289_v13  ;;  %323 = vst.msk [vmem:[#allocation2 + $0x81] sm:$0xff] %vm225_vm1, %v290_v16  ;;  %v8663_v13 = vld [vmem:[%s11485_s1 + $0x14] sm:$0xf]  ;;  %v8678_v16 = vld [vmem:[%s11485_s1 + $0x8] sm:$0xf] }
  0x2d   : > { %324 = vst.msk [vmem:[#allocation2 + $0x91] sm:$0xff] %vm225_vm1, %v291_v17  ;;  %325 = vst.msk [vmem:[#allocation2 + $0x99] sm:$0xff] %vm225_vm1, %v292_v18 }
  0x2e   : > { %326 = vst.msk [vmem:[#allocation2 + $0xa9] sm:$0xff] %vm225_vm1, %v293_v19  ;;  %327 = vst.msk [vmem:[#allocation2 + $0xb1] sm:$0xff] %vm225_vm1, %v294_v20 }
  0x2f   : > { %328 = vst.msk [vmem:[#allocation2 + $0xc1] sm:$0xff] %vm225_vm1, %v295_v21  ;;  %329 = vst.msk [vmem:[#allocation2 + $0xc9] sm:$0xff] %vm225_vm1, %v296_v22  ;;  %v348_v29 = vld [vmem:[#allocation2 + $0x18] sm:$0xff]  ;;  %v349_v30 = vld [vmem:[#allocation2 + $0x20] sm:$0xff] }
  0x30   : > { %330 = vst.msk [vmem:[#allocation2 + $0xd9] sm:$0xff] %vm225_vm1, %v297_v23  ;;  %331 = vst.msk [vmem:[#allocation2 + $0xe1] sm:$0xff] %vm225_vm1, %v298_v24  ;;  %v8437_v31 = vld [vmem:[#allocation2 + $0x30] sm:$0xff]  ;;  %7300 = vmatprep.mubr.msk.f32.mxu0 %vm225_vm1, %v348_v29  ;;  %7353 = vmatprep.mubr.msk.f32.mxu1 %vm225_vm1, %v348_v29  ;;  %v8455_v33 = vld [vmem:[#allocation2 + $0x38] sm:$0xff] }
  0x31   : > { %332 = vst.msk [vmem:[#allocation2 + $0xf1] sm:$0xff] %vm225_vm1, %v299_v25  ;;  %333 = vst.msk [vmem:[#allocation2 + $0xf9] sm:$0xff] %vm225_vm1, %v300_v26  ;;  %7301 = vmatmul.mubr.msk.f32.vlgmr.msra.gmra.mxu0 %vm225_vm1, %v349_v30  ;;  %7354 = vmatmul.mubr.msk.f32.gmra.mxu1 %vm225_vm1, %v349_v30  ;;  %v8459_v36 = vld [vmem:[#allocation2 + $0x48] sm:$0xff]  ;;  %v8473_v37 = vld [vmem:[#allocation2 + $0x50] sm:$0xff] }
  0x32   : > { %334 = vst.msk [vmem:[#allocation2 + $0x109] sm:$0xff] %vm225_vm1, %v301_v27  ;;  %335 = vst.msk [vmem:[#allocation2 + $0x111] sm:$0xff] %vm225_vm1, %v302_v28  ;;  %7399 = vmatpush3.msk.msra.mxu0 %vm481_vm0, %v8265_v2  ;;  %7303 = vmatprep.mubr.msk.f32.mxu0 %vm225_vm1, %v8437_v31  ;;  %v8475_v38 = vld [vmem:[#allocation2 + $0x60] sm:$0xff]  ;;  %v8499_v47 = vld [vmem:[#allocation2 + $0x68] sm:$0xff] }
  0x33   : > { %7356 = vmatprep.mubr.msk.f32.mxu1 %vm225_vm1, %v8437_v31  ;;  %336 = vst.msk [vmem:[#allocation2 + $0x121] sm:$0xff] %vm225_vm1, %v303_v34  ;;  %337 = vst.msk [vmem:[#allocation2 + $0x129] sm:$0xff] %vm225_vm1, %v304_v35  ;;  %7498 = vmatprep.subr.msk.mxu0 %vm481_vm0, %v8447_v32  ;;  %v8505_v48 = vld [vmem:[#allocation2 + $0x78] sm:$0xff]  ;;  %v8513_v49 = vld [vmem:[#allocation2 + $0x80] sm:$0xff] }
  0x34   : > { %338 = vst.msk [vmem:[#allocation2 + $0x139] sm:$0xff] %vm225_vm1, %v305_v39  ;;  %339 = vst.msk [vmem:[#allocation2 + $0x141] sm:$0xff] %vm225_vm1, %v306_v40  ;;  %v8517_v50 = vld [vmem:[#allocation2 + $0x90] sm:$0xff]  ;;  %v8525_v51 = vld [vmem:[#allocation2 + $0x98] sm:$0xff] }
  0x35   : > { %7304 = vmatmul.mubr.msk.f32.gmra.mxu0 %vm225_vm1, %v8455_v33  ;;  %7357 = vmatmul.mubr.msk.f32.gmra.mxu1 %vm225_vm1, %v8455_v33  ;;  %340 = vst.msk [vmem:[#allocation2 + $0x151] sm:$0xff] %vm225_vm1, %v307_v41  ;;  %341 = vst.msk [vmem:[#allocation2 + $0x159] sm:$0xff] %vm225_vm1, %v308_v42  ;;  %v8529_v52 = vld [vmem:[#allocation2 + $0xa8] sm:$0xff]  ;;  %v8537_v53 = vld [vmem:[#allocation2 + $0xb0] sm:$0xff] }
  0x36   : > { %7306 = vmatprep.mubr.msk.f32.mxu0 %vm225_vm1, %v8459_v36  ;;  %7359 = vmatprep.mubr.msk.f32.mxu1 %vm225_vm1, %v8459_v36  ;;  %342 = vst.msk [vmem:[#allocation2 + $0x169] sm:$0xff] %vm225_vm1, %v309_v43  ;;  %343 = vst.msk [vmem:[#allocation2 + $0x171] sm:$0xff] %vm225_vm1, %v310_v44  ;;  %v8541_v54 = vld [vmem:[#allocation2 + $0xc0] sm:$0xff]  ;;  %v8554_v56 = vld [vmem:[#allocation2 + $0xc8] sm:$0xff] }
  0x37   : > { %344 = vst.msk [vmem:[#allocation2 + $0x181] sm:$0xff] %vm225_vm1, %v311_v45  ;;  %345 = vst.msk [vmem:[#allocation2 + $0x189] sm:$0xff] %vm225_vm1, %v312_v46  ;;  %v8558_v57 = vld [vmem:[#allocation2 + $0xd8] sm:$0xff]  ;;  %v8568_v58 = vld [vmem:[#allocation2 + $0xe0] sm:$0xff] }
  0x38   : > { %v8572_v59 = vld [vmem:[#allocation2 + $0xf0] sm:$0xff]  ;;  %v8580_v60 = vld [vmem:[#allocation2 + $0xf8] sm:$0xff]  ;;  %v8669_v14 = vld [vmem:[#allocation2 + $0x21] sm:$0xff] }
  0x39   : > { %7307 = vmatmul.mubr.msk.f32.gmra.mxu0 %vm225_vm1, %v8473_v37  ;;  %7360 = vmatmul.mubr.msk.f32.gmra.mxu1 %vm225_vm1, %v8473_v37  ;;  %v8584_v61 = vld [vmem:[#allocation2 + $0x108] sm:$0xff]  ;;  %v8592_v62 = vld [vmem:[#allocation2 + $0x110] sm:$0xff]  ;;  %v8655_v12 = vld [vmem:[#allocation2 + $0x19] sm:$0xff] }
  0x3a   : > { %7309 = vmatprep.mubr.msk.f32.mxu0 %vm225_vm1, %v8475_v38  ;;  %7362 = vmatprep.mubr.msk.f32.mxu1 %vm225_vm1, %v8475_v38  ;;  %v8596_v63 = vld [vmem:[#allocation2 + $0x120] sm:$0xff]  ;;  %v8604_v0 = vld [vmem:[#allocation2 + $0x128] sm:$0xff]  ;;  %v8673_v15 = vld [vmem:[#allocation2 + $0x31] sm:$0xff] }
  0x3b   : > { %v8608_v1 = vld [vmem:[#allocation2 + $0x138] sm:$0xff]  ;;  %v8616_v2 = vld [vmem:[#allocation2 + $0x140] sm:$0xff]  ;;  %v8694_v18 = vld [vmem:[#allocation2 + $0x49] sm:$0xff] }
  0x3c   : > { %v8620_v4 = vld [vmem:[#allocation2 + $0x150] sm:$0xff]  ;;  %v8628_v5 = vld [vmem:[#allocation2 + $0x158] sm:$0xff]  ;;  %v8708_v20 = vld [vmem:[#allocation2 + $0x61] sm:$0xff] }
  0x3d   : > { %7310 = vmatmul.mubr.msk.f32.gmra.mxu0 %vm225_vm1, %v8499_v47  ;;  %7363 = vmatmul.mubr.msk.f32.gmra.mxu1 %vm225_vm1, %v8499_v47  ;;  %v8632_v6 = vld [vmem:[#allocation2 + $0x168] sm:$0xff]  ;;  %v8640_v7 = vld [vmem:[#allocation2 + $0x170] sm:$0xff]  ;;  %v8690_v17 = vld [vmem:[#allocation2 + $0x39] sm:$0xff] }
  0x3e   : > { %7312 = vmatprep.mubr.msk.f32.mxu0 %vm225_vm1, %v8505_v48  ;;  %7365 = vmatprep.mubr.msk.f32.mxu1 %vm225_vm1, %v8505_v48  ;;  %v8644_v8 = vld [vmem:[#allocation2 + $0x180] sm:$0xff]  ;;  %v8652_v10 = vld [vmem:[#allocation2 + $0x188] sm:$0xff]  ;;  %v8706_v19 = vld [vmem:[#allocation2 + $0x51] sm:$0xff] }
  0x3f   : > { %v8718_v21 = vld [vmem:[#allocation2 + $0x69] sm:$0xff]  ;;  %v8720_v22 = vld [vmem:[#allocation2 + $0x79] sm:$0xff]  ;;  %v8730_v23 = vld [vmem:[#allocation2 + $0x81] sm:$0xff] }
  0x40   : > { %v8732_v24 = vld [vmem:[#allocation2 + $0x91] sm:$0xff]  ;;  %v8742_v25 = vld [vmem:[#allocation2 + $0x99] sm:$0xff]  ;;  %v8744_v26 = vld [vmem:[#allocation2 + $0xa9] sm:$0xff] }
  0x41   : > { %7313 = vmatmul.mubr.msk.f32.gmra.mxu0 %vm225_vm1, %v8513_v49  ;;  %7366 = vmatmul.mubr.msk.f32.gmra.mxu1 %vm225_vm1, %v8513_v49  ;;  %v8754_v27 = vld [vmem:[#allocation2 + $0xb1] sm:$0xff]  ;;  %v8756_v28 = vld [vmem:[#allocation2 + $0xc1] sm:$0xff]  ;;  %v8766_v29 = vld [vmem:[#allocation2 + $0xc9] sm:$0xff] }
  0x42   : > { %7315 = vmatprep.mubr.msk.f32.mxu0 %vm225_vm1, %v8517_v50  ;;  %7368 = vmatprep.mubr.msk.f32.mxu1 %vm225_vm1, %v8517_v50  ;;  %v8768_v30 = vld [vmem:[#allocation2 + $0xd9] sm:$0xff]  ;;  %v8792_v34 = vld [vmem:[#allocation2 + $0x109] sm:$0xff]  ;;  %v8802_v35 = vld [vmem:[#allocation2 + $0x111] sm:$0xff] }
  0x43   : > { %v8826_v39 = vld [vmem:[#allocation2 + $0x141] sm:$0xff]  ;;  %v8828_v40 = vld [vmem:[#allocation2 + $0x151] sm:$0xff]  ;;  %v8838_v41 = vld [vmem:[#allocation2 + $0x159] sm:$0xff] }
  0x44   : > { %v8840_v42 = vld [vmem:[#allocation2 + $0x169] sm:$0xff]  ;;  %v8850_v43 = vld [vmem:[#allocation2 + $0x171] sm:$0xff]  ;;  %v381_v45 = vld [vmem:[#allocation2 + $0x1a0] sm:$0xff] }
  0x45   : > { %7316 = vmatmul.mubr.msk.f32.gmra.mxu0 %vm225_vm1, %v8525_v51  ;;  %7369 = vmatmul.mubr.msk.f32.gmra.mxu1 %vm225_vm1, %v8525_v51  ;;  %v380_v44 = vld [vmem:[#allocation2 + $0x198] sm:$0xff]  ;;  %v8871_v46 = vld [vmem:[%s11485_s1 + $0x20] sm:$0xf] }
  0x46   : > { %7318 = vmatprep.mubr.msk.f32.mxu0 %vm225_vm1, %v8529_v52  ;;  %7371 = vmatprep.mubr.msk.f32.mxu1 %vm225_vm1, %v8529_v52  ;;  %v9219_v3 = vld [vmem:[#allocation2 + $0x182] sm:$0xff] }
  0x49   : > { %7319 = vmatmul.mubr.msk.f32.gmra.mxu0 %vm225_vm1, %v8537_v53  ;;  %7372 = vmatmul.mubr.msk.f32.gmra.mxu1 %vm225_vm1, %v8537_v53 }
  0x4a   : > { %7321 = vmatprep.mubr.msk.f32.mxu0 %vm225_vm1, %v8541_v54  ;;  %7374 = vmatprep.mubr.msk.f32.mxu1 %vm225_vm1, %v8541_v54 }
  0x4d   : > { %7322 = vmatmul.mubr.msk.f32.gmra.mxu0 %vm225_vm1, %v8554_v56  ;;  %7375 = vmatmul.mubr.msk.f32.gmra.mxu1 %vm225_vm1, %v8554_v56 }
  0x4e   : > { %7324 = vmatprep.mubr.msk.f32.mxu0 %vm225_vm1, %v8558_v57  ;;  %7377 = vmatprep.mubr.msk.f32.mxu1 %vm225_vm1, %v8558_v57 }
  0x51   : > { %7325 = vmatmul.mubr.msk.f32.gmra.mxu0 %vm225_vm1, %v8568_v58  ;;  %7378 = vmatmul.mubr.msk.f32.gmra.mxu1 %vm225_vm1, %v8568_v58 }
  0x52   : > { %7327 = vmatprep.mubr.msk.f32.mxu0 %vm225_vm1, %v8572_v59  ;;  %7380 = vmatprep.mubr.msk.f32.mxu1 %vm225_vm1, %v8572_v59 }
  0x55   : > { %7328 = vmatmul.mubr.msk.f32.gmra.mxu0 %vm225_vm1, %v8580_v60  ;;  %7381 = vmatmul.mubr.msk.f32.gmra.mxu1 %vm225_vm1, %v8580_v60 }
  0x56   : > { %7330 = vmatprep.mubr.msk.f32.mxu0 %vm225_vm1, %v8584_v61  ;;  %7383 = vmatprep.mubr.msk.f32.mxu1 %vm225_vm1, %v8584_v61 }
  0x59   : > { %7331 = vmatmul.mubr.msk.f32.gmra.mxu0 %vm225_vm1, %v8592_v62  ;;  %7384 = vmatmul.mubr.msk.f32.gmra.mxu1 %vm225_vm1, %v8592_v62 }
  0x5a   : > { %7333 = vmatprep.mubr.msk.f32.mxu0 %vm225_vm1, %v8596_v63  ;;  %7386 = vmatprep.mubr.msk.f32.mxu1 %vm225_vm1, %v8596_v63 }
  0x5d   : > { %7334 = vmatmul.mubr.msk.f32.gmra.mxu0 %vm225_vm1, %v8604_v0  ;;  %7387 = vmatmul.mubr.msk.f32.gmra.mxu1 %vm225_vm1, %v8604_v0 }
  0x5e   : > { %7336 = vmatprep.mubr.msk.f32.mxu0 %vm225_vm1, %v8608_v1  ;;  %7389 = vmatprep.mubr.msk.f32.mxu1 %vm225_vm1, %v8608_v1 }
  0x61   : > { %7337 = vmatmul.mubr.msk.f32.gmra.mxu0 %vm225_vm1, %v8616_v2  ;;  %7390 = vmatmul.mubr.msk.f32.gmra.mxu1 %vm225_vm1, %v8616_v2 }
  0x62   : > { %7339 = vmatprep.mubr.msk.f32.mxu0 %vm225_vm1, %v8620_v4  ;;  %7392 = vmatprep.mubr.msk.f32.mxu1 %vm225_vm1, %v8620_v4 }
  0x65   : > { %7340 = vmatmul.mubr.msk.f32.gmra.mxu0 %vm225_vm1, %v8628_v5  ;;  %7393 = vmatmul.mubr.msk.f32.gmra.mxu1 %vm225_vm1, %v8628_v5 }
  0x66   : > { %7342 = vmatprep.mubr.msk.f32.mxu0 %vm225_vm1, %v8632_v6  ;;  %7395 = vmatprep.mubr.msk.f32.mxu1 %vm225_vm1, %v8632_v6 }
  0x69   : > { %7343 = vmatmul.mubr.msk.f32.gmra.mxu0 %vm225_vm1, %v8640_v7  ;;  %7396 = vmatmul.mubr.msk.f32.gmra.mxu1 %vm225_vm1, %v8640_v7 }
  0x6a   : > { %7345 = vmatprep.mubr.msk.f32.mxu0 %vm225_vm1, %v8644_v8  ;;  %7450 = vmatprep.mubr.msk.f32.mxu1 %vm225_vm1, %v1212_v9 }
  0x6d   : > { %7346 = vmatmul.mubr.msk.f32.gmra.mxu0 %vm225_vm1, %v8652_v10  ;;  %7451 = vmatmul.mubr.msk.f32.vlgmr.msra.gmra.mxu1 %vm225_vm1, %v1213_v11  ;;  %v9029_v11 = vld [vmem:[#allocation2 + $0x7a] sm:$0xff] }
  0x6e   : > { %7400 = vmatprep.mubr.msk.f32.mxu0 %vm225_vm1, %v8437_v31  ;;  %7453 = vmatprep.mubr.msk.f32.mxu1 %vm225_vm1, %v8655_v12  ;;  %v8778_v31 = vld [vmem:[#allocation2 + $0xe1] sm:$0xff] }
  0x6f   : > { %7549 = vmatpush3.msk.msra.mxu1 %vm481_vm0, %v8546_v55 }
  0x70   : > { %7648 = vmatprep.subr.msk.mxu1 %vm481_vm0, %v8663_v13 }
  0x71   : > { %7401 = vmatmul.mubr.msk.f32.vlgmr.msra.gmra.mxu0 %vm225_vm1, %v8455_v33  ;;  %7454 = vmatmul.mubr.msk.f32.gmra.mxu1 %vm225_vm1, %v8669_v14  ;;  %v8790_v33 = vld [vmem:[#allocation2 + $0xf9] sm:$0xff] }
  0x72   : > { %7499 = vmatpush3.msk.msra.mxu0 %vm481_vm0, %v8447_v32  ;;  %7403 = vmatprep.mubr.msk.f32.mxu0 %vm225_vm1, %v8459_v36  ;;  %v8780_v32 = vld [vmem:[#allocation2 + $0xf1] sm:$0xff]  ;;  %v8804_v36 = vld [vmem:[#allocation2 + $0x121] sm:$0xff] }
  0x73   : > { %7456 = vmatprep.mubr.msk.f32.mxu1 %vm225_vm1, %v8673_v15  ;;  %7598 = vmatprep.subr.msk.mxu0 %vm481_vm0, %v8678_v16 }
  0x75   : > { %7404 = vmatmul.mubr.msk.f32.gmra.mxu0 %vm225_vm1, %v8473_v37  ;;  %7457 = vmatmul.mubr.msk.f32.gmra.mxu1 %vm225_vm1, %v8690_v17  ;;  %v8814_v37 = vld [vmem:[#allocation2 + $0x129] sm:$0xff] }
  0x76   : > { %7406 = vmatprep.mubr.msk.f32.mxu0 %vm225_vm1, %v8475_v38  ;;  %7459 = vmatprep.mubr.msk.f32.mxu1 %vm225_vm1, %v8694_v18  ;;  %v8816_v38 = vld [vmem:[#allocation2 + $0x139] sm:$0xff] }
  0x79   : > { %7407 = vmatmul.mubr.msk.f32.gmra.mxu0 %vm225_vm1, %v8499_v47  ;;  %7460 = vmatmul.mubr.msk.f32.gmra.mxu1 %vm225_vm1, %v8706_v19  ;;  %v1244_v47 = vld [vmem:[#allocation2 + $0x181] sm:$0xff] }
  0x7a   : > { %7409 = vmatprep.mubr.msk.f32.mxu0 %vm225_vm1, %v8505_v48  ;;  %7462 = vmatprep.mubr.msk.f32.mxu1 %vm225_vm1, %v8708_v20  ;;  %v1245_v48 = vld [vmem:[#allocation2 + $0x189] sm:$0xff] }
  0x7d   : > { %7410 = vmatmul.mubr.msk.f32.gmra.mxu0 %vm225_vm1, %v8513_v49  ;;  %7463 = vmatmul.mubr.msk.f32.gmra.mxu1 %vm225_vm1, %v8718_v21  ;;  %v1246_v49 = vld [vmem:[#allocation2 + $0x199] sm:$0xff] }
  0x7e   : > { %7412 = vmatprep.mubr.msk.f32.mxu0 %vm225_vm1, %v8517_v50  ;;  %7465 = vmatprep.mubr.msk.f32.mxu1 %vm225_vm1, %v8720_v22  ;;  %v1247_v50 = vld [vmem:[#allocation2 + $0x1a1] sm:$0xff] }
  0x81   : > { %7413 = vmatmul.mubr.msk.f32.gmra.mxu0 %vm225_vm1, %v8525_v51  ;;  %7466 = vmatmul.mubr.msk.f32.gmra.mxu1 %vm225_vm1, %v8730_v23  ;;  %v2144_v51 = vld [vmem:[#allocation2 + $0x1a] sm:$0xff] }
  0x82   : > { %7415 = vmatprep.mubr.msk.f32.mxu0 %vm225_vm1, %v8529_v52  ;;  %7468 = vmatprep.mubr.msk.f32.mxu1 %vm225_vm1, %v8732_v24  ;;  %v2145_v52 = vld [vmem:[#allocation2 + $0x22] sm:$0xff] }
  0x85   : > { %7416 = vmatmul.mubr.msk.f32.gmra.mxu0 %vm225_vm1, %v8537_v53  ;;  %7469 = vmatmul.mubr.msk.f32.gmra.mxu1 %vm225_vm1, %v8742_v25  ;;  %v2142_v53 = vld [vmem:[#allocation2 + $0x2] sm:$0xff] }
  0x86   : > { %7418 = vmatprep.mubr.msk.f32.mxu0 %vm225_vm1, %v8541_v54  ;;  %7471 = vmatprep.mubr.msk.f32.mxu1 %vm225_vm1, %v8744_v26  ;;  %v8991_v54 = vld [vmem:[#allocation2 + $0x32] sm:$0xff] }
  0x89   : > { %7419 = vmatmul.mubr.msk.f32.gmra.mxu0 %vm225_vm1, %v8554_v56  ;;  %7472 = vmatmul.mubr.msk.f32.gmra.mxu1 %vm225_vm1, %v8754_v27  ;;  %v2143_v56 = vld [vmem:[#allocation2 + $0xa] sm:$0xff] }
  0x8a   : > { %7421 = vmatprep.mubr.msk.f32.mxu0 %vm225_vm1, %v8558_v57  ;;  %7474 = vmatprep.mubr.msk.f32.mxu1 %vm225_vm1, %v8756_v28 }
  0x8d   : > { %7422 = vmatmul.mubr.msk.f32.gmra.mxu0 %vm225_vm1, %v8568_v58  ;;  %7475 = vmatmul.mubr.msk.f32.gmra.mxu1 %vm225_vm1, %v8766_v29  ;;  %v8998_v58 = vld [vmem:[#allocation2 + $0x3a] sm:$0xff] }
  0x8e   : > { %7424 = vmatprep.mubr.msk.f32.mxu0 %vm225_vm1, %v8572_v59  ;;  %7477 = vmatprep.mubr.msk.f32.mxu1 %vm225_vm1, %v8768_v30  ;;  %v9000_v59 = vld [vmem:[#allocation2 + $0x4a] sm:$0xff] }
  0x91   : > { %7425 = vmatmul.mubr.msk.f32.gmra.mxu0 %vm225_vm1, %v8580_v60  ;;  %7478 = vmatmul.mubr.msk.f32.gmra.mxu1 %vm225_vm1, %v8778_v31 }
  0x92   : > { %7427 = vmatprep.mubr.msk.f32.mxu0 %vm225_vm1, %v8584_v61  ;;  %7480 = vmatprep.mubr.msk.f32.mxu1 %vm225_vm1, %v8780_v32 }
  0x95   : > { %7428 = vmatmul.mubr.msk.f32.gmra.mxu0 %vm225_vm1, %v8592_v62  ;;  %7481 = vmatmul.mubr.msk.f32.gmra.mxu1 %vm225_vm1, %v8790_v33 }
  0x96   : > { %7430 = vmatprep.mubr.msk.f32.mxu0 %vm225_vm1, %v8596_v63  ;;  %7483 = vmatprep.mubr.msk.f32.mxu1 %vm225_vm1, %v8792_v34  ;;  %v9010_v63 = vld [vmem:[#allocation2 + $0x52] sm:$0xff] }
  0x99   : > { %7431 = vmatmul.mubr.msk.f32.gmra.mxu0 %vm225_vm1, %v8604_v0  ;;  %7484 = vmatmul.mubr.msk.f32.gmra.mxu1 %vm225_vm1, %v8802_v35 }
  0x9a   : > { %7433 = vmatprep.mubr.msk.f32.mxu0 %vm225_vm1, %v8608_v1  ;;  %7486 = vmatprep.mubr.msk.f32.mxu1 %vm225_vm1, %v8804_v36 }
  0x9d   : > { %7434 = vmatmul.mubr.msk.f32.gmra.mxu0 %vm225_vm1, %v8616_v2  ;;  %7487 = vmatmul.mubr.msk.f32.gmra.mxu1 %vm225_vm1, %v8814_v37  ;;  %v9014_v2 = vld [vmem:[#allocation2 + $0x62] sm:$0xff] }
  0x9e   : > { %7436 = vmatprep.mubr.msk.f32.mxu0 %vm225_vm1, %v8620_v4  ;;  %7489 = vmatprep.mubr.msk.f32.mxu1 %vm225_vm1, %v8816_v38 }
  0xa1   : > { %7437 = vmatmul.mubr.msk.f32.gmra.mxu0 %vm225_vm1, %v8628_v5  ;;  %7490 = vmatmul.mubr.msk.f32.gmra.mxu1 %vm225_vm1, %v8826_v39 }
  0xa2   : > { %7439 = vmatprep.mubr.msk.f32.mxu0 %vm225_vm1, %v8632_v6  ;;  %7492 = vmatprep.mubr.msk.f32.mxu1 %vm225_vm1, %v8828_v40 }
  0xa5   : > { %7440 = vmatmul.mubr.msk.f32.gmra.mxu0 %vm225_vm1, %v8640_v7  ;;  %7493 = vmatmul.mubr.msk.f32.gmra.mxu1 %vm225_vm1, %v8838_v41 }
  0xa6   : > { %7442 = vmatprep.mubr.msk.f32.mxu0 %vm225_vm1, %v8644_v8  ;;  %7495 = vmatprep.mubr.msk.f32.mxu1 %vm225_vm1, %v8840_v42  ;;  %v9027_v8 = vld [vmem:[#allocation2 + $0x6a] sm:$0xff] }
  0xa9   : > { %7443 = vmatmul.mubr.msk.f32.gmra.mxu0 %vm225_vm1, %v8652_v10  ;;  %7496 = vmatmul.mubr.msk.f32.gmra.mxu1 %vm225_vm1, %v8850_v43 }
  0xaa   : > { %7445 = vmatprep.mubr.msk.f32.mxu0 %vm225_vm1, %v380_v44  ;;  %7550 = vmatprep.mubr.msk.f32.mxu1 %vm225_vm1, %v8673_v15 }
  0xad   : > { %7446 = vmatmul.mubr.msk.f32.gmra.mxu0 %vm225_vm1, %v381_v45  ;;  %7551 = vmatmul.mubr.msk.f32.vlgmr.msra.gmra.mxu1 %vm225_vm1, %v8690_v17 }
  0xae   : > { %7500 = vmatprep.mubr.msk.f32.mxu0 %vm225_vm1, %v8655_v12  ;;  %7553 = vmatprep.mubr.msk.f32.mxu1 %vm225_vm1, %v8694_v18 }
  0xaf   : > { %7649 = vmatpush3.msk.msra.mxu1 %vm481_vm0, %v8663_v13 }
  0xb1   : > { %7501 = vmatmul.mubr.msk.f32.vlgmr.msra.gmra.mxu0 %vm225_vm1, %v8669_v14  ;;  %7554 = vmatmul.mubr.msk.f32.gmra.mxu1 %vm225_vm1, %v8706_v19 }
  0xb2   : > { %7599 = vmatpush3.msk.msra.mxu0 %vm481_vm0, %v8678_v16  ;;  %7503 = vmatprep.mubr.msk.f32.mxu0 %vm225_vm1, %v8673_v15  ;;  %v9043_v16 = vld [vmem:[#allocation2 + $0x82] sm:$0xff] }
  0xb3   : > { %7556 = vmatprep.mubr.msk.f32.mxu1 %vm225_vm1, %v8708_v20  ;;  %7698 = vmatprep.subr.msk.mxu0 %vm481_vm0, %v8871_v46 }
  0xb5   : > { %7504 = vmatmul.mubr.msk.f32.gmra.mxu0 %vm225_vm1, %v8690_v17  ;;  %7557 = vmatmul.mubr.msk.f32.gmra.mxu1 %vm225_vm1, %v8718_v21 }
  0xb6   : > { %7506 = vmatprep.mubr.msk.f32.mxu0 %vm225_vm1, %v8694_v18  ;;  %7559 = vmatprep.mubr.msk.f32.mxu1 %vm225_vm1, %v8720_v22 }
  0xb9   : > { %7507 = vmatmul.mubr.msk.f32.gmra.mxu0 %vm225_vm1, %v8706_v19  ;;  %7560 = vmatmul.mubr.msk.f32.gmra.mxu1 %vm225_vm1, %v8730_v23  ;;  %v9045_v19 = vld [vmem:[#allocation2 + $0x92] sm:$0xff] }
  0xba   : > { %7509 = vmatprep.mubr.msk.f32.mxu0 %vm225_vm1, %v8708_v20  ;;  %7562 = vmatprep.mubr.msk.f32.mxu1 %vm225_vm1, %v8732_v24 }
  0xbd   : > { %7510 = vmatmul.mubr.msk.f32.gmra.mxu0 %vm225_vm1, %v8718_v21  ;;  %7563 = vmatmul.mubr.msk.f32.gmra.mxu1 %vm225_vm1, %v8742_v25 }
  0xbe   : > { %7512 = vmatprep.mubr.msk.f32.mxu0 %vm225_vm1, %v8720_v22  ;;  %7565 = vmatprep.mubr.msk.f32.mxu1 %vm225_vm1, %v8744_v26 }
  0xc1   : > { %7513 = vmatmul.mubr.msk.f32.gmra.mxu0 %vm225_vm1, %v8730_v23  ;;  %7566 = vmatmul.mubr.msk.f32.gmra.mxu1 %vm225_vm1, %v8754_v27 }
  0xc2   : > { %7515 = vmatprep.mubr.msk.f32.mxu0 %vm225_vm1, %v8732_v24  ;;  %7568 = vmatprep.mubr.msk.f32.mxu1 %vm225_vm1, %v8756_v28  ;;  %v9059_v24 = vld [vmem:[#allocation2 + $0x9a] sm:$0xff] }
  0xc5   : > { %7516 = vmatmul.mubr.msk.f32.gmra.mxu0 %vm225_vm1, %v8742_v25  ;;  %7569 = vmatmul.mubr.msk.f32.gmra.mxu1 %vm225_vm1, %v8766_v29 }
  0xc6   : > { %7518 = vmatprep.mubr.msk.f32.mxu0 %vm225_vm1, %v8744_v26  ;;  %7571 = vmatprep.mubr.msk.f32.mxu1 %vm225_vm1, %v8768_v30 }
  0xc9   : > { %7519 = vmatmul.mubr.msk.f32.gmra.mxu0 %vm225_vm1, %v8754_v27  ;;  %7572 = vmatmul.mubr.msk.f32.gmra.mxu1 %vm225_vm1, %v8778_v31  ;;  %v9061_v27 = vld [vmem:[#allocation2 + $0xaa] sm:$0xff] }
  0xca   : > { %7521 = vmatprep.mubr.msk.f32.mxu0 %vm225_vm1, %v8756_v28  ;;  %7574 = vmatprep.mubr.msk.f32.mxu1 %vm225_vm1, %v8780_v32 }
  0xcd   : > { %7522 = vmatmul.mubr.msk.f32.gmra.mxu0 %vm225_vm1, %v8766_v29  ;;  %7575 = vmatmul.mubr.msk.f32.gmra.mxu1 %vm225_vm1, %v8790_v33 }
  0xce   : > { %7524 = vmatprep.mubr.msk.f32.mxu0 %vm225_vm1, %v8768_v30  ;;  %7577 = vmatprep.mubr.msk.f32.mxu1 %vm225_vm1, %v8792_v34 }
  0xd1   : > { %7525 = vmatmul.mubr.msk.f32.gmra.mxu0 %vm225_vm1, %v8778_v31  ;;  %7578 = vmatmul.mubr.msk.f32.gmra.mxu1 %vm225_vm1, %v8802_v35 }
  0xd2   : > { %7527 = vmatprep.mubr.msk.f32.mxu0 %vm225_vm1, %v8780_v32  ;;  %7580 = vmatprep.mubr.msk.f32.mxu1 %vm225_vm1, %v8804_v36  ;;  %v9075_v32 = vld [vmem:[#allocation2 + $0xb2] sm:$0xff] }
  0xd5   : > { %7528 = vmatmul.mubr.msk.f32.gmra.mxu0 %vm225_vm1, %v8790_v33  ;;  %7581 = vmatmul.mubr.msk.f32.gmra.mxu1 %vm225_vm1, %v8814_v37 }
  0xd6   : > { %7530 = vmatprep.mubr.msk.f32.mxu0 %vm225_vm1, %v8792_v34  ;;  %7583 = vmatprep.mubr.msk.f32.mxu1 %vm225_vm1, %v8816_v38 }
  0xd7   : > { %v7352_v55 = vpop.f32.mrf.mxu1 }
  0xd9   : > { %7531 = vmatmul.mubr.msk.f32.gmra.mxu0 %vm225_vm1, %v8802_v35  ;;  %7584 = vmatmul.mubr.msk.f32.gmra.mxu1 %vm225_vm1, %v8826_v39  ;;  %v785_v57 = vpop.f32.mrf.mxu1  ;;  %v9077_v35 = vld [vmem:[#allocation2 + $0xc2] sm:$0xff] }
  0xda   : > { %7533 = vmatprep.mubr.msk.f32.mxu0 %vm225_vm1, %v8804_v36  ;;  %7586 = vmatprep.mubr.msk.f32.mxu1 %vm225_vm1, %v8828_v40 }
  0xdd   : > { %7534 = vmatmul.mubr.msk.f32.gmra.mxu0 %vm225_vm1, %v8814_v37  ;;  %7587 = vmatmul.mubr.msk.f32.gmra.mxu1 %vm225_vm1, %v8838_v41 }
  0xde   : > { %7536 = vmatprep.mubr.msk.f32.mxu0 %vm225_vm1, %v8816_v38  ;;  %7589 = vmatprep.mubr.msk.f32.mxu1 %vm225_vm1, %v8840_v42 }
  0xe1   : > { %7537 = vmatmul.mubr.msk.f32.gmra.mxu0 %vm225_vm1, %v8826_v39  ;;  %7590 = vmatmul.mubr.msk.f32.gmra.mxu1 %vm225_vm1, %v8850_v43 }
  0xe2   : > { %7539 = vmatprep.mubr.msk.f32.mxu0 %vm225_vm1, %v8828_v40  ;;  %7592 = vmatprep.mubr.msk.f32.mxu1 %vm225_vm1, %v1244_v47  ;;  %v9091_v40 = vld [vmem:[#allocation2 + $0xca] sm:$0xff] }
  0xe5   : > { %7540 = vmatmul.mubr.msk.f32.gmra.mxu0 %vm225_vm1, %v8838_v41  ;;  %7593 = vmatmul.mubr.msk.f32.gmra.mxu1 %vm225_vm1, %v1245_v48 }
  0xe6   : > { %7542 = vmatprep.mubr.msk.f32.mxu0 %vm225_vm1, %v8840_v42  ;;  %7595 = vmatprep.mubr.msk.f32.mxu1 %vm225_vm1, %v1246_v49 }
  0xe9   : > { %7543 = vmatmul.mubr.msk.f32.gmra.mxu0 %vm225_vm1, %v8850_v43  ;;  %7596 = vmatmul.mubr.msk.f32.gmra.mxu1 %vm225_vm1, %v1247_v50  ;;  %v9093_v43 = vld [vmem:[#allocation2 + $0xda] sm:$0xff] }
  0xea   : > { %7545 = vmatprep.mubr.msk.f32.mxu0 %vm225_vm1, %v1244_v47  ;;  %7650 = vmatprep.mubr.msk.f32.mxu1 %vm225_vm1, %v2144_v51 }
  0xed   : > { %7546 = vmatmul.mubr.msk.f32.gmra.mxu0 %vm225_vm1, %v1245_v48  ;;  %7651 = vmatmul.mubr.msk.f32.vlgmr.msra.gmra.mxu1 %vm225_vm1, %v2145_v52  ;;  %v9107_v48 = vld [vmem:[#allocation2 + $0xe2] sm:$0xff] }
  0xee   : > { %7600 = vmatprep.mubr.msk.f32.mxu0 %vm225_vm1, %v2142_v53  ;;  %7653 = vmatprep.mubr.msk.f32.mxu1 %vm225_vm1, %v8991_v54 }
  0xf1   : > { %v7302_v60 = vpop.f32.mrf.mxu0  ;;  %7601 = vmatmul.mubr.msk.f32.vlgmr.msra.gmra.mxu0 %vm225_vm1, %v2143_v56  ;;  %v7355_v61 = vpop.f32.mrf.mxu1  ;;  %7654 = vmatmul.mubr.msk.f32.gmra.mxu1 %vm225_vm1, %v8998_v58 }
  0xf2   : > { %v9005_v62 = vadd.f32 %v7352_v55, %v7302_v60  ;;  %7699 = vmatpush3.msk.msra.mxu0 %vm481_vm0, %v8871_v46  ;;  %7603 = vmatprep.mubr.msk.f32.mxu0 %vm225_vm1, %v2144_v51  ;;  %v9109_v51 = vld [vmem:[#allocation2 + $0xf2] sm:$0xff] }
  0xf3   : > { %v551_v0 = vpop.f32.mrf.mxu0  ;;  %v795_v1 = vpop.f32.mrf.mxu1  ;;  %7656 = vmatprep.mubr.msk.f32.mxu1 %vm225_vm1, %v9000_v59 }
  0xf4   : > { %v9016_v4 = vadd.f32 %v785_v57, %v551_v0  ;;  %v9123_v57 = vld [vmem:[#allocation2 + $0xfa] sm:$0xff]  ;;  %v9127_v0 = vld [vmem:[#allocation2 + $0x10a] sm:$0xff] }
  0xf5   : > { %v7305_v5 = vpop.f32.mrf.mxu0  ;;  %7604 = vmatmul.mubr.msk.f32.gmra.mxu0 %vm225_vm1, %v2145_v52  ;;  %v7358_v6 = vpop.f32.mrf.mxu1  ;;  %7657 = vmatmul.mubr.msk.f32.gmra.mxu1 %vm225_vm1, %v9010_v63 }
  0xf6   : > { %v9021_v7 = vadd.f32 %v7355_v61, %v7305_v5  ;;  %7606 = vmatprep.mubr.msk.f32.mxu0 %vm225_vm1, %v8991_v54  ;;  %7659 = vmatprep.mubr.msk.f32.mxu1 %vm225_vm1, %v9014_v2 }
  0xf7   : > { %v561_v9 = vpop.f32.mrf.mxu0  ;;  %v805_v10 = vpop.f32.mrf.mxu1 }
  0xf8   : > { %v9031_v12 = vadd.f32 %v795_v1, %v561_v9 }
  0xf9   : > { %v7308_v13 = vpop.f32.mrf.mxu0  ;;  %7607 = vmatmul.mubr.msk.f32.gmra.mxu0 %vm225_vm1, %v8998_v58  ;;  %v7361_v14 = vpop.f32.mrf.mxu1  ;;  %7660 = vmatmul.mubr.msk.f32.gmra.mxu1 %vm225_vm1, %v9027_v8 }
  0xfa   : > { %v9037_v15 = vadd.f32 %v7358_v6, %v7308_v13  ;;  %7609 = vmatprep.mubr.msk.f32.mxu0 %vm225_vm1, %v9000_v59  ;;  %7662 = vmatprep.mubr.msk.f32.mxu1 %vm225_vm1, %v9029_v11 }
  0xfb   : > { %v571_v17 = vpop.f32.mrf.mxu0  ;;  %v815_v18 = vpop.f32.mrf.mxu1 }
  0xfc   : > { %v9047_v20 = vadd.f32 %v805_v10, %v571_v17  ;;  %v9141_v10 = vld [vmem:[#allocation2 + $0x112] sm:$0xff]  ;;  %v9147_v17 = vld [vmem:[#allocation2 + $0x122] sm:$0xff] }
  0xfd   : > { %v7311_v21 = vpop.f32.mrf.mxu0  ;;  %7610 = vmatmul.mubr.msk.f32.gmra.mxu0 %vm225_vm1, %v9010_v63  ;;  %v7364_v22 = vpop.f32.mrf.mxu1  ;;  %7663 = vmatmul.mubr.msk.f32.gmra.mxu1 %vm225_vm1, %v9043_v16 }
  0xfe   : > { %v9053_v23 = vadd.f32 %v7361_v14, %v7311_v21  ;;  %7612 = vmatprep.mubr.msk.f32.mxu0 %vm225_vm1, %v9014_v2  ;;  %7665 = vmatprep.mubr.msk.f32.mxu1 %vm225_vm1, %v9045_v19 }
  0xff   : > { %v581_v25 = vpop.f32.mrf.mxu0  ;;  %v825_v26 = vpop.f32.mrf.mxu1 }
 0x100   : > { %v9063_v28 = vadd.f32 %v815_v18, %v581_v25  ;;  %v9159_v25 = vld [vmem:[#allocation2 + $0x12a] sm:$0xff] }
 0x101   : > { %v7314_v29 = vpop.f32.mrf.mxu0  ;;  %7613 = vmatmul.mubr.msk.f32.gmra.mxu0 %vm225_vm1, %v9027_v8  ;;  %v7367_v30 = vpop.f32.mrf.mxu1  ;;  %7666 = vmatmul.mubr.msk.f32.gmra.mxu1 %vm225_vm1, %v9059_v24 }
 0x102   : > { %v9069_v31 = vadd.f32 %v7364_v22, %v7314_v29  ;;  %7615 = vmatprep.mubr.msk.f32.mxu0 %vm225_vm1, %v9029_v11  ;;  %7668 = vmatprep.mubr.msk.f32.mxu1 %vm225_vm1, %v9061_v27 }
 0x103   : > { %v591_v33 = vpop.f32.mrf.mxu0  ;;  %v835_v34 = vpop.f32.mrf.mxu1 }
 0x104   : > { %v9079_v36 = vadd.f32 %v825_v26, %v591_v33 }
 0x105   : > { %v7317_v37 = vpop.f32.mrf.mxu0  ;;  %7616 = vmatmul.mubr.msk.f32.gmra.mxu0 %vm225_vm1, %v9043_v16  ;;  %v7370_v38 = vpop.f32.mrf.mxu1  ;;  %7669 = vmatmul.mubr.msk.f32.gmra.mxu1 %vm225_vm1, %v9075_v32 }
 0x106   : > { %v9085_v39 = vadd.f32 %v7367_v30, %v7317_v37  ;;  %7618 = vmatprep.mubr.msk.f32.mxu0 %vm225_vm1, %v9045_v19  ;;  %7671 = vmatprep.mubr.msk.f32.mxu1 %vm225_vm1, %v9077_v35  ;;  %v9165_v30 = vld [vmem:[#allocation2 + $0x13a] sm:$0xff] }
 0x107   : > { %v601_v41 = vpop.f32.mrf.mxu0  ;;  %v845_v42 = vpop.f32.mrf.mxu1 }
 0x108   : > { %v9095_v44 = vadd.f32 %v835_v34, %v601_v41 }
 0x109   : > { %v7320_v45 = vpop.f32.mrf.mxu0  ;;  %7619 = vmatmul.mubr.msk.f32.gmra.mxu0 %vm225_vm1, %v9059_v24  ;;  %v7373_v46 = vpop.f32.mrf.mxu1  ;;  %7672 = vmatmul.mubr.msk.f32.gmra.mxu1 %vm225_vm1, %v9091_v40 }
 0x10a   : > { %v9101_v47 = vadd.f32 %v7370_v38, %v7320_v45  ;;  %7621 = vmatprep.mubr.msk.f32.mxu0 %vm225_vm1, %v9061_v27  ;;  %7674 = vmatprep.mubr.msk.f32.mxu1 %vm225_vm1, %v9093_v43  ;;  %v9177_v38 = vld [vmem:[#allocation2 + $0x142] sm:$0xff]  ;;  %v9183_v45 = vld [vmem:[#allocation2 + $0x152] sm:$0xff] }
 0x10b   : > { %v611_v49 = vpop.f32.mrf.mxu0  ;;  %v855_v50 = vpop.f32.mrf.mxu1 }
 0x10c   : > { %v9111_v52 = vadd.f32 %v845_v42, %v611_v49 }
 0x10d   : > { %v7323_v53 = vpop.f32.mrf.mxu0  ;;  %7622 = vmatmul.mubr.msk.f32.gmra.mxu0 %vm225_vm1, %v9075_v32  ;;  %v7376_v55 = vpop.f32.mrf.mxu1  ;;  %7675 = vmatmul.mubr.msk.f32.gmra.mxu1 %vm225_vm1, %v9107_v48 }
 0x10e   : > { %v9117_v56 = vadd.f32 %v7373_v46, %v7323_v53  ;;  %7624 = vmatprep.mubr.msk.f32.mxu0 %vm225_vm1, %v9077_v35  ;;  %7677 = vmatprep.mubr.msk.f32.mxu1 %vm225_vm1, %v9109_v51  ;;  %v9195_v53 = vld [vmem:[#allocation2 + $0x15a] sm:$0xff] }
 0x10f   : > { %v621_v60 = vpop.f32.mrf.mxu0  ;;  %v9125_v61 = vpop.f32.mrf.mxu1 }
 0x110   : > { %v9129_v1 = vadd.f32 %v855_v50, %v621_v60 }
 0x111   : > { %v7326_v5 = vpop.f32.mrf.mxu0  ;;  %7625 = vmatmul.mubr.msk.f32.gmra.mxu0 %vm225_vm1, %v9091_v40  ;;  %v7379_v6 = vpop.f32.mrf.mxu1  ;;  %7678 = vmatmul.mubr.msk.f32.gmra.mxu1 %vm225_vm1, %v9123_v57 }
 0x112   : > { %v9135_v9 = vadd.f32 %v7376_v55, %v7326_v5  ;;  %7627 = vmatprep.mubr.msk.f32.mxu0 %vm225_vm1, %v9093_v43  ;;  %7680 = vmatprep.mubr.msk.f32.mxu1 %vm225_vm1, %v9127_v0  ;;  %v9201_v5 = vld [vmem:[#allocation2 + $0x16a] sm:$0xff] }
 0x113   : > { %v9143_v13 = vpop.f32.mrf.mxu0  ;;  %v9145_v14 = vpop.f32.mrf.mxu1 }
 0x114   : > { %11497 = vst [vmem:[#allocation4_spill] sm:$0xff] %v9145_v14 }
 0x115   : > { %v7329_v18 = vpop.f32.mrf.mxu0  ;;  %7628 = vmatmul.mubr.msk.f32.gmra.mxu0 %vm225_vm1, %v9107_v48  ;;  %v7382_v21 = vpop.f32.mrf.mxu1  ;;  %7681 = vmatmul.mubr.msk.f32.gmra.mxu1 %vm225_vm1, %v9141_v10 }
 0x116   : > { %v9153_v22 = vadd.f32 %v7379_v6, %v7329_v18  ;;  %7630 = vmatprep.mubr.msk.f32.mxu0 %vm225_vm1, %v9109_v51  ;;  %7683 = vmatprep.mubr.msk.f32.mxu1 %vm225_vm1, %v9147_v17 }
 0x117   : > { %v9161_v26 = vpop.f32.mrf.mxu0  ;;  %v9163_v29 = vpop.f32.mrf.mxu1 }
 0x118   : > { %11498 = vst [vmem:[#allocation5_spill] sm:$0xff] %v9161_v26  ;;  %11499 = vst [vmem:[#allocation6_spill] sm:$0xff] %v9163_v29 }
 0x119   : > { %v7332_v33 = vpop.f32.mrf.mxu0  ;;  %7631 = vmatmul.mubr.msk.f32.gmra.mxu0 %vm225_vm1, %v9123_v57  ;;  %v7385_v34 = vpop.f32.mrf.mxu1  ;;  %7684 = vmatmul.mubr.msk.f32.gmra.mxu1 %vm225_vm1, %v9159_v25 }
 0x11a   : > { %v9171_v37 = vadd.f32 %v7382_v21, %v7332_v33  ;;  %7633 = vmatprep.mubr.msk.f32.mxu0 %vm225_vm1, %v9127_v0  ;;  %7686 = vmatprep.mubr.msk.f32.mxu1 %vm225_vm1, %v9165_v30  ;;  %v9213_v33 = vld [vmem:[#allocation2 + $0x172] sm:$0xff] }
 0x11b   : > { %v9179_v41 = vpop.f32.mrf.mxu0  ;;  %v9181_v42 = vpop.f32.mrf.mxu1 }
 0x11c   : > { %11500 = vst [vmem:[#allocation7_spill] sm:$0xff] %v9179_v41  ;;  %11501 = vst [vmem:[#allocation8_spill] sm:$0xff] %v9181_v42 }
 0x11d   : > { %v7335_v46 = vpop.f32.mrf.mxu0  ;;  %7634 = vmatmul.mubr.msk.f32.gmra.mxu0 %vm225_vm1, %v9141_v10  ;;  %v7388_v49 = vpop.f32.mrf.mxu1  ;;  %7687 = vmatmul.mubr.msk.f32.gmra.mxu1 %vm225_vm1, %v9177_v38 }
 0x11e   : > { %v9189_v50 = vadd.f32 %v7385_v34, %v7335_v46  ;;  %7636 = vmatprep.mubr.msk.f32.mxu0 %vm225_vm1, %v9147_v17  ;;  %7689 = vmatprep.mubr.msk.f32.mxu1 %vm225_vm1, %v9183_v45 }
 0x11f   : > { %v9197_v55 = vpop.f32.mrf.mxu0  ;;  %v9199_v60 = vpop.f32.mrf.mxu1 }
 0x120   : > { %11502 = vst [vmem:[#allocation9_spill] sm:$0xff] %v9197_v55  ;;  %11503 = vst [vmem:[#allocation10_spill] sm:$0xff] %v9199_v60 }
 0x121   : > { %v7338_v6 = vpop.f32.mrf.mxu0  ;;  %7637 = vmatmul.mubr.msk.f32.gmra.mxu0 %vm225_vm1, %v9159_v25  ;;  %v7391_v18 = vpop.f32.mrf.mxu1  ;;  %7690 = vmatmul.mubr.msk.f32.gmra.mxu1 %vm225_vm1, %v9195_v53 }
 0x122   : > { %v9207_v21 = vadd.f32 %v7388_v49, %v7338_v6  ;;  %7639 = vmatprep.mubr.msk.f32.mxu0 %vm225_vm1, %v9165_v30  ;;  %7692 = vmatprep.mubr.msk.f32.mxu1 %vm225_vm1, %v9201_v5 }
 0x123   : > { %v9215_v34 = vpop.f32.mrf.mxu0  ;;  %v9217_v46 = vpop.f32.mrf.mxu1 }
 0x124   : > { %11504 = vst [vmem:[#allocation11_spill] sm:$0xff] %v9215_v34  ;;  %11505 = vst [vmem:[#allocation12_spill] sm:$0xff] %v9217_v46  ;;  %v9231_v34 = vld [vmem:[#allocation2 + $0x18a] sm:$0xff] }
 0x125   : > { %v7341_v60 = vpop.f32.mrf.mxu0  ;;  %7640 = vmatmul.mubr.msk.f32.gmra.mxu0 %vm225_vm1, %v9177_v38  ;;  %v7394_v49 = vpop.f32.mrf.mxu1  ;;  %7693 = vmatmul.mubr.msk.f32.gmra.mxu1 %vm225_vm1, %v9213_v33 }
 0x126   : > { %v9225_v6 = vadd.f32 %v7391_v18, %v7341_v60  ;;  %7642 = vmatprep.mubr.msk.f32.mxu0 %vm225_vm1, %v9183_v45  ;;  %7695 = vmatprep.mubr.msk.f32.mxu1 %vm225_vm1, %v9219_v3 }
 0x127   : > { %v9233_v46 = vpop.f32.mrf.mxu0  ;;  %v9235_v42 = vpop.f32.mrf.mxu1 }
 0x128   : > { %11506 = vst [vmem:[#allocation13_spill] sm:$0xff] %v9233_v46  ;;  %11507 = vst [vmem:[#allocation14_spill] sm:$0xff] %v9235_v42 }
 0x129   : > { %v7344_v55 = vpop.f32.mrf.mxu0  ;;  %7643 = vmatmul.mubr.msk.f32.gmra.mxu0 %vm225_vm1, %v9195_v53  ;;  %v7397_v29 = vpop.f32.mrf.mxu1  ;;  %7696 = vmatmul.mubr.msk.f32.gmra.mxu1 %vm225_vm1, %v9231_v34 }
 0x12a   : > { %v9241_v60 = vadd.f32 %v7394_v49, %v7344_v55  ;;  %7645 = vmatprep.mubr.msk.f32.mxu0 %vm225_vm1, %v9201_v5 }
 0x12b   : > { %v9245_v18 = vpop.f32.mrf.mxu0  ;;  %v9247_v41 = vpop.f32.mrf.mxu1 }
 0x12c   : > { %11508 = vst [vmem:[#allocation15_spill] sm:$0xff] %v9241_v60  ;;  %11509 = vst [vmem:[#allocation16_spill] sm:$0xff] %v9245_v18 }
 0x12d   : > { %11510 = vst [vmem:[#allocation17_spill] sm:$0xff] %v9247_v41  ;;  %v7347_v46 = vpop.f32.mrf.mxu0  ;;  %7646 = vmatmul.mubr.msk.f32.gmra.mxu0 %vm225_vm1, %v9213_v33  ;;  %v7452_v42 = vpop.f32.mrf.mxu1 }
 0x12e   : > { %v9251_v14 = vadd.f32 %v7397_v29, %v7347_v46  ;;  %7700 = vmatprep.mubr.msk.f32.mxu0 %vm225_vm1, %v8991_v54 }
 0x12f   : > { %v9255_v26 = vpop.f32.mrf.mxu0  ;;  %v9257_v55 = vpop.f32.mrf.mxu1 }
 0x130   : > { %11511 = vst [vmem:[#allocation18_spill] sm:$0xff] %v9255_v26  ;;  %11512 = vst [vmem:[#allocation19_spill] sm:$0xff] %v9257_v55 }
 0x131   : > { %v7402_v49 = vpop.f32.mrf.mxu0  ;;  %7701 = vmatmul.mubr.msk.f32.vlgmr.msra.gmra.mxu0 %vm225_vm1, %v8998_v58  ;;  %v7455_v18 = vpop.f32.mrf.mxu1 }
 0x132   : > { %v1181_v41 = vadd.f32 %v7402_v49, %v9005_v62  ;;  %7703 = vmatprep.mubr.msk.f32.mxu0 %vm225_vm1, %v9000_v59 }
 0x133   : > { %v1021_v60 = vpop.f32.mrf.mxu0  ;;  %v9264_v29 = vpop.f32.mrf.mxu1 }
 0x134   : > { %v9267_v46 = vadd.f32 %v1021_v60, %v9016_v4  ;;  %v9269_v54 = vadd.f32 %v7452_v42, %v1181_v41 }
 0x135   : > { %v7405_v26 = vpop.f32.mrf.mxu0  ;;  %7704 = vmatmul.mubr.msk.f32.gmra.mxu0 %vm225_vm1, %v9010_v63  ;;  %v7458_v55 = vpop.f32.mrf.mxu1 }
 0x136   : > { %v1183_v58 = vadd.f32 %v7405_v26, %v9021_v7  ;;  %7706 = vmatprep.mubr.msk.f32.mxu0 %vm225_vm1, %v9014_v2 }
 0x137   : > { %v1031_v62 = vpop.f32.mrf.mxu0  ;;  %v9276_v59 = vpop.f32.mrf.mxu1 }
 0x138   : > { %v9279_v49 = vadd.f32 %v1031_v62, %v9031_v12  ;;  %v9281_v4 = vadd.f32 %v7455_v18, %v1183_v58 }
 0x139   : > { %v7408_v41 = vpop.f32.mrf.mxu0  ;;  %7707 = vmatmul.mubr.msk.f32.gmra.mxu0 %vm225_vm1, %v9027_v8  ;;  %v7461_v42 = vpop.f32.mrf.mxu1 }
 0x13a   : > { %v1185_v63 = vadd.f32 %v7408_v41, %v9037_v15  ;;  %7709 = vmatprep.mubr.msk.f32.mxu0 %vm225_vm1, %v9029_v11 }
 0x13b   : > { %v1041_v7 = vpop.f32.mrf.mxu0  ;;  %v9288_v2 = vpop.f32.mrf.mxu1 }
 0x13c   : > { %v9291_v26 = vadd.f32 %v1041_v7, %v9047_v20  ;;  %v9293_v12 = vadd.f32 %v7458_v55, %v1185_v63 }
 0x13d   : > { %v7411_v60 = vpop.f32.mrf.mxu0  ;;  %7710 = vmatmul.mubr.msk.f32.gmra.mxu0 %vm225_vm1, %v9043_v16  ;;  %v7464_v18 = vpop.f32.mrf.mxu1 }
 0x13e   : > { %v1187_v8 = vadd.f32 %v7411_v60, %v9053_v23  ;;  %7712 = vmatprep.mubr.msk.f32.mxu0 %vm225_vm1, %v9045_v19  ;;  %v6403_v19 = vld [vmem:[%s11487_s3 + $0x18] sm:$0xff] }
 0x13f   : > { %v1051_v15 = vpop.f32.mrf.mxu0  ;;  %v9300_v11 = vpop.f32.mrf.mxu1  ;;  %7748 = vmatprep.subr.mxu1 %v6403_v19 }
 0x140   : > { %v9303_v58 = vadd.f32 %v1051_v15, %v9063_v28  ;;  %v9305_v20 = vadd.f32 %v7461_v42, %v1187_v8  ;;  %7749 = vmatpush3.msra.mxu1 %v6403_v19 }
 0x141   : > { %v7414_v55 = vpop.f32.mrf.mxu0  ;;  %7713 = vmatmul.mubr.msk.f32.gmra.mxu0 %vm225_vm1, %v9059_v24  ;;  %v7467_v62 = vpop.f32.mrf.mxu1 }
 0x142   : > { %v1189_v16 = vadd.f32 %v7414_v55, %v9069_v31  ;;  %7715 = vmatprep.mubr.msk.f32.mxu0 %vm225_vm1, %v9061_v27 }
 0x143   : > { %v1061_v23 = vpop.f32.mrf.mxu0  ;;  %v9315_v41 = vpop.f32.mrf.mxu1 }
 0x144   : > { %v9318_v28 = vadd.f32 %v1061_v23, %v9079_v36  ;;  %v9320_v42 = vadd.f32 %v7464_v18, %v1189_v16 }
 0x145   : > { %v7417_v24 = vpop.f32.mrf.mxu0  ;;  %7716 = vmatmul.mubr.msk.f32.gmra.mxu0 %vm225_vm1, %v9075_v32  ;;  %v7470_v31 = vpop.f32.mrf.mxu1 }
 0x146   : > { %v1191_v27 = vadd.f32 %v7417_v24, %v9085_v39  ;;  %7718 = vmatprep.mubr.msk.f32.mxu0 %vm225_vm1, %v9077_v35 }
 0x147   : > { %v1071_v63 = vpop.f32.mrf.mxu0  ;;  %v9327_v7 = vpop.f32.mrf.mxu1 }
 0x148   : > { %v9330_v60 = vadd.f32 %v1071_v63, %v9095_v44  ;;  %v9332_v36 = vadd.f32 %v7467_v62, %v1191_v27 }
 0x149   : > { %v7420_v18 = vpop.f32.mrf.mxu0  ;;  %7719 = vmatmul.mubr.msk.f32.gmra.mxu0 %vm225_vm1, %v9091_v40  ;;  %v7473_v8 = vpop.f32.mrf.mxu1 }
 0x14a   : > { %v1193_v32 = vadd.f32 %v7420_v18, %v9101_v47  ;;  %7721 = vmatprep.mubr.msk.f32.mxu0 %vm225_vm1, %v9093_v43 }
 0x14b   : > { %v1081_v39 = vpop.f32.mrf.mxu0  ;;  %v9339_v35 = vpop.f32.mrf.mxu1 }
 0x14c   : > { %11513 = vst [vmem:[#allocation20_spill] sm:$0xff] %v9339_v35  ;;  %v9342_v15 = vadd.f32 %v1081_v39, %v9111_v52  ;;  %v9344_v44 = vadd.f32 %v7470_v31, %v1193_v32 }
 0x14d   : > { %v7423_v55 = vpop.f32.mrf.mxu0  ;;  %7722 = vmatmul.mubr.msk.f32.gmra.mxu0 %vm225_vm1, %v9107_v48  ;;  %v7476_v62 = vpop.f32.mrf.mxu1  ;;  %v866_v48 = vadd.f32 %v9125_v61, %v9143_v13 }
 0x14e   : > { %v1195_v40 = vadd.f32 %v7423_v55, %v9117_v56  ;;  %7724 = vmatprep.mubr.msk.f32.mxu0 %vm225_vm1, %v9109_v51 }
 0x14f   : > { %v1091_v47 = vpop.f32.mrf.mxu0  ;;  %v9351_v43 = vpop.f32.mrf.mxu1 }
 0x150   : > { %11514 = vst [vmem:[#allocation21_spill] sm:$0xff] %v9351_v43  ;;  %v9354_v16 = vadd.f32 %v1091_v47, %v9129_v1  ;;  %v9356_v52 = vadd.f32 %v7473_v8, %v1195_v40 }
 0x151   : > { %v7426_v19 = vpop.f32.mrf.mxu0  ;;  %7725 = vmatmul.mubr.msk.f32.gmra.mxu0 %vm225_vm1, %v9123_v57  ;;  %v7479_v23 = vpop.f32.mrf.mxu1 }
 0x152   : > { %11515 = vst [vmem:[#allocation22_spill] sm:$0xff] %v9354_v16  ;;  %v1197_v56 = vadd.f32 %v7426_v19, %v9135_v9  ;;  %7727 = vmatprep.mubr.msk.f32.mxu0 %vm225_vm1, %v9127_v0 }
 0x153   : > { %v1101_v51 = vpop.f32.mrf.mxu0  ;;  %v9365_v24 = vpop.f32.mrf.mxu1 }
 0x154   : > { %11516 = vst [vmem:[#allocation23_spill] sm:$0xff] %v9365_v24  ;;  %v9367_v1 = vadd.f32 %v1101_v51, %v866_v48  ;;  %v9369_v31 = vadd.f32 %v7476_v62, %v1197_v56 }
 0x155   : > { %v7429_v27 = vpop.f32.mrf.mxu0  ;;  %7728 = vmatmul.mubr.msk.f32.gmra.mxu0 %vm225_vm1, %v9141_v10  ;;  %v7482_v57 = vpop.f32.mrf.mxu1 }
 0x156   : > { %11517 = vst [vmem:[#allocation24_spill] sm:$0xff] %v9367_v1  ;;  %v1199_v63 = vadd.f32 %v7429_v27, %v9153_v22  ;;  %7730 = vmatprep.mubr.msk.f32.mxu0 %vm225_vm1, %v9147_v17 }
 0x157   : > { %v9376_v61 = vpop.f32.mrf.mxu0  ;;  %v9378_v0 = vpop.f32.mrf.mxu1 }
 0x158   : > { %11518 = vst [vmem:[#allocation25_spill] sm:$0xff] %v9376_v61  ;;  %11519 = vst [vmem:[#allocation26_spill] sm:$0xff] %v9378_v0  ;;  %v9380_v9 = vadd.f32 %v7479_v23, %v1199_v63 }
 0x159   : > { %v7432_v13 = vpop.f32.mrf.mxu0  ;;  %7731 = vmatmul.mubr.msk.f32.gmra.mxu0 %vm225_vm1, %v9159_v25  ;;  %v7485_v18 = vpop.f32.mrf.mxu1 }
 0x15a   : > { %v1201_v8 = vadd.f32 %v7432_v13, %v9171_v37  ;;  %7733 = vmatprep.mubr.msk.f32.mxu0 %vm225_vm1, %v9165_v30 }
 0x15b   : > { %v9387_v10 = vpop.f32.mrf.mxu0  ;;  %v9389_v22 = vpop.f32.mrf.mxu1 }
 0x15c   : > { %11520 = vst [vmem:[#allocation27_spill] sm:$0xff] %v9387_v10  ;;  %11521 = vst [vmem:[#allocation28_spill] sm:$0xff] %v9389_v22  ;;  %v9391_v17 = vadd.f32 %v7482_v57, %v1201_v8  ;;  %v11528_v57 = vld [vmem:[#allocation15_spill] sm:$0xff] }
 0x15d   : > { %v7435_v32 = vpop.f32.mrf.mxu0  ;;  %7734 = vmatmul.mubr.msk.f32.gmra.mxu0 %vm225_vm1, %v9177_v38  ;;  %v7488_v39 = vpop.f32.mrf.mxu1 }
 0x15e   : > { %v1203_v55 = vadd.f32 %v7435_v32, %v9189_v50  ;;  %7736 = vmatprep.mubr.msk.f32.mxu0 %vm225_vm1, %v9183_v45 }
 0x15f   : > { %v9398_v25 = vpop.f32.mrf.mxu0  ;;  %v9400_v37 = vpop.f32.mrf.mxu1 }
 0x160   : > { %11522 = vst [vmem:[#allocation29_spill] sm:$0xff] %v9398_v25  ;;  %11523 = vst [vmem:[#allocation30_spill] sm:$0xff] %v9400_v37  ;;  %v9402_v30 = vadd.f32 %v7485_v18, %v1203_v55 }
 0x161   : > { %v7438_v62 = vpop.f32.mrf.mxu0  ;;  %7737 = vmatmul.mubr.msk.f32.gmra.mxu0 %vm225_vm1, %v9195_v53  ;;  %v7491_v40 = vpop.f32.mrf.mxu1 }
 0x162   : > { %v1205_v47 = vadd.f32 %v7438_v62, %v9207_v21  ;;  %7739 = vmatprep.mubr.msk.f32.mxu0 %vm225_vm1, %v9201_v5  ;;  %v2176_v21 = vld [vmem:[#allocation2 + $0x19a] sm:$0xff] }
 0x163   : > { %v9409_v38 = vpop.f32.mrf.mxu0  ;;  %v9411_v50 = vpop.f32.mrf.mxu1 }
 0x164   : > { %11524 = vst [vmem:[#allocation31_spill] sm:$0xff] %v9409_v38  ;;  %11525 = vst [vmem:[#allocation32_spill] sm:$0xff] %v9411_v50  ;;  %v9413_v45 = vadd.f32 %v7488_v39, %v1205_v47 }
 0x165   : > { %v7441_v19 = vpop.f32.mrf.mxu0  ;;  %7740 = vmatmul.mubr.msk.f32.gmra.mxu0 %vm225_vm1, %v9213_v33  ;;  %v7494_v23 = vpop.f32.mrf.mxu1 }
 0x166   : > { %v1207_v48 = vadd.f32 %v7441_v19, %v9225_v6  ;;  %7742 = vmatprep.mubr.msk.f32.mxu0 %vm225_vm1, %v9219_v3  ;;  %v2177_v6 = vld [vmem:[#allocation2 + $0x1a2] sm:$0xff] }
 0x167   : > { %v9420_v53 = vpop.f32.mrf.mxu0  ;;  %v9422_v5 = vpop.f32.mrf.mxu1 }
 0x168   : > { %11526 = vst [vmem:[#allocation33_spill] sm:$0xff] %v9420_v53  ;;  %11527 = vst [vmem:[#allocation34_spill] sm:$0xff] %v9422_v5  ;;  %v9424_v56 = vadd.f32 %v7491_v40, %v1207_v48 }
 0x169   : > { %v7444_v51 = vpop.f32.mrf.mxu0  ;;  %7743 = vmatmul.mubr.msk.f32.gmra.mxu0 %vm225_vm1, %v9231_v34  ;;  %v7497_v27 = vpop.f32.mrf.mxu1 }
 0x16a   : > { %v1209_v33 = vadd.f32 %v7444_v51, %v11528_v57  ;;  %7745 = vmatprep.mubr.msk.f32.mxu0 %vm225_vm1, %v2176_v21  ;;  %v11532_v51 = vmov 0.0  }
 0x16b   : > { %v9430_v63 = vpop.f32.mrf.mxu0  ;;  %v9432_v3 = vpop.f32.mrf.mxu1  ;;  %3149 = vst.msk [vmem:[#allocation3 + $0x20] sm:$0xff] %vm3143_vm3, %v11532_v51  ;;  %3144 = vst.msk [vmem:[#allocation3] sm:$0xff] %vm3143_vm3, %v11532_v51 }
 0x16c   : > { %11529 = vst [vmem:[#allocation15_spill] sm:$0xff] %v9430_v63  ;;  %11530 = vst [vmem:[#allocation35_spill] sm:$0xff] %v9432_v3  ;;  %v9434_v13 = vadd.f32 %v7494_v23, %v1209_v33 }
 0x16d   : > { %v7447_v18 = vpop.f32.mrf.mxu0  ;;  %7746 = vmatmul.mubr.msk.f32.gmra.mxu0 %vm225_vm1, %v2177_v6  ;;  %v9437_v8 = vpop.f32.mrf.mxu1  ;;  %3145 = vst.msk [vmem:[#allocation3 + $0x8] sm:$0xff] %vm3143_vm3, %v11532_v51  ;;  %3148 = vst.msk [vmem:[#allocation3 + $0x18] sm:$0xff] %vm3143_vm3, %v11532_v51 }
 0x16e   : > { %v1211_v32 = vadd.f32 %v7447_v18, %v9251_v14  ;;  %3151 = vst.msk [vmem:[#allocation3 + $0x30] sm:$0xff] %vm3143_vm3, %v11532_v51  ;;  %3152 = vst.msk [vmem:[#allocation3 + $0x38] sm:$0xff] %vm3143_vm3, %v11532_v51 }
 0x16f   : > { %v9440_v34 = vpop.f32.mrf.mxu0  ;;  %v9442_v39 = vpop.f32.mrf.mxu1  ;;  %3154 = vst.msk [vmem:[#allocation3 + $0x48] sm:$0xff] %vm3143_vm3, %v11532_v51  ;;  %3155 = vst.msk [vmem:[#allocation3 + $0x50] sm:$0xff] %vm3143_vm3, %v11532_v51 }
 0x170   : > { %11531 = vst [vmem:[#allocation36_spill] sm:$0xff] %v9440_v34  ;;  %v9444_v55 = vadd.f32 %v7497_v27, %v1211_v32  ;;  %3157 = vst.msk [vmem:[#allocation3 + $0x60] sm:$0xff] %vm3143_vm3, %v11532_v51  ;;  %v3268_v32 = vld [vmem:[%s11487_s3] sm:$0xff] }
 0x171   : > { %v7502_v62 = vpop.f32.mrf.mxu0  ;;  %v9446_v40 = vpop.f32.mrf.mxu1  ;;  %3158 = vst.msk [vmem:[#allocation3 + $0x68] sm:$0xff] %vm3143_vm3, %v11532_v51  ;;  %3160 = vst.msk [vmem:[#allocation3 + $0x78] sm:$0xff] %vm3143_vm3, %v11532_v51  ;;  %7798 = vmatprep.subr.mxu0 %v3268_v32 }
 0x172   : > { %v9449_v47 = vadd.f32 %v7502_v62, %v9269_v54  ;;  %3161 = vst.msk [vmem:[#allocation3 + $0x80] sm:$0xff] %vm3143_vm3, %v11532_v51  ;;  %3163 = vst.msk [vmem:[#allocation3 + $0x90] sm:$0xff] %vm3143_vm3, %v11532_v51  ;;  %v3232_v3 = vld [vmem:[#allocation3] sm:$0xff]  ;;  %7799 = vmatpush3.msra.mxu0 %v3268_v32 }
 0x173   : > { %v9451_v19 = vpop.f32.mrf.mxu0  ;;  %v9453_v23 = vpop.f32.mrf.mxu1  ;;  %3164 = vst.msk [vmem:[#allocation3 + $0x98] sm:$0xff] %vm3143_vm3, %v11532_v51  ;;  %3166 = vst.msk [vmem:[#allocation3 + $0xa8] sm:$0xff] %vm3143_vm3, %v11532_v51  ;;  %7800 = vmatprep.mubr.msk.f32.mxu0 %vm3143_vm3, %v3232_v3 }
 0x174   : > { %3167 = vst.msk [vmem:[#allocation3 + $0xb0] sm:$0xff] %vm3143_vm3, %v11532_v51  ;;  %3169 = vst.msk [vmem:[#allocation3 + $0xc0] sm:$0xff] %vm3143_vm3, %v11532_v51 }
 0x175   : > { %v7505_v48 = vpop.f32.mrf.mxu0  ;;  %v9455_v21 = vpop.f32.mrf.mxu1  ;;  %3170 = vst.msk [vmem:[#allocation3 + $0xc8] sm:$0xff] %vm3143_vm3, %v11532_v51  ;;  %3172 = vst.msk [vmem:[#allocation3 + $0xd8] sm:$0xff] %vm3143_vm3, %v11532_v51 }
 0x176   : > { %v9458_v14 = vadd.f32 %v7505_v48, %v9281_v4  ;;  %3173 = vst.msk [vmem:[#allocation3 + $0xe0] sm:$0xff] %vm3143_vm3, %v11532_v51  ;;  %3175 = vst.msk [vmem:[#allocation3 + $0xf0] sm:$0xff] %vm3143_vm3, %v11532_v51 }
 0x177   : > { %3176 = vst.msk [vmem:[#allocation3 + $0xf8] sm:$0xff] %vm3143_vm3, %v11532_v51  ;;  %3178 = vst.msk [vmem:[#allocation3 + $0x108] sm:$0xff] %vm3143_vm3, %v11532_v51  ;;  %v9532_v54 = vpop.f32.mrf.mxu0  ;;  %v9534_v4 = vpop.f32.mrf.mxu1 }
 0x178   : > { %3179 = vst.msk [vmem:[#allocation3 + $0x110] sm:$0xff] %vm3143_vm3, %v11532_v51  ;;  %3181 = vst.msk [vmem:[#allocation3 + $0x120] sm:$0xff] %vm3143_vm3, %v11532_v51 }
 0x179   : > { %3182 = vst.msk [vmem:[#allocation3 + $0x128] sm:$0xff] %vm3143_vm3, %v11532_v51  ;;  %3184 = vst.msk [vmem:[#allocation3 + $0x138] sm:$0xff] %vm3143_vm3, %v11532_v51  ;;  %v7508_v27 = vpop.f32.mrf.mxu0  ;;  %v9572_v57 = vpop.f32.mrf.mxu1 }
 0x17a   : > { %3185 = vst.msk [vmem:[#allocation3 + $0x140] sm:$0xff] %vm3143_vm3, %v11532_v51  ;;  %3187 = vst.msk [vmem:[#allocation3 + $0x150] sm:$0xff] %vm3143_vm3, %v11532_v51  ;;  %v9575_v33 = vadd.f32 %v7508_v27, %v9293_v12  ;;  %v3233_v12 = vld [vmem:[#allocation3 + $0x8] sm:$0xff] }
 0x17b   : > { %3188 = vst.msk [vmem:[#allocation3 + $0x158] sm:$0xff] %vm3143_vm3, %v11532_v51  ;;  %3190 = vst.msk [vmem:[#allocation3 + $0x168] sm:$0xff] %vm3143_vm3, %v11532_v51  ;;  %v9577_v6 = vpop.f32.mrf.mxu0  ;;  %v9579_v18 = vpop.f32.mrf.mxu1  ;;  %7801 = vmatmul.mubr.msk.f32.vlgmr.msra.gmra.mxu0 %vm3143_vm3, %v3233_v12  ;;  %v9616_v12 = vld [vmem:[%s11487_s3 + $0x30] sm:$0xff] }
 0x17c   : > { %3191 = vst.msk [vmem:[#allocation3 + $0x170] sm:$0xff] %vm3143_vm3, %v11532_v51  ;;  %3193 = vst.msk [vmem:[#allocation3 + $0x180] sm:$0xff] %vm3143_vm3, %v11532_v51  ;;  %7848 = vmatprep.subr.mxu1 %v9616_v12 }
 0x17d   : > { %3194 = vst.msk [vmem:[#allocation3 + $0x188] sm:$0xff] %vm3143_vm3, %v11532_v51  ;;  %3196 = vst.msk [vmem:[#allocation3 + $0x198] sm:$0xff] %vm3143_vm3, %v11532_v51  ;;  %v7511_v62 = vpop.f32.mrf.mxu0  ;;  %v9584_v48 = vpop.f32.mrf.mxu1 }
 0x17e   : > { %3197 = vst.msk [vmem:[#allocation3 + $0x1a0] sm:$0xff] %vm3143_vm3, %v11532_v51  ;;  %11536 = vst [vmem:[#allocation40_spill] sm:$0xff] %v9616_v12 }
 0x17f   : > { %3150 = vst.msk [vmem:[#allocation3 + $0x28] sm:$0x3] %vm3146_vm4, %v11532_v51  ;;  %3147 = vst.msk [vmem:[#allocation3 + $0x10] sm:$0x3] %vm3146_vm4, %v11532_v51  ;;  %v9590_v27 = vpop.f32.mrf.mxu0  ;;  %v9592_v34 = vpop.f32.mrf.mxu1 }
 0x180   : > { %3153 = vst.msk [vmem:[#allocation3 + $0x40] sm:$0x3] %vm3146_vm4, %v11532_v51  ;;  %3156 = vst.msk [vmem:[#allocation3 + $0x58] sm:$0x3] %vm3146_vm4, %v11532_v51 }
 0x181   : > { %3159 = vst.msk [vmem:[#allocation3 + $0x70] sm:$0x3] %vm3146_vm4, %v11532_v51  ;;  %3162 = vst.msk [vmem:[#allocation3 + $0x88] sm:$0x3] %vm3146_vm4, %v11532_v51  ;;  %v7514_v5 = vpop.f32.mrf.mxu0  ;;  %v9595_v63 = vpop.f32.mrf.mxu1 }
 0x182   : > { %3165 = vst.msk [vmem:[#allocation3 + $0xa0] sm:$0x3] %vm3146_vm4, %v11532_v51  ;;  %3168 = vst.msk [vmem:[#allocation3 + $0xb8] sm:$0x3] %vm3146_vm4, %v11532_v51  ;;  %v9598_v50 = vadd.f32 %v7514_v5, %v9320_v42 }
 0x183   : > { %3171 = vst.msk [vmem:[#allocation3 + $0xd0] sm:$0x3] %vm3146_vm4, %v11532_v51  ;;  %3174 = vst.msk [vmem:[#allocation3 + $0xe8] sm:$0x3] %vm3146_vm4, %v11532_v51  ;;  %v9600_v53 = vpop.f32.mrf.mxu0 }
 0x184   : > { %3177 = vst.msk [vmem:[#allocation3 + $0x100] sm:$0x3] %vm3146_vm4, %v11532_v51  ;;  %3180 = vst.msk [vmem:[#allocation3 + $0x118] sm:$0x3] %vm3146_vm4, %v11532_v51 }
 0x185   : > { %3183 = vst.msk [vmem:[#allocation3 + $0x130] sm:$0x3] %vm3146_vm4, %v11532_v51  ;;  %3186 = vst.msk [vmem:[#allocation3 + $0x148] sm:$0x3] %vm3146_vm4, %v11532_v51  ;;  %v7517_v32 = vpop.f32.mrf.mxu0 }
 0x186   : > { %3189 = vst.msk [vmem:[#allocation3 + $0x160] sm:$0x3] %vm3146_vm4, %v11532_v51  ;;  %3192 = vst.msk [vmem:[#allocation3 + $0x178] sm:$0x3] %vm3146_vm4, %v11532_v51  ;;  %v9607_v3 = vadd.f32 %v7517_v32, %v9332_v36 }
 0x187   : > { %3195 = vst.msk [vmem:[#allocation3 + $0x190] sm:$0x3] %vm3146_vm4, %v11532_v51  ;;  %3198 = vst.msk [vmem:[#allocation3 + $0x1a8] sm:$0x3] %vm3146_vm4, %v11532_v51  ;;  %v9587_v51 = vadd.f32 %v7511_v62, %v9305_v20  ;;  %v9602_v20 = vpop.f32.mrf.mxu1  ;;  %v9609_v37 = vpop.f32.mrf.mxu0 }
 0x188   : > { %11533 = vst [vmem:[#allocation37_spill] sm:$0xff] %v9602_v20 }
 0x189   : > { %v9604_v62 = vpop.f32.mrf.mxu1  ;;  %v7520_v42 = vpop.f32.mrf.mxu0 }
 0x18a   : > { %11534 = vst [vmem:[#allocation38_spill] sm:$0xff] %v9604_v62  ;;  %v9622_v22 = vadd.f32 %v7520_v42, %v9344_v44 }
 0x18b   : > { %v9611_v38 = vpop.f32.mrf.mxu1  ;;  %v9624_v25 = vpop.f32.mrf.mxu0 }
 0x18c   : > { %11535 = vst [vmem:[#allocation39_spill] sm:$0xff] %v9611_v38  ;;  %11538 = vst [vmem:[#allocation42_spill] sm:$0xff] %v9622_v22 }
 0x18d   : > { %v9618_v5 = vpop.f32.mrf.mxu1  ;;  %11539 = vst [vmem:[#allocation43_spill] sm:$0xff] %v9624_v25  ;;  %v7523_v32 = vpop.f32.mrf.mxu0 }
 0x18e   : > { %11537 = vst [vmem:[#allocation41_spill] sm:$0xff] %v9618_v5  ;;  %v9631_v10 = vadd.f32 %v7523_v32, %v9356_v52 }
 0x18f   : > { %v9626_v36 = vpop.f32.mrf.mxu1  ;;  %v9633_v24 = vpop.f32.mrf.mxu0 }
 0x190   : > { %11540 = vst [vmem:[#allocation44_spill] sm:$0xff] %v9626_v36  ;;  %11542 = vst [vmem:[#allocation46_spill] sm:$0xff] %v9631_v10 }
 0x191   : > { %v9628_v0 = vpop.f32.mrf.mxu1  ;;  %11543 = vst [vmem:[#allocation47_spill] sm:$0xff] %v9633_v24  ;;  %v7526_v5 = vpop.f32.mrf.mxu0 }
 0x192   : > { %11541 = vst [vmem:[#allocation45_spill] sm:$0xff] %v9628_v0  ;;  %v9640_v44 = vadd.f32 %v7526_v5, %v9369_v31 }
 0x193   : > { %v9635_v61 = vpop.f32.mrf.mxu1  ;;  %v9642_v42 = vpop.f32.mrf.mxu0 }
 0x194   : > { %11544 = vst [vmem:[#allocation48_spill] sm:$0xff] %v9635_v61  ;;  %11546 = vst [vmem:[#allocation50_spill] sm:$0xff] %v9640_v44 }
 0x195   : > { %v9637_v43 = vpop.f32.mrf.mxu1  ;;  %11547 = vst [vmem:[#allocation51_spill] sm:$0xff] %v9642_v42  ;;  %v7529_v36 = vpop.f32.mrf.mxu0 }
 0x196   : > { %11545 = vst [vmem:[#allocation49_spill] sm:$0xff] %v9637_v43  ;;  %v9649_v52 = vadd.f32 %v7529_v36, %v9380_v9 }
 0x197   : > { %v9644_v1 = vpop.f32.mrf.mxu1  ;;  %v9651_v32 = vpop.f32.mrf.mxu0 }
 0x198   : > { %11548 = vst [vmem:[#allocation52_spill] sm:$0xff] %v9644_v1  ;;  %11550 = vst [vmem:[#allocation54_spill] sm:$0xff] %v9649_v52 }
 0x199   : > { %v9646_v12 = vpop.f32.mrf.mxu1  ;;  %11551 = vst [vmem:[#allocation55_spill] sm:$0xff] %v9651_v32  ;;  %v7532_v61 = vpop.f32.mrf.mxu0 }
 0x19a   : > { %11549 = vst [vmem:[#allocation53_spill] sm:$0xff] %v9646_v12  ;;  %v9658_v31 = vadd.f32 %v7532_v61, %v9391_v17 }
 0x19b   : > { %v9653_v0 = vpop.f32.mrf.mxu1  ;;  %v9660_v5 = vpop.f32.mrf.mxu0 }
 0x19c   : > { %11552 = vst [vmem:[#allocation56_spill] sm:$0xff] %v9653_v0  ;;  %11554 = vst [vmem:[#allocation58_spill] sm:$0xff] %v9658_v31 }
 0x19d   : > { %v9655_v10 = vpop.f32.mrf.mxu1  ;;  %11555 = vst [vmem:[#allocation59_spill] sm:$0xff] %v9660_v5  ;;  %v7535_v1 = vpop.f32.mrf.mxu0 }
 0x19e   : > { %11553 = vst [vmem:[#allocation57_spill] sm:$0xff] %v9655_v10  ;;  %v9667_v9 = vadd.f32 %v7535_v1, %v9402_v30 }
 0x19f   : > { %v9662_v43 = vpop.f32.mrf.mxu1  ;;  %v9669_v36 = vpop.f32.mrf.mxu0 }
 0x1a0   : > { %11556 = vst [vmem:[#allocation60_spill] sm:$0xff] %v9662_v43  ;;  %11558 = vst [vmem:[#allocation62_spill] sm:$0xff] %v9667_v9 }
 0x1a1   : > { %v9664_v44 = vpop.f32.mrf.mxu1  ;;  %11559 = vst [vmem:[#allocation63_spill] sm:$0xff] %v9669_v36  ;;  %v7538_v0 = vpop.f32.mrf.mxu0 }
 0x1a2   : > { %11557 = vst [vmem:[#allocation61_spill] sm:$0xff] %v9664_v44  ;;  %v9676_v61 = vadd.f32 %v7538_v0, %v9413_v45 }
 0x1a3   : > { %v9671_v12 = vpop.f32.mrf.mxu1  ;;  %v9678_v17 = vpop.f32.mrf.mxu0 }
 0x1a4   : > { %11560 = vst [vmem:[#allocation64_spill] sm:$0xff] %v9671_v12  ;;  %11562 = vst [vmem:[#allocation66_spill] sm:$0xff] %v9676_v61 }
 0x1a5   : > { %v9673_v52 = vpop.f32.mrf.mxu1  ;;  %11563 = vst [vmem:[#allocation67_spill] sm:$0xff] %v9678_v17  ;;  %v7541_v43 = vpop.f32.mrf.mxu0 }
 0x1a6   : > { %11561 = vst [vmem:[#allocation65_spill] sm:$0xff] %v9673_v52  ;;  %v9685_v1 = vadd.f32 %v7541_v43, %v9424_v56 }
 0x1a7   : > { %v9680_v10 = vpop.f32.mrf.mxu1  ;;  %v9687_v30 = vpop.f32.mrf.mxu0 }
 0x1a8   : > { %11564 = vst [vmem:[#allocation68_spill] sm:$0xff] %v9680_v10  ;;  %11566 = vst [vmem:[#allocation70_spill] sm:$0xff] %v9685_v1 }
 0x1a9   : > { %v9682_v31 = vpop.f32.mrf.mxu1  ;;  %11567 = vst [vmem:[#allocation71_spill] sm:$0xff] %v9687_v30  ;;  %v7544_v12 = vpop.f32.mrf.mxu0 }
 0x1aa   : > { %11565 = vst [vmem:[#allocation69_spill] sm:$0xff] %v9682_v31  ;;  %v9694_v0 = vadd.f32 %v7544_v12, %v9434_v13 }
 0x1ab   : > { %v9689_v44 = vpop.f32.mrf.mxu1  ;;  %v9696_v45 = vpop.f32.mrf.mxu0 }
 0x1ac   : > { %11568 = vst [vmem:[#allocation72_spill] sm:$0xff] %v9689_v44  ;;  %11570 = vst [vmem:[#allocation74_spill] sm:$0xff] %v9694_v0 }
 0x1ad   : > { %v9691_v9 = vpop.f32.mrf.mxu1  ;;  %11571 = vst [vmem:[#allocation75_spill] sm:$0xff] %v9696_v45  ;;  %v7547_v10 = vpop.f32.mrf.mxu0 }
 0x1ae   : > { %11569 = vst [vmem:[#allocation73_spill] sm:$0xff] %v9691_v9  ;;  %v9701_v31 = vadd.f32 %v7547_v10, %v9444_v55  ;;  %v6501_v10 = vld [vmem:[%s11487_s3 + $0x8] sm:$0xff] }
 0x1af   : > { %v9698_v52 = vpop.f32.mrf.mxu1  ;;  %v9703_v43 = vpop.f32.mrf.mxu0  ;;  %7898 = vmatprep.subr.mxu0 %v6501_v10 }
 0x1b0   : > { %11572 = vst [vmem:[#allocation76_spill] sm:$0xff] %v9698_v52  ;;  %11573 = vst [vmem:[#allocation77_spill] sm:$0xff] %v9701_v31  ;;  %7899 = vmatpush3.msra.mxu0 %v6501_v10 }
 0x1b1   : > { %11574 = vst [vmem:[#allocation78_spill] sm:$0xff] %v9703_v43  ;;  %v9705_v56 = vpop.f32.mrf.mxu1  ;;  %v7602_v1 = vpop.f32.mrf.mxu0 }
 0x1b3   : > { %v2345_v44 = vpop.f32.mrf.mxu0  ;;  %v9707_v30 = vpop.f32.mrf.mxu1 }
 0x1b5   : > { %v7605_v9 = vpop.f32.mrf.mxu0  ;;  %v9711_v13 = vpop.f32.mrf.mxu1 }
 0x1b7   : > { %v9709_v61 = vpop.f32.mrf.mxu0  ;;  %v9715_v52 = vpop.f32.mrf.mxu1 }
 0x1b9   : > { %v9713_v12 = vpop.f32.mrf.mxu0  ;;  %v9724_v31 = vpop.f32.mrf.mxu1 }
 0x1bb   : > { %v9717_v0 = vpop.f32.mrf.mxu0  ;;  %v9730_v17 = vpop.f32.mrf.mxu1 }
 0x1bd   : > { %v9722_v55 = vpop.f32.mrf.mxu0  ;;  %v9736_v32 = vpop.f32.mrf.mxu1 }
 0x1bf   : > { %v9726_v43 = vpop.f32.mrf.mxu0  ;;  %v9742_v38 = vpop.f32.mrf.mxu1 }
 0x1c0   : > { %11578 = vst [vmem:[#allocation82_spill] sm:$0xff] %v9742_v38 }
 0x1c1   : > { %v9728_v45 = vpop.f32.mrf.mxu0  ;;  %v9748_v22 = vpop.f32.mrf.mxu1 }
 0x1c2   : > { %11581 = vst [vmem:[#allocation85_spill] sm:$0xff] %v9748_v22 }
 0x1c3   : > { %v9732_v36 = vpop.f32.mrf.mxu0  ;;  %v9754_v25 = vpop.f32.mrf.mxu1 }
 0x1c4   : > { %11584 = vst [vmem:[#allocation88_spill] sm:$0xff] %v9754_v25 }
 0x1c5   : > { %v9734_v5 = vpop.f32.mrf.mxu0 }
 0x1c6   : > { %11575 = vst [vmem:[#allocation79_spill] sm:$0xff] %v9734_v5 }
 0x1c7   : > { %v9738_v42 = vpop.f32.mrf.mxu0 }
 0x1c8   : > { %11576 = vst [vmem:[#allocation80_spill] sm:$0xff] %v9738_v42  ;;  %v9760_v42 = vpop.f32.mrf.mxu1 }
 0x1c9   : > { %v9740_v24 = vpop.f32.mrf.mxu0  ;;  %11587 = vst [vmem:[#allocation91_spill] sm:$0xff] %v9760_v42 }
 0x1ca   : > { %11577 = vst [vmem:[#allocation81_spill] sm:$0xff] %v9740_v24 }
 0x1cb   : > { %v9744_v10 = vpop.f32.mrf.mxu0 }
 0x1cc   : > { %11579 = vst [vmem:[#allocation83_spill] sm:$0xff] %v9744_v10  ;;  %v9766_v10 = vpop.f32.mrf.mxu1 }
 0x1cd   : > { %v9746_v62 = vpop.f32.mrf.mxu0  ;;  %11590 = vst [vmem:[#allocation94_spill] sm:$0xff] %v9766_v10 }
 0x1ce   : > { %11580 = vst [vmem:[#allocation84_spill] sm:$0xff] %v9746_v62 }
 0x1cf   : > { %v9750_v35 = vpop.f32.mrf.mxu0 }
 0x1d0   : > { %11582 = vst [vmem:[#allocation86_spill] sm:$0xff] %v9750_v35  ;;  %v9772_v35 = vpop.f32.mrf.mxu1 }
 0x1d1   : > { %v9752_v16 = vpop.f32.mrf.mxu0  ;;  %11593 = vst [vmem:[#allocation97_spill] sm:$0xff] %v9772_v35 }
 0x1d2   : > { %11583 = vst [vmem:[#allocation87_spill] sm:$0xff] %v9752_v16 }
 0x1d3   : > { %v9756_v5 = vpop.f32.mrf.mxu0 }
 0x1d4   : > { %11585 = vst [vmem:[#allocation89_spill] sm:$0xff] %v9756_v5  ;;  %v9778_v5 = vpop.f32.mrf.mxu1 }
 0x1d5   : > { %v9758_v20 = vpop.f32.mrf.mxu0 }
 0x1d6   : > { %11586 = vst [vmem:[#allocation90_spill] sm:$0xff] %v9758_v20  ;;  %v9786_v10 = vpop.f32.mrf.mxu1 }
 0x1d7   : > { %v9762_v24 = vpop.f32.mrf.mxu0 }
 0x1d8   : > { %11588 = vst [vmem:[#allocation92_spill] sm:$0xff] %v9762_v24 }
 0x1d9   : > { %v9764_v38 = vpop.f32.mrf.mxu0 }
 0x1da   : > { %11589 = vst [vmem:[#allocation93_spill] sm:$0xff] %v9764_v38  ;;  %v11598_v38 = vld [vmem:[#allocation19_spill] sm:$0xff] }
 0x1db   : > { %v9768_v62 = vpop.f32.mrf.mxu0  ;;  %v1574_v24 = vadd.f32 %v11598_v38, %v9267_v46  ;;  %11599 = vst [vmem:[#allocation19_spill] sm:$0xff] %v9786_v10 }
 0x1dc   : > { %11591 = vst [vmem:[#allocation95_spill] sm:$0xff] %v9768_v62 }
 0x1dd   : > { %v9770_v22 = vpop.f32.mrf.mxu0 }
 0x1de   : > { %11592 = vst [vmem:[#allocation96_spill] sm:$0xff] %v9770_v22  ;;  %v1842_v22 = vadd.f32 %v9451_v19, %v1574_v24  ;;  %v1578_v24 = vadd.f32 %v9276_v59, %v9291_v26  ;;  %v1580_v59 = vadd.f32 %v9288_v2, %v9303_v58  ;;  %v2115_v26 = vadd.f32 %v9455_v21, %v9575_v33 }
 0x1df   : > { %v9774_v16 = vpop.f32.mrf.mxu0 }
 0x1e0   : > { %11594 = vst [vmem:[#allocation98_spill] sm:$0xff] %v9774_v16  ;;  %v2111_v16 = vadd.f32 %v9437_v8, %v9449_v47  ;;  %v2110_v46 = vadd.f32 %v9442_v39, %v1842_v22  ;;  %v1846_v8 = vadd.f32 %v9577_v6, %v1578_v24  ;;  %v2509_v2 = vadd.f32 %v9713_v12, %v2115_v26  ;;  %v11606_v26 = vld [vmem:[#allocation8_spill] sm:$0xff] }
 0x1e1   : > { %v9776_v25 = vpop.f32.mrf.mxu0 }
 0x1e2   : > { %11595 = vst [vmem:[#allocation99_spill] sm:$0xff] %v9776_v25  ;;  %v1576_v25 = vadd.f32 %v9264_v29, %v9279_v49  ;;  %v2505_v10 = vadd.f32 %v7602_v1, %v2111_v16  ;;  %v2113_v29 = vadd.f32 %v9446_v40, %v9458_v14  ;;  %v2504_v49 = vadd.f32 %v2345_v44, %v2110_v46  ;;  %v9823_v40 = vld [vmem:[%s11486_s2] ss:$0 sm:$0xff] }
 0x1e3   : > { %v9780_v20 = vpop.f32.mrf.mxu0  ;;  %v2114_v6 = vadd.f32 %v9534_v4, %v1846_v8  ;;  %v1848_v44 = vadd.f32 %v9590_v27, %v1580_v59  ;;  %v2117_v4 = vadd.f32 %v9572_v57, %v9587_v51  ;;  %v11605_v59 = vld [vmem:[#allocation9_spill] sm:$0xff] }
 0x1e4   : > { %11596 = vst [vmem:[#allocation100_spill] sm:$0xff] %v9780_v20  ;;  %v9797_v20 = vpop.f32.mrf.mxu1  ;;  %v1844_v38 = vadd.f32 %v9532_v54, %v1576_v25  ;;  %v2773_v25 = vadd.f32 %v9705_v56, %v2505_v10  ;;  %v2507_v16 = vadd.f32 %v7605_v9, %v2113_v29  ;;  %v2772_v14 = vadd.f32 %v9707_v30, %v2504_v49  ;;  %v11601_v56 = vld [vmem:[#allocation5_spill] sm:$0xff]  ;;  %v11602_v10 = vld [vmem:[#allocation4_spill] sm:$0xff]  ;;  %v11603_v29 = vld [vmem:[#allocation7_spill] sm:$0xff] }
 0x1e5   : > { %v9782_v42 = vpop.f32.mrf.mxu0  ;;  %v9836_v30 = vadd.f32 %v11602_v10, %v11601_v56  ;;  %v2508_v27 = vadd.f32 %v9717_v0, %v2114_v6  ;;  %v11604_v49 = vld [vmem:[#allocation6_spill] sm:$0xff]  ;;  %v2511_v0 = vadd.f32 %v9722_v55, %v2117_v4  ;;  %v9884_v56 = vld [vmem:[%s11487_s3 + $0x38] sm:$0xff] }
 0x1e6   : > { %11597 = vst [vmem:[#allocation101_spill] sm:$0xff] %v9782_v42  ;;  %v9810_v47 = vpop.f32.mrf.mxu1  ;;  %v2112_v22 = vadd.f32 %v9453_v23, %v1844_v38  ;;  %v2775_v33 = vadd.f32 %v9711_v13, %v2507_v16  ;;  %v9847_v8 = vadd.f32 %v11604_v49, %v11603_v29  ;;  %7998 = vmatprep.subr.mxu0 %v9884_v56  ;;  %v11613_v29 = vld [vmem:[#allocation14_spill] sm:$0xff] }
 0x1e7   : > { %v9788_v62 = vpop.f32.mrf.mxu0 }
 0x1e8   : > { %v2506_v54 = vadd.f32 %v9709_v61, %v2112_v22  ;;  %v9830_v58 = vpop.f32.mrf.mxu1  ;;  %v1582_v61 = vadd.f32 %v9300_v11, %v9318_v28  ;;  %v2116_v22 = vadd.f32 %v9579_v18, %v1848_v44  ;;  %v2777_v28 = vadd.f32 %v9724_v31, %v2509_v2  ;;  %v11607_v44 = vld [vmem:[#allocation11_spill] sm:$0xff]  ;;  %v11608_v2 = vld [vmem:[#allocation10_spill] sm:$0xff] }
 0x1e9   : > { %v9791_v35 = vpop.f32.mrf.mxu0  ;;  %v2119_v18 = vadd.f32 %v9584_v48, %v9598_v50  ;;  %v2776_v31 = vadd.f32 %v9730_v17, %v2508_v27  ;;  %v11611_v27 = vld [vmem:[#allocation82_spill] sm:$0xff] }
 0x1ea   : > { %11600 = vst [vmem:[#allocation102_spill] sm:$0xff] %v9791_v35  ;;  %v2774_v46 = vadd.f32 %v9715_v52, %v2506_v54  ;;  %v1850_v11 = vadd.f32 %v9600_v53, %v1582_v61  ;;  %v9852_v57 = vpop.f32.mrf.mxu1  ;;  %v1584_v53 = vadd.f32 %v9315_v41, %v9330_v60  ;;  %v2510_v55 = vadd.f32 %v9726_v43, %v2116_v22 }
 0x1eb   : > { %v9799_v42 = vpop.f32.mrf.mxu0  ;;  %v2513_v50 = vadd.f32 %v9728_v45, %v2119_v18  ;;  %v2779_v43 = vadd.f32 %v9736_v32, %v2511_v0  ;;  %v1586_v45 = vadd.f32 %v9327_v7, %v9342_v15  ;;  %v2121_v32 = vadd.f32 %v9595_v63, %v9607_v3  ;;  %v11614_v7 = vld [vmem:[#allocation37_spill] sm:$0xff]  ;;  %v11615_v63 = vld [vmem:[#allocation43_spill] sm:$0xff]  ;;  %v11620_v18 = vld [vmem:[#allocation22_spill] sm:$0xff] }
 0x1ec   : > { %v2118_v41 = vadd.f32 %v9592_v34, %v1850_v11  ;;  %v1852_v60 = vadd.f32 %v9609_v37, %v1584_v53  ;;  %v9876_v48 = vpop.f32.mrf.mxu1  ;;  %v11609_v34 = vld [vmem:[#allocation13_spill] sm:$0xff]  ;;  %v11610_v37 = vld [vmem:[#allocation12_spill] sm:$0xff] }
 0x1ed   : > { %v9805_v19 = vpop.f32.mrf.mxu0  ;;  %v9888_v10 = vadd.f32 %v11610_v37, %v11609_v34  ;;  %v1854_v3 = vadd.f32 %v11615_v63, %v1586_v45  ;;  %v11626_v34 = vld [vmem:[#allocation39_spill] sm:$0xff]  ;;  %v11632_v63 = vld [vmem:[#allocation21_spill] sm:$0xff] }
 0x1ee   : > { %v2512_v61 = vadd.f32 %v9732_v36, %v2118_v41  ;;  %v2120_v15 = vadd.f32 %v11614_v7, %v1852_v60  ;;  %v11616_v36 = vld [vmem:[#allocation85_spill] sm:$0xff]  ;;  %v9906_v11 = vpop.f32.mrf.mxu1  ;;  %v11627_v45 = vld [vmem:[#allocation47_spill] sm:$0xff]  ;;  %v11630_v7 = vld [vmem:[#allocation40_spill] sm:$0xff] }
 0x1ef   : > { %v9812_v35 = vpop.f32.mrf.mxu0  ;;  %v2781_v22 = vadd.f32 %v11616_v36, %v2513_v50  ;;  %v11625_v50 = vld [vmem:[#allocation80_spill] sm:$0xff]  ;;  %v2122_v37 = vadd.f32 %v11626_v34, %v1854_v3  ;;  %v11633_v36 = vld [vmem:[#allocation25_spill] sm:$0xff] }
 0x1f1   : > { %v7702_v39 = vpop.f32.mrf.mxu0 }
 0x1f2   : > { %v3041_v23 = vadd.f32 %v7702_v39, %v2773_v25  ;;  %v9859_v39 = vadd.f32 %v11606_v26, %v11605_v59  ;;  %v11618_v59 = vld [vmem:[#allocation18_spill] sm:$0xff]  ;;  %v11619_v26 = vld [vmem:[#allocation17_spill] sm:$0xff] }
 0x1f3   : > { %v2881_v21 = vpop.f32.mrf.mxu0  ;;  %v9913_v53 = vadd.f32 %v11619_v26, %v11618_v59 }
 0x1f4   : > { %v3080_v9 = vadd.f32 %v9823_v40, %v3041_v23  ;;  %v3040_v1 = vadd.f32 %v2881_v21, %v2772_v14  ;;  %v9871_v21 = vadd.f32 %v11608_v2, %v11607_v44 }
 0x1f5   : > { %v7705_v12 = vpop.f32.mrf.mxu0 }
 0x1f6   : > { %v3112_v38 = vmax.f32 %v3080_v9, 0.0  ;;  %v3079_v13 = vadd.f32 %v9823_v40, %v3040_v1  ;;  %v3043_v24 = vadd.f32 %v7705_v12, %v2775_v33  ;;  %v2778_v12 = vadd.f32 %v11611_v27, %v2510_v55  ;;  %v11622_v55 = vld [vmem:[#allocation42_spill] sm:$0xff]  ;;  %v9933_v27 = vpop.f32.mrf.mxu1 }
 0x1f7   : > { %v2891_v51 = vpop.f32.mrf.mxu0 }
 0x1f8   : > { %3201 = vst.msk [vmem:[#allocation3 + $0x21] sm:$0xff] %vm3143_vm3, %v3112_v38  ;;  %v3111_v52 = vmax.f32 %v3079_v13, 0.0  ;;  %v3082_v25 = vadd.f32 %v9823_v40, %v3043_v24  ;;  %v3042_v16 = vadd.f32 %v2891_v51, %v2774_v46  ;;  %v11612_v24 = vld [vmem:[#allocation16_spill] sm:$0xff]  ;;  %v11617_v51 = vld [vmem:[#allocation79_spill] sm:$0xff] }
 0x1f9   : > { %v7708_v14 = vpop.f32.mrf.mxu0  ;;  %v9901_v49 = vadd.f32 %v11613_v29, %v11612_v24  ;;  %v2515_v0 = vadd.f32 %v11617_v51, %v2121_v32  ;;  %v11635_v51 = vld [vmem:[#allocation41_spill] sm:$0xff] }
 0x1fa   : > { %3200 = vst.msk [vmem:[#allocation3 + $0x19] sm:$0xff] %vm3143_vm3, %v3111_v52  ;;  %v3114_v54 = vmax.f32 %v3082_v25, 0.0  ;;  %v3081_v23 = vadd.f32 %v9823_v40, %v3042_v16  ;;  %v3045_v6 = vadd.f32 %v7708_v14, %v2777_v28 }
 0x1fb   : > { %v2901_v17 = vpop.f32.mrf.mxu0 }
 0x1fc   : > { %3203 = vst.msk [vmem:[#allocation3 + $0x39] sm:$0xff] %vm3143_vm3, %v3114_v54  ;;  %v3113_v33 = vmax.f32 %v3081_v23, 0.0  ;;  %v3084_v9 = vadd.f32 %v9823_v40, %v3045_v6  ;;  %v3044_v1 = vadd.f32 %v2901_v17, %v2776_v31  ;;  %v11621_v31 = vld [vmem:[#allocation20_spill] sm:$0xff]  ;;  %v11623_v54 = vld [vmem:[#allocation38_spill] sm:$0xff]  ;;  %v2514_v17 = vadd.f32 %v11625_v50, %v2120_v15 }
 0x1fd   : > { %v7711_v4 = vpop.f32.mrf.mxu0  ;;  %v1588_v14 = vadd.f32 %v11621_v31, %v11620_v18  ;;  %v2123_v23 = vadd.f32 %v11623_v54, %v11622_v55  ;;  %v11624_v6 = vld [vmem:[#allocation88_spill] sm:$0xff]  ;;  %v11637_v18 = vld [vmem:[#allocation94_spill] sm:$0xff] }
 0x1fe   : > { %3202 = vst.msk [vmem:[#allocation3 + $0x31] sm:$0xff] %vm3143_vm3, %v3113_v33  ;;  %v3116_v46 = vmax.f32 %v3084_v9, 0.0  ;;  %v3083_v38 = vadd.f32 %v9823_v40, %v3044_v1  ;;  %v3047_v13 = vadd.f32 %v7711_v4, %v2779_v43  ;;  %v2780_v44 = vadd.f32 %v11624_v6, %v2512_v61  ;;  %v9928_v1 = vld [vmem:[%s11487_s3 + $0x20] sm:$0xff]  ;;  %v11628_v61 = vld [vmem:[#allocation81_spill] sm:$0xff]  ;;  %v11639_v6 = vld [vmem:[#allocation51_spill] sm:$0xff] }
 0x1ff   : > { %v2911_v28 = vpop.f32.mrf.mxu0  ;;  %v1856_v32 = vadd.f32 %v11627_v45, %v1588_v14  ;;  %v2517_v4 = vadd.f32 %v11628_v61, %v2123_v23  ;;  %v11631_v15 = vld [vmem:[#allocation24_spill] sm:$0xff]  ;;  %v2782_v31 = vadd.f32 %v11637_v18, %v2514_v17 }
 0x200   : > { %3205 = vst.msk [vmem:[#allocation3 + $0x51] sm:$0xff] %vm3143_vm3, %v3116_v46  ;;  %v3115_v52 = vmax.f32 %v3083_v38, 0.0  ;;  %v3086_v25 = vadd.f32 %v9823_v40, %v3047_v13  ;;  %v3046_v16 = vadd.f32 %v2911_v28, %v2778_v12  ;;  %v11629_v46 = vld [vmem:[#allocation91_spill] sm:$0xff]  ;;  %v1590_v3 = vadd.f32 %v11632_v63, %v11631_v15  ;;  %v11634_v28 = vld [vmem:[#allocation46_spill] sm:$0xff]  ;;  %v11638_v54 = vld [vmem:[#allocation44_spill] sm:$0xff] }
 0x201   : > { %v7714_v2 = vpop.f32.mrf.mxu0  ;;  %v3234_v41 = vld [vmem:[#allocation3 + $0x18] sm:$0xff]  ;;  %v3235_v60 = vld [vmem:[#allocation3 + $0x20] sm:$0xff]  ;;  %v2783_v38 = vadd.f32 %v11629_v46, %v2515_v0  ;;  %v2124_v23 = vadd.f32 %v11638_v54, %v1856_v32  ;;  %v11641_v17 = vld [vmem:[#allocation84_spill] sm:$0xff] }
 0x202   : > { %3204 = vst.msk [vmem:[#allocation3 + $0x49] sm:$0xff] %vm3143_vm3, %v3115_v52  ;;  %v3118_v43 = vmax.f32 %v3086_v25, 0.0  ;;  %v3085_v33 = vadd.f32 %v9823_v40, %v3046_v16  ;;  %v3049_v9 = vadd.f32 %v7714_v2, %v2781_v22  ;;  %7750 = vmatprep.mubr.msk.f32.mxu1 %vm3143_vm3, %v3234_v41  ;;  %7803 = vmatprep.mubr.msk.f32.mxu0 %vm3143_vm3, %v3234_v41  ;;  %v11636_v25 = vld [vmem:[#allocation83_spill] sm:$0xff]  ;;  %v11640_v2 = vld [vmem:[#allocation97_spill] sm:$0xff] }
 0x203   : > { %v2921_v12 = vpop.f32.mrf.mxu0  ;;  %7751 = vmatmul.mubr.msk.f32.vlgmr.msra.gmra.mxu1 %vm3143_vm3, %v3235_v60  ;;  %7804 = vmatmul.mubr.msk.f32.gmra.mxu0 %vm3143_vm3, %v3235_v60  ;;  %v1198_v22 = vadd.f32 %v11633_v36, %v9836_v30  ;;  %v2125_v52 = vadd.f32 %v11635_v51, %v11634_v28  ;;  %v2516_v16 = vadd.f32 %v11636_v25, %v2122_v37  ;;  %v9963_v60 = vpop.f32.mrf.mxu1  ;;  %v11642_v37 = vld [vmem:[#allocation23_spill] sm:$0xff] }
 0x204   : > { %3207 = vst.msk [vmem:[#allocation3 + $0x69] sm:$0xff] %vm3143_vm3, %v3118_v43  ;;  %v3117_v13 = vmax.f32 %v3085_v33, 0.0  ;;  %v3088_v24 = vadd.f32 %v9823_v40, %v3049_v9  ;;  %v3048_v29 = vadd.f32 %v2921_v12, %v2780_v44  ;;  %7849 = vmatpush3.msra.mxu1 %v11630_v7  ;;  %v1858_v44 = vadd.f32 %v11639_v6, %v1590_v3  ;;  %v11643_v32 = vld [vmem:[#allocation27_spill] sm:$0xff]  ;;  %v11645_v12 = vld [vmem:[#allocation45_spill] sm:$0xff]  ;;  %v11646_v7 = vld [vmem:[#allocation86_spill] sm:$0xff] }
 0x205   : > { %v7717_v0 = vpop.f32.mrf.mxu0  ;;  %v9948_v59 = vld [vmem:[#allocation3 + $0x30] sm:$0xff]  ;;  %v9950_v26 = vld [vmem:[#allocation3 + $0x38] sm:$0xff]  ;;  %7948 = vmatprep.subr.mxu1 %v9928_v1  ;;  %v2785_v41 = vadd.f32 %v11640_v2, %v2517_v4  ;;  %v2519_v43 = vadd.f32 %v11641_v17, %v2125_v52  ;;  %v1592_v45 = vadd.f32 %v11642_v37, %v1198_v22  ;;  %v1200_v61 = vadd.f32 %v11643_v32, %v9847_v8  ;;  %v11644_v4 = vld [vmem:[#allocation50_spill] sm:$0xff]  ;;  %v9992_v25 = vpop.f32.mrf.mxu1 }
 0x206   : > { %3206 = vst.msk [vmem:[#allocation3 + $0x61] sm:$0xff] %vm3143_vm3, %v3117_v13  ;;  %v3120_v14 = vmax.f32 %v3088_v24, 0.0  ;;  %v3087_v55 = vadd.f32 %v9823_v40, %v3048_v29  ;;  %v3051_v30 = vadd.f32 %v7717_v0, %v2783_v38  ;;  %7753 = vmatprep.mubr.msk.f32.mxu1 %vm3143_vm3, %v9948_v59  ;;  %7806 = vmatprep.mubr.msk.f32.mxu0 %vm3143_vm3, %v9948_v59  ;;  %v11648_v22 = vld [vmem:[#allocation55_spill] sm:$0xff]  ;;  %v11654_v2 = vld [vmem:[#allocation49_spill] sm:$0xff] }
 0x207   : > { %v2931_v50 = vpop.f32.mrf.mxu0  ;;  %7754 = vmatmul.mubr.msk.f32.gmra.mxu1 %vm3143_vm3, %v9950_v26  ;;  %7807 = vmatmul.mubr.msk.f32.gmra.mxu0 %vm3143_vm3, %v9950_v26  ;;  %v2127_v46 = vadd.f32 %v11645_v12, %v11644_v4  ;;  %v2784_v38 = vadd.f32 %v9778_v5, %v2516_v16  ;;  %v2518_v15 = vadd.f32 %v11646_v7, %v2124_v23  ;;  %v11647_v5 = vld [vmem:[#allocation48_spill] sm:$0xff]  ;;  %v11649_v51 = vld [vmem:[#allocation87_spill] sm:$0xff]  ;;  %v11652_v23 = vld [vmem:[#allocation29_spill] sm:$0xff] }
 0x208   : > { %3209 = vst.msk [vmem:[#allocation3 + $0x81] sm:$0xff] %vm3143_vm3, %v3120_v14  ;;  %v3119_v33 = vmax.f32 %v3087_v55, 0.0  ;;  %v3090_v9 = vadd.f32 %v9823_v40, %v3051_v30  ;;  %v3050_v34 = vadd.f32 %v2931_v50, %v2782_v31  ;;  %v2126_v8 = vadd.f32 %v11647_v5, %v1858_v44  ;;  %v11650_v0 = vld [vmem:[#allocation19_spill] sm:$0xff]  ;;  %v11651_v30 = vld [vmem:[#allocation26_spill] sm:$0xff]  ;;  %v11655_v50 = vld [vmem:[#allocation89_spill] sm:$0xff] }
 0x209   : > { %v7720_v13 = vpop.f32.mrf.mxu0  ;;  %v9978_v24 = vld [vmem:[#allocation3 + $0x48] sm:$0xff]  ;;  %v9980_v29 = vld [vmem:[#allocation3 + $0x50] sm:$0xff]  ;;  %v1860_v28 = vadd.f32 %v11648_v22, %v1592_v45  ;;  %v2521_v52 = vadd.f32 %v11649_v51, %v2127_v46  ;;  %v2787_v18 = vadd.f32 %v11650_v0, %v2519_v43  ;;  %v1594_v54 = vadd.f32 %v11651_v30, %v1200_v61  ;;  %v11653_v44 = vld [vmem:[#allocation54_spill] sm:$0xff] }
 0x20a   : > { %3208 = vst.msk [vmem:[#allocation3 + $0x79] sm:$0xff] %vm3143_vm3, %v3119_v33  ;;  %v3122_v63 = vmax.f32 %v3090_v9, 0.0  ;;  %v3089_v3 = vadd.f32 %v9823_v40, %v3050_v34  ;;  %v3053_v36 = vadd.f32 %v7720_v13, %v2785_v41  ;;  %7756 = vmatprep.mubr.msk.f32.mxu1 %vm3143_vm3, %v9978_v24  ;;  %7809 = vmatprep.mubr.msk.f32.mxu0 %vm3143_vm3, %v9978_v24  ;;  %v11657_v4 = vld [vmem:[#allocation59_spill] sm:$0xff]  ;;  %v11658_v13 = vld [vmem:[#allocation90_spill] sm:$0xff] }
 0x20b   : > { %v2941_v16 = vpop.f32.mrf.mxu0  ;;  %7757 = vmatmul.mubr.msk.f32.gmra.mxu1 %vm3143_vm3, %v9980_v29  ;;  %7810 = vmatmul.mubr.msk.f32.gmra.mxu0 %vm3143_vm3, %v9980_v29  ;;  %v1202_v6 = vadd.f32 %v11652_v23, %v9859_v39  ;;  %v2129_v41 = vadd.f32 %v11654_v2, %v11653_v44  ;;  %v2520_v17 = vadd.f32 %v11655_v50, %v2126_v8  ;;  %v11656_v39 = vld [vmem:[#allocation52_spill] sm:$0xff]  ;;  %v11661_v22 = vld [vmem:[#allocation58_spill] sm:$0xff]  ;;  %v11665_v23 = vld [vmem:[#allocation63_spill] sm:$0xff] }
 0x20c   : > { %3211 = vst.msk [vmem:[#allocation3 + $0x99] sm:$0xff] %vm3143_vm3, %v3122_v63  ;;  %v3121_v31 = vmax.f32 %v3089_v3, 0.0  ;;  %v3092_v14 = vadd.f32 %v9823_v40, %v3053_v36  ;;  %v3052_v55 = vadd.f32 %v2941_v16, %v2784_v38  ;;  %v2786_v34 = vadd.f32 %v9797_v20, %v2518_v15  ;;  %v10021_v38 = vpop.f32.mrf.mxu1  ;;  %v11659_v36 = vld [vmem:[#allocation28_spill] sm:$0xff]  ;;  %v11666_v44 = vld [vmem:[#allocation93_spill] sm:$0xff] }
 0x20d   : > { %v7723_v33 = vpop.f32.mrf.mxu0  ;;  %v10007_v9 = vld [vmem:[#allocation3 + $0x60] sm:$0xff]  ;;  %v10009_v43 = vld [vmem:[#allocation3 + $0x68] sm:$0xff]  ;;  %v2128_v61 = vadd.f32 %v11656_v39, %v1860_v28  ;;  %v1862_v12 = vadd.f32 %v11657_v4, %v1594_v54  ;;  %v2789_v46 = vadd.f32 %v9810_v47, %v2521_v52  ;;  %v2523_v7 = vadd.f32 %v11658_v13, %v2129_v41  ;;  %v11662_v28 = vld [vmem:[#allocation53_spill] sm:$0xff] }
 0x20e   : > { %3210 = vst.msk [vmem:[#allocation3 + $0x91] sm:$0xff] %vm3143_vm3, %v3121_v31  ;;  %v3124_v37 = vmax.f32 %v3092_v14, 0.0  ;;  %v3091_v45 = vadd.f32 %v9823_v40, %v3052_v55  ;;  %v3055_v32 = vadd.f32 %v7723_v33, %v2787_v18  ;;  %7759 = vmatprep.mubr.msk.f32.mxu1 %vm3143_vm3, %v10007_v9  ;;  %7812 = vmatprep.mubr.msk.f32.mxu0 %vm3143_vm3, %v10007_v9  ;;  %v11660_v47 = vld [vmem:[#allocation31_spill] sm:$0xff]  ;;  %v11663_v31 = vld [vmem:[#allocation92_spill] sm:$0xff]  ;;  %v10050_v41 = vpop.f32.mrf.mxu1  ;;  %v11668_v39 = vld [vmem:[#allocation33_spill] sm:$0xff] }
 0x20f   : > { %v2951_v20 = vpop.f32.mrf.mxu0  ;;  %7760 = vmatmul.mubr.msk.f32.gmra.mxu1 %vm3143_vm3, %v10009_v43  ;;  %7813 = vmatmul.mubr.msk.f32.gmra.mxu0 %vm3143_vm3, %v10009_v43  ;;  %v1596_v5 = vadd.f32 %v11659_v36, %v1202_v6  ;;  %v1204_v8 = vadd.f32 %v11660_v47, %v9871_v21  ;;  %v2131_v51 = vadd.f32 %v11662_v28, %v11661_v22  ;;  %v11669_v4 = vld [vmem:[#allocation62_spill] sm:$0xff] }
 0x210   : > { %3213 = vst.msk [vmem:[#allocation3 + $0xb1] sm:$0xff] %vm3143_vm3, %v3124_v37  ;;  %v3123_v15 = vmax.f32 %v3091_v45, 0.0  ;;  %v3094_v63 = vadd.f32 %v9823_v40, %v3055_v32  ;;  %v3054_v3 = vadd.f32 %v2951_v20, %v2786_v34  ;;  %v2788_v52 = vadd.f32 %v9830_v58, %v2520_v17  ;;  %v11664_v58 = vld [vmem:[#allocation56_spill] sm:$0xff]  ;;  %v11667_v45 = vld [vmem:[#allocation30_spill] sm:$0xff]  ;;  %v11671_v20 = vld [vmem:[#allocation95_spill] sm:$0xff] }
 0x211   : > { %v7726_v16 = vpop.f32.mrf.mxu0  ;;  %v10036_v0 = vld [vmem:[#allocation3 + $0x78] sm:$0xff]  ;;  %v10038_v18 = vld [vmem:[#allocation3 + $0x80] sm:$0xff]  ;;  %v2522_v14 = vadd.f32 %v11663_v31, %v2128_v61  ;;  %v2130_v21 = vadd.f32 %v11664_v58, %v1862_v12  ;;  %v1864_v6 = vadd.f32 %v11665_v23, %v1596_v5  ;;  %v2525_v2 = vadd.f32 %v11666_v44, %v2131_v51  ;;  %v10079_v51 = vpop.f32.mrf.mxu1 }
 0x212   : > { %3212 = vst.msk [vmem:[#allocation3 + $0xa9] sm:$0xff] %vm3143_vm3, %v3123_v15  ;;  %v3126_v55 = vmax.f32 %v3094_v63, 0.0  ;;  %v3093_v30 = vadd.f32 %v9823_v40, %v3054_v3  ;;  %v3057_v54 = vadd.f32 %v7726_v16, %v2789_v46  ;;  %7762 = vmatprep.mubr.msk.f32.mxu1 %vm3143_vm3, %v10036_v0  ;;  %7815 = vmatprep.mubr.msk.f32.mxu0 %vm3143_vm3, %v10036_v0  ;;  %v11670_v12 = vld [vmem:[#allocation57_spill] sm:$0xff] }
 0x213   : > { %v2961_v50 = vpop.f32.mrf.mxu0  ;;  %7763 = vmatmul.mubr.msk.f32.gmra.mxu1 %vm3143_vm3, %v10038_v18  ;;  %7816 = vmatmul.mubr.msk.f32.gmra.mxu0 %vm3143_vm3, %v10038_v18  ;;  %v2791_v17 = vadd.f32 %v9852_v57, %v2523_v7  ;;  %v1598_v32 = vadd.f32 %v11667_v45, %v1204_v8  ;;  %v1206_v61 = vadd.f32 %v11668_v39, %v9888_v10  ;;  %v11672_v10 = vld [vmem:[#allocation60_spill] sm:$0xff]  ;;  %v11673_v8 = vld [vmem:[#allocation67_spill] sm:$0xff]  ;;  %v11678_v23 = vld [vmem:[#allocation61_spill] sm:$0xff] }
 0x214   : > { %3215 = vst.msk [vmem:[#allocation3 + $0xc9] sm:$0xff] %vm3143_vm3, %v3126_v55  ;;  %v3125_v33 = vmax.f32 %v3093_v30, 0.0  ;;  %v3096_v34 = vadd.f32 %v9823_v40, %v3057_v54  ;;  %v3056_v37 = vadd.f32 %v2961_v50, %v2788_v52  ;;  %v2133_v46 = vadd.f32 %v11670_v12, %v11669_v4  ;;  %v11674_v52 = vld [vmem:[#allocation96_spill] sm:$0xff]  ;;  %v11681_v39 = vld [vmem:[#allocation71_spill] sm:$0xff] }
 0x215   : > { %v2524_v13 = vadd.f32 %v11671_v20, %v2130_v21  ;;  %v7729_v15 = vpop.f32.mrf.mxu0  ;;  %v10065_v63 = vld [vmem:[#allocation3 + $0x90] sm:$0xff]  ;;  %v10067_v57 = vld [vmem:[#allocation3 + $0x98] sm:$0xff]  ;;  %v2790_v7 = vadd.f32 %v9876_v48, %v2522_v14  ;;  %v2132_v47 = vadd.f32 %v11672_v10, %v1864_v6  ;;  %v1866_v22 = vadd.f32 %v11673_v8, %v1598_v32  ;;  %v11677_v21 = vld [vmem:[#allocation66_spill] sm:$0xff] }
 0x216   : > { %3214 = vst.msk [vmem:[#allocation3 + $0xc1] sm:$0xff] %vm3143_vm3, %v3125_v33  ;;  %v3128_v3 = vmax.f32 %v3096_v34, 0.0  ;;  %v3095_v36 = vadd.f32 %v9823_v40, %v3056_v37  ;;  %v3059_v5 = vadd.f32 %v7729_v15, %v2791_v17  ;;  %7765 = vmatprep.mubr.msk.f32.mxu1 %vm3143_vm3, %v10065_v63  ;;  %7818 = vmatprep.mubr.msk.f32.mxu0 %vm3143_vm3, %v10065_v63  ;;  %v11675_v30 = vld [vmem:[#allocation32_spill] sm:$0xff]  ;;  %v11679_v33 = vld [vmem:[#allocation98_spill] sm:$0xff]  ;;  %v11682_v4 = vld [vmem:[#allocation99_spill] sm:$0xff] }
 0x217   : > { %v2793_v28 = vadd.f32 %v9906_v11, %v2525_v2  ;;  %v2971_v48 = vpop.f32.mrf.mxu0  ;;  %7766 = vmatmul.mubr.msk.f32.gmra.mxu1 %vm3143_vm3, %v10067_v57  ;;  %7819 = vmatmul.mubr.msk.f32.gmra.mxu0 %vm3143_vm3, %v10067_v57  ;;  %v2527_v16 = vadd.f32 %v11674_v52, %v2133_v46  ;;  %v1600_v54 = vadd.f32 %v11675_v30, %v1206_v61  ;;  %v11676_v11 = vld [vmem:[#allocation15_spill] sm:$0xff]  ;;  %v10108_v46 = vpop.f32.mrf.mxu1  ;;  %v11684_v10 = vld [vmem:[#allocation36_spill] sm:$0xff]  ;;  %v11685_v8 = vld [vmem:[#allocation70_spill] sm:$0xff] }
 0x218   : > { %3217 = vst.msk [vmem:[#allocation3 + $0xe1] sm:$0xff] %vm3143_vm3, %v3128_v3  ;;  %v3127_v31 = vmax.f32 %v3095_v36, 0.0  ;;  %v3098_v14 = vadd.f32 %v9823_v40, %v3059_v5  ;;  %v3058_v55 = vadd.f32 %v2971_v48, %v2790_v7  ;;  %v1208_v58 = vadd.f32 %v11676_v11, %v9901_v49  ;;  %v11680_v49 = vld [vmem:[#allocation64_spill] sm:$0xff]  ;;  %v11683_v36 = vld [vmem:[#allocation34_spill] sm:$0xff] }
 0x219   : > { %v2135_v6 = vadd.f32 %v11678_v23, %v11677_v21  ;;  %v2792_v44 = vadd.f32 %v9933_v27, %v2524_v13  ;;  %v7732_v2 = vpop.f32.mrf.mxu0  ;;  %v10094_v50 = vld [vmem:[#allocation3 + $0xa8] sm:$0xff]  ;;  %v10096_v17 = vld [vmem:[#allocation3 + $0xb0] sm:$0xff]  ;;  %v2526_v34 = vadd.f32 %v11679_v33, %v2132_v47  ;;  %v2134_v27 = vadd.f32 %v11680_v49, %v1866_v22  ;;  %v11686_v22 = vld [vmem:[#allocation65_spill] sm:$0xff] }
 0x21a   : > { %3216 = vst.msk [vmem:[#allocation3 + $0xd9] sm:$0xff] %vm3143_vm3, %v3127_v31  ;;  %v3130_v37 = vmax.f32 %v3098_v14, 0.0  ;;  %v3097_v45 = vadd.f32 %v9823_v40, %v3058_v55  ;;  %v3061_v32 = vadd.f32 %v7732_v2, %v2793_v28  ;;  %7768 = vmatprep.mubr.msk.f32.mxu1 %vm3143_vm3, %v10094_v50  ;;  %7821 = vmatprep.mubr.msk.f32.mxu0 %vm3143_vm3, %v10094_v50  ;;  %v11687_v48 = vld [vmem:[#allocation100_spill] sm:$0xff]  ;;  %v11692_v49 = vld [vmem:[#allocation74_spill] sm:$0xff] }
 0x21b   : > { %v1868_v61 = vadd.f32 %v11681_v39, %v1600_v54  ;;  %v2529_v12 = vadd.f32 %v11682_v4, %v2135_v6  ;;  %v2981_v20 = vpop.f32.mrf.mxu0  ;;  %7769 = vmatmul.mubr.msk.f32.gmra.mxu1 %vm3143_vm3, %v10096_v17  ;;  %7822 = vmatmul.mubr.msk.f32.gmra.mxu0 %vm3143_vm3, %v10096_v17  ;;  %v2795_v13 = vadd.f32 %v9963_v60, %v2527_v16  ;;  %v7694_v6 = vpop.f32.mrf.mxu1 }
 0x21c   : > { %3219 = vst.msk [vmem:[#allocation3 + $0xf9] sm:$0xff] %vm3143_vm3, %v3130_v37  ;;  %v3129_v15 = vmax.f32 %v3097_v45, 0.0  ;;  %v3100_v7 = vadd.f32 %v9823_v40, %v3061_v32  ;;  %v3060_v3 = vadd.f32 %v2981_v20, %v2792_v44  ;;  %v1602_v5 = vadd.f32 %v11683_v36, %v1208_v58  ;;  %v11689_v58 = vld [vmem:[#allocation75_spill] sm:$0xff]  ;;  %v11690_v44 = vld [vmem:[#allocation101_spill] sm:$0xff]  ;;  %v11695_v36 = vld [vmem:[#allocation78_spill] sm:$0xff] }
 0x21d   : > { %v1210_v47 = vadd.f32 %v11684_v10, %v9913_v53  ;;  %v2137_v28 = vadd.f32 %v11686_v22, %v11685_v8  ;;  %v2528_v52 = vadd.f32 %v11687_v48, %v2134_v27  ;;  %v7735_v31 = vpop.f32.mrf.mxu0  ;;  %v10123_v14 = vld [vmem:[#allocation3 + $0xc0] sm:$0xff]  ;;  %v10125_v60 = vld [vmem:[#allocation3 + $0xc8] sm:$0xff]  ;;  %v2794_v16 = vadd.f32 %v9992_v25, %v2526_v34  ;;  %v11688_v53 = vld [vmem:[#allocation68_spill] sm:$0xff]  ;;  %v2753_v8 = vpop.f32.mrf.mxu1 }
 0x21e   : > { %3218 = vst.msk [vmem:[#allocation3 + $0xf1] sm:$0xff] %vm3143_vm3, %v3129_v15  ;;  %v3132_v55 = vmax.f32 %v3100_v7, 0.0  ;;  %v3099_v30 = vadd.f32 %v9823_v40, %v3060_v3  ;;  %v3063_v54 = vadd.f32 %v7735_v31, %v2795_v13  ;;  %7771 = vmatprep.mubr.msk.f32.mxu1 %vm3143_vm3, %v10123_v14  ;;  %7824 = vmatprep.mubr.msk.f32.mxu0 %vm3143_vm3, %v10123_v14  ;;  %v11691_v45 = vld [vmem:[#allocation35_spill] sm:$0xff]  ;;  %v11696_v10 = vld [vmem:[#allocation102_spill] sm:$0xff]  ;;  %v11697_v31 = vld [vmem:[#allocation77_spill] sm:$0xff] }
 0x21f   : > { %v2136_v11 = vadd.f32 %v11688_v53, %v1868_v61  ;;  %v1870_v21 = vadd.f32 %v11689_v58, %v1602_v5  ;;  %v2797_v23 = vadd.f32 %v10021_v38, %v2529_v12  ;;  %v2991_v25 = vpop.f32.mrf.mxu0  ;;  %7772 = vmatmul.mubr.msk.f32.gmra.mxu1 %vm3143_vm3, %v10125_v60  ;;  %7825 = vmatmul.mubr.msk.f32.gmra.mxu0 %vm3143_vm3, %v10125_v60  ;;  %v11693_v38 = vld [vmem:[#allocation69_spill] sm:$0xff] }
 0x220   : > { %v2531_v2 = vadd.f32 %v11690_v44, %v2137_v28  ;;  %3221 = vst.msk [vmem:[#allocation3 + $0x111] sm:$0xff] %vm3143_vm3, %v3132_v55  ;;  %v3131_v33 = vmax.f32 %v3099_v30, 0.0  ;;  %v3102_v34 = vadd.f32 %v9823_v40, %v3063_v54  ;;  %v3062_v37 = vadd.f32 %v2991_v25, %v2794_v16  ;;  %v11698_v16 = vld [vmem:[#allocation73_spill] sm:$0xff] }
 0x221   : > { %v1604_v32 = vadd.f32 %v11691_v45, %v1210_v47  ;;  %v2139_v27 = vadd.f32 %v11693_v38, %v11692_v49  ;;  %v2796_v39 = vadd.f32 %v10050_v41, %v2528_v52  ;;  %v7738_v61 = vpop.f32.mrf.mxu0  ;;  %v10148_v4 = vld [vmem:[#allocation3 + $0xd8] sm:$0xff]  ;;  %v10150_v12 = vld [vmem:[#allocation3 + $0xe0] sm:$0xff]  ;;  %v2530_v20 = vadd.f32 %v9788_v62, %v2136_v11  ;;  %v11694_v41 = vld [vmem:[#allocation72_spill] sm:$0xff] }
 0x222   : > { %3220 = vst.msk [vmem:[#allocation3 + $0x109] sm:$0xff] %vm3143_vm3, %v3131_v33  ;;  %v3134_v13 = vmax.f32 %v3102_v34, 0.0  ;;  %v3101_v15 = vadd.f32 %v9823_v40, %v3062_v37  ;;  %v3065_v7 = vadd.f32 %v7738_v61, %v2797_v23  ;;  %7774 = vmatprep.mubr.msk.f32.mxu1 %vm3143_vm3, %v10148_v4  ;;  %7827 = vmatprep.mubr.msk.f32.mxu0 %vm3143_vm3, %v10148_v4 }
 0x223   : > { %v2138_v3 = vadd.f32 %v11694_v41, %v1870_v21  ;;  %v1872_v5 = vadd.f32 %v11695_v36, %v1604_v32  ;;  %v2533_v47 = vadd.f32 %v11696_v10, %v2139_v27  ;;  %v3001_v62 = vpop.f32.mrf.mxu0  ;;  %7775 = vmatmul.mubr.msk.f32.gmra.mxu1 %vm3143_vm3, %v10150_v12  ;;  %7828 = vmatmul.mubr.msk.f32.gmra.mxu0 %vm3143_vm3, %v10150_v12 }
 0x224   : > { %v2799_v22 = vadd.f32 %v10079_v51, %v2531_v2  ;;  %3223 = vst.msk [vmem:[#allocation3 + $0x129] sm:$0xff] %vm3143_vm3, %v3134_v13  ;;  %v3133_v28 = vmax.f32 %v3101_v15, 0.0  ;;  %v3104_v48 = vadd.f32 %v9823_v40, %v3065_v7  ;;  %v3064_v52 = vadd.f32 %v3001_v62, %v2796_v39  ;;  %v7697_v2 = vpop.f32.mrf.mxu1 }
 0x225   : > { %v2141_v55 = vadd.f32 %v11698_v16, %v11697_v31  ;;  %v2532_v30 = vadd.f32 %v9799_v42, %v2138_v3  ;;  %v7741_v54 = vpop.f32.mrf.mxu0  ;;  %v10172_v53 = vld [vmem:[#allocation3 + $0xf0] sm:$0xff]  ;;  %v10174_v11 = vld [vmem:[#allocation3 + $0xf8] sm:$0xff]  ;;  %v2798_v58 = vadd.f32 %v10108_v46, %v2530_v20  ;;  %v2801_v44 = vadd.f32 %v7694_v6, %v2533_v47 }
 0x226   : > { %3222 = vst.msk [vmem:[#allocation3 + $0x121] sm:$0xff] %vm3143_vm3, %v3133_v28  ;;  %v3136_v51 = vmax.f32 %v3104_v48, 0.0  ;;  %v3103_v21 = vadd.f32 %v9823_v40, %v3064_v52  ;;  %v3067_v23 = vadd.f32 %v7741_v54, %v2799_v22  ;;  %7777 = vmatprep.mubr.msk.f32.mxu1 %vm3143_vm3, %v10172_v53  ;;  %7830 = vmatprep.mubr.msk.f32.mxu0 %vm3143_vm3, %v10172_v53  ;;  %v11699_v42 = vld [vmem:[#allocation76_spill] sm:$0xff]  ;;  %v2763_v20 = vpop.f32.mrf.mxu1 }
 0x227   : > { %v2140_v25 = vadd.f32 %v11699_v42, %v1872_v5  ;;  %v3011_v33 = vpop.f32.mrf.mxu0  ;;  %7778 = vmatmul.mubr.msk.f32.gmra.mxu1 %vm3143_vm3, %v10174_v11  ;;  %7831 = vmatmul.mubr.msk.f32.gmra.mxu0 %vm3143_vm3, %v10174_v11  ;;  %v2535_v46 = vadd.f32 %v9805_v19, %v2141_v55  ;;  %v2800_v32 = vadd.f32 %v2753_v8, %v2532_v30  ;;  %v4089_v42 = vld [vmem:[#allocation3 + $0x9] sm:$0xff] }
 0x228   : > { %3225 = vst.msk [vmem:[#allocation3 + $0x141] sm:$0xff] %vm3143_vm3, %v3136_v51  ;;  %v3135_v34 = vmax.f32 %v3103_v21, 0.0  ;;  %v3106_v37 = vadd.f32 %v9823_v40, %v3067_v23  ;;  %v3066_v45 = vadd.f32 %v3011_v33, %v2798_v58  ;;  %v4088_v23 = vld [vmem:[#allocation3 + $0x1] sm:$0xff]  ;;  %v10279_v33 = vld [vmem:[%s11487_s3 + $0x28] sm:$0xff] }
 0x229   : > { %v7744_v49 = vpop.f32.mrf.mxu0  ;;  %v10191_v38 = vld [vmem:[#allocation3 + $0x108] sm:$0xff]  ;;  %v10193_v6 = vld [vmem:[#allocation3 + $0x110] sm:$0xff]  ;;  %v2534_v27 = vadd.f32 %v9812_v35, %v2140_v25  ;;  %v2803_v35 = vadd.f32 %v7697_v2, %v2535_v46  ;;  %v10274_v2 = vld [vmem:[#allocation3 + $0x19] sm:$0xff] }
 0x22a   : > { %3224 = vst.msk [vmem:[#allocation3 + $0x139] sm:$0xff] %vm3143_vm3, %v3135_v34  ;;  %v3138_v39 = vmax.f32 %v3106_v37, 0.0  ;;  %v3105_v61 = vadd.f32 %v9823_v40, %v3066_v45  ;;  %v3069_v19 = vadd.f32 %v7744_v49, %v2801_v44  ;;  %7780 = vmatprep.mubr.msk.f32.mxu1 %vm3143_vm3, %v10191_v38  ;;  %7833 = vmatprep.mubr.msk.f32.mxu0 %vm3143_vm3, %v10191_v38  ;;  %v10286_v46 = vld [vmem:[#allocation3 + $0x21] sm:$0xff] }
 0x22b   : > { %v3021_v13 = vpop.f32.mrf.mxu0  ;;  %7781 = vmatmul.mubr.msk.f32.gmra.mxu1 %vm3143_vm3, %v10193_v6  ;;  %7834 = vmatmul.mubr.msk.f32.gmra.mxu0 %vm3143_vm3, %v10193_v6  ;;  %v2802_v10 = vadd.f32 %v2763_v20, %v2534_v27  ;;  %v10291_v34 = vld [vmem:[%s11487_s3 + $0x10] sm:$0xff]  ;;  %v10426_v45 = vld [vmem:[#allocation3 + $0x129] sm:$0xff] }
 0x22c   : > { %3227 = vst.msk [vmem:[#allocation3 + $0x159] sm:$0xff] %vm3143_vm3, %v3138_v39  ;;  %v3137_v15 = vmax.f32 %v3105_v61, 0.0  ;;  %v3108_v7 = vadd.f32 %v9823_v40, %v3069_v19  ;;  %v3068_v41 = vadd.f32 %v3021_v13, %v2800_v32  ;;  %v3266_v39 = vld [vmem:[#allocation3 + $0x198] sm:$0xff]  ;;  %v3267_v19 = vld [vmem:[#allocation3 + $0x1a0] sm:$0xff]  ;;  %v10482_v20 = vld [vmem:[%s11487_s3 + $0x40] sm:$0xff] }
 0x22d   : > { %v7747_v3 = vpop.f32.mrf.mxu0  ;;  %v10208_v36 = vld [vmem:[#allocation3 + $0x120] sm:$0xff]  ;;  %v10210_v5 = vld [vmem:[#allocation3 + $0x128] sm:$0xff] }
 0x22e   : > { %3226 = vst.msk [vmem:[#allocation3 + $0x151] sm:$0xff] %vm3143_vm3, %v3137_v15  ;;  %v3140_v47 = vmax.f32 %v3108_v7, 0.0  ;;  %v3107_v8 = vadd.f32 %v9823_v40, %v3068_v41  ;;  %v3071_v62 = vadd.f32 %v7747_v3, %v2803_v35  ;;  %7783 = vmatprep.mubr.msk.f32.mxu1 %vm3143_vm3, %v10208_v36  ;;  %7836 = vmatprep.mubr.msk.f32.mxu0 %vm3143_vm3, %v10208_v36  ;;  %v10420_v37 = vld [vmem:[#allocation3 + $0x121] sm:$0xff]  ;;  %v4122_v35 = vld [vmem:[#allocation3 + $0x199] sm:$0xff] }
 0x22f   : > { %v3031_v22 = vpop.f32.mrf.mxu0  ;;  %7784 = vmatmul.mubr.msk.f32.gmra.mxu1 %vm3143_vm3, %v10210_v5  ;;  %7837 = vmatmul.mubr.msk.f32.gmra.mxu0 %vm3143_vm3, %v10210_v5  ;;  %v10438_v49 = vld [vmem:[#allocation3 + $0x141] sm:$0xff] }
 0x230   : > { %3229 = vst.msk [vmem:[#allocation3 + $0x171] sm:$0xff] %vm3143_vm3, %v3140_v47  ;;  %v3139_v28 = vmax.f32 %v3107_v8, 0.0  ;;  %v3110_v48 = vadd.f32 %v9823_v40, %v3071_v62  ;;  %v3070_v52 = vadd.f32 %v3031_v22, %v2802_v10  ;;  %v4123_v7 = vld [vmem:[#allocation3 + $0x1a1] sm:$0xff]  ;;  %v10604_v10 = vld [vmem:[#allocation3 + $0x32] sm:$0xff]  ;;  %v5010_v8 = vld [vmem:[#allocation3 + $0xa] sm:$0xff] }
 0x231   : > { %v10224_v31 = vld [vmem:[#allocation3 + $0x138] sm:$0xff]  ;;  %v10226_v16 = vld [vmem:[#allocation3 + $0x140] sm:$0xff] }
 0x232   : > { %3228 = vst.msk [vmem:[#allocation3 + $0x169] sm:$0xff] %vm3143_vm3, %v3139_v28  ;;  %v3142_v55 = vmax.f32 %v3110_v48, 0.0  ;;  %v3109_v30 = vadd.f32 %v9823_v40, %v3070_v52  ;;  %7786 = vmatprep.mubr.msk.f32.mxu1 %vm3143_vm3, %v10224_v31  ;;  %7839 = vmatprep.mubr.msk.f32.mxu0 %vm3143_vm3, %v10224_v31  ;;  %v10432_v32 = vld [vmem:[#allocation3 + $0x139] sm:$0xff]  ;;  %v10618_v48 = vld [vmem:[#allocation3 + $0x4a] sm:$0xff] }
 0x233   : > { %7787 = vmatmul.mubr.msk.f32.gmra.mxu1 %vm3143_vm3, %v10226_v16  ;;  %7840 = vmatmul.mubr.msk.f32.gmra.mxu0 %vm3143_vm3, %v10226_v16  ;;  %v5011_v41 = vld [vmem:[#allocation3 + $0x1a] sm:$0xff] }
 0x234   : > { %3231 = vst.msk [vmem:[#allocation3 + $0x189] sm:$0xff] %vm3143_vm3, %v3142_v55  ;;  %v3141_v54 = vmax.f32 %v3109_v30, 0.0  ;;  %v10609_v62 = vld [vmem:[#allocation3 + $0x3a] sm:$0xff]  ;;  %v10624_v55 = vld [vmem:[#allocation3 + $0x52] sm:$0xff] }
 0x235   : > { %v10239_v58 = vld [vmem:[#allocation3 + $0x150] sm:$0xff]  ;;  %v10241_v51 = vld [vmem:[#allocation3 + $0x158] sm:$0xff] }
 0x236   : > { %3230 = vst.msk [vmem:[#allocation3 + $0x181] sm:$0xff] %vm3143_vm3, %v3141_v54  ;;  %7789 = vmatprep.mubr.msk.f32.mxu1 %vm3143_vm3, %v10239_v58  ;;  %7842 = vmatprep.mubr.msk.f32.mxu0 %vm3143_vm3, %v10239_v58 }
 0x237   : > { %7790 = vmatmul.mubr.msk.f32.gmra.mxu1 %vm3143_vm3, %v10241_v51  ;;  %7843 = vmatmul.mubr.msk.f32.gmra.mxu0 %vm3143_vm3, %v10241_v51  ;;  %v10462_v61 = vld [vmem:[#allocation3 + $0x171] sm:$0xff] }
 0x239   : > { %v10252_v40 = vld [vmem:[#allocation3 + $0x168] sm:$0xff]  ;;  %v10254_v21 = vld [vmem:[#allocation3 + $0x170] sm:$0xff] }
 0x23a   : > { %7792 = vmatprep.mubr.msk.f32.mxu1 %vm3143_vm3, %v10252_v40  ;;  %7845 = vmatprep.mubr.msk.f32.mxu0 %vm3143_vm3, %v10252_v40  ;;  %v10456_v27 = vld [vmem:[#allocation3 + $0x169] sm:$0xff] }
 0x23b   : > { %7793 = vmatmul.mubr.msk.f32.gmra.mxu1 %vm3143_vm3, %v10254_v21  ;;  %7846 = vmatmul.mubr.msk.f32.gmra.mxu0 %vm3143_vm3, %v10254_v21  ;;  %v4121_v15 = vld [vmem:[#allocation3 + $0x189] sm:$0xff]  ;;  %v10598_v3 = vpop.f32.mrf.mxu0 }
 0x23c   : > { %7900 = vmatprep.mubr.msk.f32.mxu0 %vm3143_vm3, %v4088_v23 }
 0x23d   : > { %v10265_v25 = vld [vmem:[#allocation3 + $0x180] sm:$0xff]  ;;  %v10267_v44 = vld [vmem:[#allocation3 + $0x188] sm:$0xff]  ;;  %v3664_v47 = vpop.f32.mrf.mxu0 }
 0x23e   : > { %7795 = vmatprep.mubr.msk.f32.mxu1 %vm3143_vm3, %v10265_v25  ;;  %v4120_v13 = vld [vmem:[#allocation3 + $0x181] sm:$0xff] }
 0x23f   : > { %7796 = vmatmul.mubr.msk.f32.gmra.mxu1 %vm3143_vm3, %v10267_v44  ;;  %7901 = vmatmul.mubr.msk.f32.vlgmr.msra.gmra.mxu0 %vm3143_vm3, %v4089_v42  ;;  %v10639_v42 = vld [vmem:[#allocation3 + $0x6a] sm:$0xff] }
 0x240   : > { %7850 = vmatprep.mubr.msk.f32.mxu1 %vm3143_vm3, %v9948_v59  ;;  %7903 = vmatprep.mubr.msk.f32.mxu0 %vm3143_vm3, %v10274_v2  ;;  %v10306_v59 = vld [vmem:[#allocation3 + $0x39] sm:$0xff] }
 0x241   : > { %7999 = vmatpush3.msra.mxu0 %v9884_v56  ;;  %v10301_v56 = vld [vmem:[#allocation3 + $0x31] sm:$0xff] }
 0x242   : > { %8098 = vmatprep.subr.mxu0 %v10279_v33 }
 0x243   : > { %7851 = vmatmul.mubr.msk.f32.vlgmr.msra.gmra.mxu1 %vm3143_vm3, %v9950_v26  ;;  %7904 = vmatmul.mubr.msk.f32.gmra.mxu0 %vm3143_vm3, %v10286_v46  ;;  %v10312_v26 = vld [vmem:[#allocation3 + $0x49] sm:$0xff] }
 0x244   : > { %7949 = vmatpush3.msra.mxu1 %v9928_v1  ;;  %7853 = vmatprep.mubr.msk.f32.mxu1 %vm3143_vm3, %v9978_v24  ;;  %v10318_v1 = vld [vmem:[#allocation3 + $0x51] sm:$0xff]  ;;  %v10324_v24 = vld [vmem:[#allocation3 + $0x61] sm:$0xff] }
 0x245   : > { %7906 = vmatprep.mubr.msk.f32.mxu0 %vm3143_vm3, %v10301_v56  ;;  %8048 = vmatprep.subr.mxu1 %v10291_v34 }
 0x247   : > { %7854 = vmatmul.mubr.msk.f32.gmra.mxu1 %vm3143_vm3, %v9980_v29  ;;  %7907 = vmatmul.mubr.msk.f32.gmra.mxu0 %vm3143_vm3, %v10306_v59  ;;  %v10330_v29 = vld [vmem:[#allocation3 + $0x69] sm:$0xff] }
 0x248   : > { %7856 = vmatprep.mubr.msk.f32.mxu1 %vm3143_vm3, %v10007_v9  ;;  %7909 = vmatprep.mubr.msk.f32.mxu0 %vm3143_vm3, %v10312_v26  ;;  %v10336_v9 = vld [vmem:[#allocation3 + $0x79] sm:$0xff] }
 0x24b   : > { %7857 = vmatmul.mubr.msk.f32.gmra.mxu1 %vm3143_vm3, %v10009_v43  ;;  %7910 = vmatmul.mubr.msk.f32.gmra.mxu0 %vm3143_vm3, %v10318_v1  ;;  %v10342_v43 = vld [vmem:[#allocation3 + $0x81] sm:$0xff] }
 0x24c   : > { %7859 = vmatprep.mubr.msk.f32.mxu1 %vm3143_vm3, %v10036_v0  ;;  %7912 = vmatprep.mubr.msk.f32.mxu0 %vm3143_vm3, %v10324_v24  ;;  %v10348_v0 = vld [vmem:[#allocation3 + $0x91] sm:$0xff] }
 0x24f   : > { %7860 = vmatmul.mubr.msk.f32.gmra.mxu1 %vm3143_vm3, %v10038_v18  ;;  %7913 = vmatmul.mubr.msk.f32.gmra.mxu0 %vm3143_vm3, %v10330_v29  ;;  %v10354_v18 = vld [vmem:[#allocation3 + $0x99] sm:$0xff] }
 0x250   : > { %7862 = vmatprep.mubr.msk.f32.mxu1 %vm3143_vm3, %v10065_v63  ;;  %7915 = vmatprep.mubr.msk.f32.mxu0 %vm3143_vm3, %v10336_v9  ;;  %v10360_v63 = vld [vmem:[#allocation3 + $0xa9] sm:$0xff] }
 0x253   : > { %7863 = vmatmul.mubr.msk.f32.gmra.mxu1 %vm3143_vm3, %v10067_v57  ;;  %7916 = vmatmul.mubr.msk.f32.gmra.mxu0 %vm3143_vm3, %v10342_v43  ;;  %v10366_v57 = vld [vmem:[#allocation3 + $0xb1] sm:$0xff] }
 0x254   : > { %7865 = vmatprep.mubr.msk.f32.mxu1 %vm3143_vm3, %v10094_v50  ;;  %7918 = vmatprep.mubr.msk.f32.mxu0 %vm3143_vm3, %v10348_v0  ;;  %v10372_v50 = vld [vmem:[#allocation3 + $0xc1] sm:$0xff] }
 0x257   : > { %7866 = vmatmul.mubr.msk.f32.gmra.mxu1 %vm3143_vm3, %v10096_v17  ;;  %7919 = vmatmul.mubr.msk.f32.gmra.mxu0 %vm3143_vm3, %v10354_v18  ;;  %v10378_v17 = vld [vmem:[#allocation3 + $0xc9] sm:$0xff] }
 0x258   : > { %7868 = vmatprep.mubr.msk.f32.mxu1 %vm3143_vm3, %v10123_v14  ;;  %7921 = vmatprep.mubr.msk.f32.mxu0 %vm3143_vm3, %v10360_v63  ;;  %v10384_v14 = vld [vmem:[#allocation3 + $0xd9] sm:$0xff] }
 0x25b   : > { %7869 = vmatmul.mubr.msk.f32.gmra.mxu1 %vm3143_vm3, %v10125_v60  ;;  %7922 = vmatmul.mubr.msk.f32.gmra.mxu0 %vm3143_vm3, %v10366_v57  ;;  %v10390_v60 = vld [vmem:[#allocation3 + $0xe1] sm:$0xff] }
 0x25c   : > { %7871 = vmatprep.mubr.msk.f32.mxu1 %vm3143_vm3, %v10148_v4  ;;  %7924 = vmatprep.mubr.msk.f32.mxu0 %vm3143_vm3, %v10372_v50  ;;  %v10396_v4 = vld [vmem:[#allocation3 + $0xf1] sm:$0xff] }
 0x25f   : > { %7872 = vmatmul.mubr.msk.f32.gmra.mxu1 %vm3143_vm3, %v10150_v12  ;;  %7925 = vmatmul.mubr.msk.f32.gmra.mxu0 %vm3143_vm3, %v10378_v17  ;;  %v10402_v12 = vld [vmem:[#allocation3 + $0xf9] sm:$0xff] }
 0x260   : > { %7874 = vmatprep.mubr.msk.f32.mxu1 %vm3143_vm3, %v10172_v53  ;;  %7927 = vmatprep.mubr.msk.f32.mxu0 %vm3143_vm3, %v10384_v14  ;;  %v10408_v53 = vld [vmem:[#allocation3 + $0x109] sm:$0xff] }
 0x263   : > { %7875 = vmatmul.mubr.msk.f32.gmra.mxu1 %vm3143_vm3, %v10174_v11  ;;  %7928 = vmatmul.mubr.msk.f32.gmra.mxu0 %vm3143_vm3, %v10390_v60  ;;  %v10414_v11 = vld [vmem:[#allocation3 + $0x111] sm:$0xff] }
 0x264   : > { %7877 = vmatprep.mubr.msk.f32.mxu1 %vm3143_vm3, %v10191_v38  ;;  %7930 = vmatprep.mubr.msk.f32.mxu0 %vm3143_vm3, %v10396_v4  ;;  %v10444_v38 = vld [vmem:[#allocation3 + $0x151] sm:$0xff] }
 0x267   : > { %7878 = vmatmul.mubr.msk.f32.gmra.mxu1 %vm3143_vm3, %v10193_v6  ;;  %7931 = vmatmul.mubr.msk.f32.gmra.mxu0 %vm3143_vm3, %v10402_v12  ;;  %v10450_v6 = vld [vmem:[#allocation3 + $0x159] sm:$0xff] }
 0x268   : > { %7880 = vmatprep.mubr.msk.f32.mxu1 %vm3143_vm3, %v10208_v36  ;;  %7933 = vmatprep.mubr.msk.f32.mxu0 %vm3143_vm3, %v10408_v53  ;;  %v5009_v36 = vld [vmem:[#allocation3 + $0x2] sm:$0xff] }
 0x26b   : > { %7881 = vmatmul.mubr.msk.f32.gmra.mxu1 %vm3143_vm3, %v10210_v5  ;;  %7934 = vmatmul.mubr.msk.f32.gmra.mxu0 %vm3143_vm3, %v10414_v11  ;;  %v5012_v5 = vld [vmem:[#allocation3 + $0x22] sm:$0xff] }
 0x26c   : > { %7883 = vmatprep.mubr.msk.f32.mxu1 %vm3143_vm3, %v10224_v31  ;;  %7936 = vmatprep.mubr.msk.f32.mxu0 %vm3143_vm3, %v10420_v37 }
 0x26f   : > { %7884 = vmatmul.mubr.msk.f32.gmra.mxu1 %vm3143_vm3, %v10226_v16  ;;  %7937 = vmatmul.mubr.msk.f32.gmra.mxu0 %vm3143_vm3, %v10426_v45 }
 0x270   : > { %7886 = vmatprep.mubr.msk.f32.mxu1 %vm3143_vm3, %v10239_v58  ;;  %7939 = vmatprep.mubr.msk.f32.mxu0 %vm3143_vm3, %v10432_v32  ;;  %v10629_v58 = vld [vmem:[#allocation3 + $0x62] sm:$0xff] }
 0x273   : > { %7887 = vmatmul.mubr.msk.f32.gmra.mxu1 %vm3143_vm3, %v10241_v51  ;;  %7940 = vmatmul.mubr.msk.f32.gmra.mxu0 %vm3143_vm3, %v10438_v49 }
 0x274   : > { %7889 = vmatprep.mubr.msk.f32.mxu1 %vm3143_vm3, %v10252_v40  ;;  %7942 = vmatprep.mubr.msk.f32.mxu0 %vm3143_vm3, %v10444_v38 }
 0x277   : > { %7890 = vmatmul.mubr.msk.f32.gmra.mxu1 %vm3143_vm3, %v10254_v21  ;;  %7943 = vmatmul.mubr.msk.f32.gmra.mxu0 %vm3143_vm3, %v10450_v6 }
 0x278   : > { %7892 = vmatprep.mubr.msk.f32.mxu1 %vm3143_vm3, %v10265_v25  ;;  %7945 = vmatprep.mubr.msk.f32.mxu0 %vm3143_vm3, %v10456_v27 }
 0x27b   : > { %7893 = vmatmul.mubr.msk.f32.gmra.mxu1 %vm3143_vm3, %v10267_v44  ;;  %7946 = vmatmul.mubr.msk.f32.gmra.mxu0 %vm3143_vm3, %v10462_v61 }
 0x27c   : > { %8000 = vmatprep.mubr.msk.f32.mxu0 %vm3143_vm3, %v10301_v56  ;;  %7895 = vmatprep.mubr.msk.f32.mxu1 %vm3143_vm3, %v3266_v39 }
 0x27f   : > { %7896 = vmatmul.mubr.msk.f32.gmra.mxu1 %vm3143_vm3, %v3267_v19  ;;  %8001 = vmatmul.mubr.msk.f32.vlgmr.msra.gmra.mxu0 %vm3143_vm3, %v10306_v59 }
 0x280   : > { %7950 = vmatprep.mubr.msk.f32.mxu1 %vm3143_vm3, %v10274_v2  ;;  %8003 = vmatprep.mubr.msk.f32.mxu0 %vm3143_vm3, %v10312_v26  ;;  %v10645_v2 = vld [vmem:[#allocation3 + $0x7a] sm:$0xff] }
 0x281   : > { %8099 = vmatpush3.msra.mxu0 %v10279_v33 }
 0x283   : > { %7951 = vmatmul.mubr.msk.f32.vlgmr.msra.gmra.mxu1 %vm3143_vm3, %v10286_v46  ;;  %8004 = vmatmul.mubr.msk.f32.gmra.mxu0 %vm3143_vm3, %v10318_v1 }
 0x284   : > { %8049 = vmatpush3.msra.mxu1 %v10291_v34  ;;  %7953 = vmatprep.mubr.msk.f32.mxu1 %vm3143_vm3, %v10301_v56 }
 0x285   : > { %8006 = vmatprep.mubr.msk.f32.mxu0 %vm3143_vm3, %v10324_v24  ;;  %8148 = vmatprep.subr.mxu1 %v10482_v20 }
 0x287   : > { %7954 = vmatmul.mubr.msk.f32.gmra.mxu1 %vm3143_vm3, %v10306_v59  ;;  %8007 = vmatmul.mubr.msk.f32.gmra.mxu0 %vm3143_vm3, %v10330_v29  ;;  %v10655_v59 = vld [vmem:[#allocation3 + $0x82] sm:$0xff] }
 0x288   : > { %7956 = vmatprep.mubr.msk.f32.mxu1 %vm3143_vm3, %v10312_v26  ;;  %8009 = vmatprep.mubr.msk.f32.mxu0 %vm3143_vm3, %v10336_v9 }
 0x28b   : > { %7957 = vmatmul.mubr.msk.f32.gmra.mxu1 %vm3143_vm3, %v10318_v1  ;;  %8010 = vmatmul.mubr.msk.f32.gmra.mxu0 %vm3143_vm3, %v10342_v43 }
 0x28c   : > { %7959 = vmatprep.mubr.msk.f32.mxu1 %vm3143_vm3, %v10324_v24  ;;  %8012 = vmatprep.mubr.msk.f32.mxu0 %vm3143_vm3, %v10348_v0  ;;  %v10661_v24 = vld [vmem:[#allocation3 + $0x92] sm:$0xff] }
 0x28f   : > { %7960 = vmatmul.mubr.msk.f32.gmra.mxu1 %vm3143_vm3, %v10330_v29  ;;  %8013 = vmatmul.mubr.msk.f32.gmra.mxu0 %vm3143_vm3, %v10354_v18 }
 0x290   : > { %7962 = vmatprep.mubr.msk.f32.mxu1 %vm3143_vm3, %v10336_v9  ;;  %8015 = vmatprep.mubr.msk.f32.mxu0 %vm3143_vm3, %v10360_v63 }
 0x293   : > { %7963 = vmatmul.mubr.msk.f32.gmra.mxu1 %vm3143_vm3, %v10342_v43  ;;  %8016 = vmatmul.mubr.msk.f32.gmra.mxu0 %vm3143_vm3, %v10366_v57 }
 0x294   : > { %7965 = vmatprep.mubr.msk.f32.mxu1 %vm3143_vm3, %v10348_v0  ;;  %8018 = vmatprep.mubr.msk.f32.mxu0 %vm3143_vm3, %v10372_v50 }
 0x297   : > { %7966 = vmatmul.mubr.msk.f32.gmra.mxu1 %vm3143_vm3, %v10354_v18  ;;  %8019 = vmatmul.mubr.msk.f32.gmra.mxu0 %vm3143_vm3, %v10378_v17  ;;  %v10671_v18 = vld [vmem:[#allocation3 + $0x9a] sm:$0xff] }
 0x298   : > { %7968 = vmatprep.mubr.msk.f32.mxu1 %vm3143_vm3, %v10360_v63  ;;  %8021 = vmatprep.mubr.msk.f32.mxu0 %vm3143_vm3, %v10384_v14 }
 0x29b   : > { %7969 = vmatmul.mubr.msk.f32.gmra.mxu1 %vm3143_vm3, %v10366_v57  ;;  %8022 = vmatmul.mubr.msk.f32.gmra.mxu0 %vm3143_vm3, %v10390_v60 }
 0x29c   : > { %7971 = vmatprep.mubr.msk.f32.mxu1 %vm3143_vm3, %v10372_v50  ;;  %8024 = vmatprep.mubr.msk.f32.mxu0 %vm3143_vm3, %v10396_v4  ;;  %v10677_v50 = vld [vmem:[#allocation3 + $0xaa] sm:$0xff] }
 0x29f   : > { %7972 = vmatmul.mubr.msk.f32.gmra.mxu1 %vm3143_vm3, %v10378_v17  ;;  %8025 = vmatmul.mubr.msk.f32.gmra.mxu0 %vm3143_vm3, %v10402_v12 }
 0x2a0   : > { %7974 = vmatprep.mubr.msk.f32.mxu1 %vm3143_vm3, %v10384_v14  ;;  %8027 = vmatprep.mubr.msk.f32.mxu0 %vm3143_vm3, %v10408_v53 }
 0x2a3   : > { %7975 = vmatmul.mubr.msk.f32.gmra.mxu1 %vm3143_vm3, %v10390_v60  ;;  %8028 = vmatmul.mubr.msk.f32.gmra.mxu0 %vm3143_vm3, %v10414_v11 }
 0x2a4   : > { %7977 = vmatprep.mubr.msk.f32.mxu1 %vm3143_vm3, %v10396_v4  ;;  %8030 = vmatprep.mubr.msk.f32.mxu0 %vm3143_vm3, %v10420_v37 }
 0x2a7   : > { %7978 = vmatmul.mubr.msk.f32.gmra.mxu1 %vm3143_vm3, %v10402_v12  ;;  %8031 = vmatmul.mubr.msk.f32.gmra.mxu0 %vm3143_vm3, %v10426_v45  ;;  %v10687_v12 = vld [vmem:[#allocation3 + $0xb2] sm:$0xff] }
 0x2a8   : > { %7980 = vmatprep.mubr.msk.f32.mxu1 %vm3143_vm3, %v10408_v53  ;;  %8033 = vmatprep.mubr.msk.f32.mxu0 %vm3143_vm3, %v10432_v32 }
 0x2ab   : > { %7981 = vmatmul.mubr.msk.f32.gmra.mxu1 %vm3143_vm3, %v10414_v11  ;;  %8034 = vmatmul.mubr.msk.f32.gmra.mxu0 %vm3143_vm3, %v10438_v49 }
 0x2ac   : > { %7983 = vmatprep.mubr.msk.f32.mxu1 %vm3143_vm3, %v10420_v37  ;;  %8036 = vmatprep.mubr.msk.f32.mxu0 %vm3143_vm3, %v10444_v38  ;;  %v10693_v37 = vld [vmem:[#allocation3 + $0xc2] sm:$0xff] }
 0x2af   : > { %7984 = vmatmul.mubr.msk.f32.gmra.mxu1 %vm3143_vm3, %v10426_v45  ;;  %8037 = vmatmul.mubr.msk.f32.gmra.mxu0 %vm3143_vm3, %v10450_v6 }
 0x2b0   : > { %7986 = vmatprep.mubr.msk.f32.mxu1 %vm3143_vm3, %v10432_v32  ;;  %8039 = vmatprep.mubr.msk.f32.mxu0 %vm3143_vm3, %v10456_v27 }
 0x2b3   : > { %7987 = vmatmul.mubr.msk.f32.gmra.mxu1 %vm3143_vm3, %v10438_v49  ;;  %8040 = vmatmul.mubr.msk.f32.gmra.mxu0 %vm3143_vm3, %v10462_v61 }
 0x2b4   : > { %7989 = vmatprep.mubr.msk.f32.mxu1 %vm3143_vm3, %v10444_v38  ;;  %8042 = vmatprep.mubr.msk.f32.mxu0 %vm3143_vm3, %v4120_v13 }
 0x2b7   : > { %7990 = vmatmul.mubr.msk.f32.gmra.mxu1 %vm3143_vm3, %v10450_v6  ;;  %8043 = vmatmul.mubr.msk.f32.gmra.mxu0 %vm3143_vm3, %v4121_v15  ;;  %v10703_v6 = vld [vmem:[#allocation3 + $0xca] sm:$0xff] }
 0x2b8   : > { %7992 = vmatprep.mubr.msk.f32.mxu1 %vm3143_vm3, %v10456_v27  ;;  %8045 = vmatprep.mubr.msk.f32.mxu0 %vm3143_vm3, %v4122_v35 }
 0x2bb   : > { %7993 = vmatmul.mubr.msk.f32.gmra.mxu1 %vm3143_vm3, %v10462_v61  ;;  %8046 = vmatmul.mubr.msk.f32.gmra.mxu0 %vm3143_vm3, %v4123_v7  ;;  %v10709_v61 = vld [vmem:[#allocation3 + $0xda] sm:$0xff] }
 0x2bc   : > { %7995 = vmatprep.mubr.msk.f32.mxu1 %vm3143_vm3, %v4120_v13  ;;  %8100 = vmatprep.mubr.msk.f32.mxu0 %vm3143_vm3, %v5011_v41 }
 0x2bf   : > { %7996 = vmatmul.mubr.msk.f32.gmra.mxu1 %vm3143_vm3, %v4121_v15  ;;  %8101 = vmatmul.mubr.msk.f32.vlgmr.msra.gmra.mxu0 %vm3143_vm3, %v5012_v5  ;;  %v10719_v15 = vld [vmem:[#allocation3 + $0xe2] sm:$0xff] }
 0x2c0   : > { %8103 = vmatprep.mubr.msk.f32.mxu0 %vm3143_vm3, %v10604_v10  ;;  %8050 = vmatprep.mubr.msk.f32.mxu1 %vm3143_vm3, %v5009_v36  ;;  %v10725_v36 = vld [vmem:[#allocation3 + $0xf2] sm:$0xff] }
 0x2c3   : > { %v10611_v22 = vpop.f32.mrf.mxu1  ;;  %v7805_v28 = vpop.f32.mrf.mxu0  ;;  %8051 = vmatmul.mubr.msk.f32.vlgmr.msra.gmra.mxu1 %vm3143_vm3, %v5010_v8  ;;  %8104 = vmatmul.mubr.msk.f32.gmra.mxu0 %vm3143_vm3, %v10609_v62 }
 0x2c4   : > { %8149 = vmatpush3.msra.mxu1 %v10482_v20  ;;  %8053 = vmatprep.mubr.msk.f32.mxu1 %vm3143_vm3, %v5011_v41 }
 0x2c5   : > { %8106 = vmatprep.mubr.msk.f32.mxu0 %vm3143_vm3, %v10618_v48  ;;  %v3433_v52 = vpop.f32.mrf.mxu1  ;;  %v3674_v31 = vpop.f32.mrf.mxu0 }
 0x2c6   : > { %v10622_v16 = vadd.f32 %v3664_v47, %v3433_v52  ;;  %v10735_v52 = vld [vmem:[#allocation3 + $0xfa] sm:$0xff] }
 0x2c7   : > { %v7755_v30 = vpop.f32.mrf.mxu1  ;;  %v7808_v54 = vpop.f32.mrf.mxu0  ;;  %8054 = vmatmul.mubr.msk.f32.gmra.mxu1 %vm3143_vm3, %v5012_v5  ;;  %8107 = vmatmul.mubr.msk.f32.gmra.mxu0 %vm3143_vm3, %v10624_v55 }
 0x2c8   : > { %v10631_v51 = vadd.f32 %v7805_v28, %v7755_v30  ;;  %8056 = vmatprep.mubr.msk.f32.mxu1 %vm3143_vm3, %v10604_v10  ;;  %8109 = vmatprep.mubr.msk.f32.mxu0 %vm3143_vm3, %v10629_v58 }
 0x2c9   : > { %v3443_v40 = vpop.f32.mrf.mxu1  ;;  %v3684_v21 = vpop.f32.mrf.mxu0 }
 0x2ca   : > { %v10637_v23 = vadd.f32 %v3674_v31, %v3443_v40 }
 0x2cb   : > { %v7758_v25 = vpop.f32.mrf.mxu1  ;;  %v7811_v44 = vpop.f32.mrf.mxu0  ;;  %8057 = vmatmul.mubr.msk.f32.gmra.mxu1 %vm3143_vm3, %v10609_v62  ;;  %8110 = vmatmul.mubr.msk.f32.gmra.mxu0 %vm3143_vm3, %v10639_v42 }
 0x2cc   : > { %v10647_v33 = vadd.f32 %v7808_v54, %v7758_v25  ;;  %8059 = vmatprep.mubr.msk.f32.mxu1 %vm3143_vm3, %v10618_v48  ;;  %8112 = vmatprep.mubr.msk.f32.mxu0 %vm3143_vm3, %v10645_v2  ;;  %v10741_v54 = vld [vmem:[#allocation3 + $0x10a] sm:$0xff] }
 0x2cd   : > { %v3453_v46 = vpop.f32.mrf.mxu1  ;;  %v3694_v34 = vpop.f32.mrf.mxu0 }
 0x2ce   : > { %v10653_v56 = vadd.f32 %v3684_v21, %v3453_v46  ;;  %v10751_v46 = vld [vmem:[#allocation3 + $0x112] sm:$0xff] }
 0x2cf   : > { %v7761_v26 = vpop.f32.mrf.mxu1  ;;  %v7814_v1 = vpop.f32.mrf.mxu0  ;;  %8060 = vmatmul.mubr.msk.f32.gmra.mxu1 %vm3143_vm3, %v10624_v55  ;;  %8113 = vmatmul.mubr.msk.f32.gmra.mxu0 %vm3143_vm3, %v10655_v59 }
 0x2d0   : > { %v10663_v29 = vadd.f32 %v7811_v44, %v7761_v26  ;;  %8062 = vmatprep.mubr.msk.f32.mxu1 %vm3143_vm3, %v10629_v58  ;;  %8115 = vmatprep.mubr.msk.f32.mxu0 %vm3143_vm3, %v10661_v24 }
 0x2d1   : > { %v3463_v9 = vpop.f32.mrf.mxu1  ;;  %v3704_v43 = vpop.f32.mrf.mxu0 }
 0x2d2   : > { %v10669_v0 = vadd.f32 %v3694_v34, %v3463_v9 }
 0x2d3   : > { %v7764_v63 = vpop.f32.mrf.mxu1  ;;  %v7817_v57 = vpop.f32.mrf.mxu0  ;;  %8063 = vmatmul.mubr.msk.f32.gmra.mxu1 %vm3143_vm3, %v10639_v42  ;;  %8116 = vmatmul.mubr.msk.f32.gmra.mxu0 %vm3143_vm3, %v10671_v18 }
 0x2d4   : > { %v10679_v17 = vadd.f32 %v7814_v1, %v7764_v63  ;;  %8065 = vmatprep.mubr.msk.f32.mxu1 %vm3143_vm3, %v10645_v2  ;;  %8118 = vmatprep.mubr.msk.f32.mxu0 %vm3143_vm3, %v10677_v50  ;;  %v10757_v1 = vld [vmem:[#allocation3 + $0x122] sm:$0xff] }
 0x2d5   : > { %v3473_v14 = vpop.f32.mrf.mxu1  ;;  %v3714_v60 = vpop.f32.mrf.mxu0 }
 0x2d6   : > { %v10685_v4 = vadd.f32 %v3704_v43, %v3473_v14  ;;  %v10767_v14 = vld [vmem:[#allocation3 + $0x12a] sm:$0xff] }
 0x2d7   : > { %v7767_v53 = vpop.f32.mrf.mxu1  ;;  %v7820_v11 = vpop.f32.mrf.mxu0  ;;  %8066 = vmatmul.mubr.msk.f32.gmra.mxu1 %vm3143_vm3, %v10655_v59  ;;  %8119 = vmatmul.mubr.msk.f32.gmra.mxu0 %vm3143_vm3, %v10687_v12 }
 0x2d8   : > { %v10695_v45 = vadd.f32 %v7817_v57, %v7767_v53  ;;  %8068 = vmatprep.mubr.msk.f32.mxu1 %vm3143_vm3, %v10661_v24  ;;  %8121 = vmatprep.mubr.msk.f32.mxu0 %vm3143_vm3, %v10693_v37 }
 0x2d9   : > { %v3483_v32 = vpop.f32.mrf.mxu1  ;;  %v3724_v49 = vpop.f32.mrf.mxu0 }
 0x2da   : > { %v10701_v38 = vadd.f32 %v3714_v60, %v3483_v32 }
 0x2db   : > { %v7770_v27 = vpop.f32.mrf.mxu1  ;;  %v7823_v39 = vpop.f32.mrf.mxu0  ;;  %8069 = vmatmul.mubr.msk.f32.gmra.mxu1 %vm3143_vm3, %v10671_v18  ;;  %8122 = vmatmul.mubr.msk.f32.gmra.mxu0 %vm3143_vm3, %v10703_v6 }
 0x2dc   : > { %v10711_v19 = vadd.f32 %v7820_v11, %v7770_v27  ;;  %8071 = vmatprep.mubr.msk.f32.mxu1 %vm3143_vm3, %v10677_v50  ;;  %8124 = vmatprep.mubr.msk.f32.mxu0 %vm3143_vm3, %v10709_v61  ;;  %v10773_v11 = vld [vmem:[#allocation3 + $0x13a] sm:$0xff] }
 0x2dd   : > { %v3493_v20 = vpop.f32.mrf.mxu1  ;;  %v3734_v13 = vpop.f32.mrf.mxu0 }
 0x2de   : > { %v10717_v35 = vadd.f32 %v3724_v49, %v3493_v20  ;;  %v10783_v20 = vld [vmem:[#allocation3 + $0x142] sm:$0xff] }
 0x2df   : > { %v7773_v7 = vpop.f32.mrf.mxu1  ;;  %v7826_v41 = vpop.f32.mrf.mxu0  ;;  %8072 = vmatmul.mubr.msk.f32.gmra.mxu1 %vm3143_vm3, %v10687_v12  ;;  %8125 = vmatmul.mubr.msk.f32.gmra.mxu0 %vm3143_vm3, %v10719_v15 }
 0x2e0   : > { %v10727_v5 = vadd.f32 %v7823_v39, %v7773_v7  ;;  %8074 = vmatprep.mubr.msk.f32.mxu1 %vm3143_vm3, %v10693_v37  ;;  %8127 = vmatprep.mubr.msk.f32.mxu0 %vm3143_vm3, %v10725_v36 }
 0x2e1   : > { %v3503_v47 = vpop.f32.mrf.mxu1  ;;  %v3744_v8 = vpop.f32.mrf.mxu0 }
 0x2e2   : > { %v10733_v28 = vadd.f32 %v3734_v13, %v3503_v47 }
 0x2e3   : > { %v7776_v31 = vpop.f32.mrf.mxu1  ;;  %v7829_v30 = vpop.f32.mrf.mxu0  ;;  %8075 = vmatmul.mubr.msk.f32.gmra.mxu1 %vm3143_vm3, %v10703_v6  ;;  %8128 = vmatmul.mubr.msk.f32.gmra.mxu0 %vm3143_vm3, %v10735_v52 }
 0x2e4   : > { %v10743_v40 = vadd.f32 %v7826_v41, %v7776_v31  ;;  %8077 = vmatprep.mubr.msk.f32.mxu1 %vm3143_vm3, %v10709_v61  ;;  %8130 = vmatprep.mubr.msk.f32.mxu0 %vm3143_vm3, %v10741_v54  ;;  %v10789_v41 = vld [vmem:[#allocation3 + $0x152] sm:$0xff] }
 0x2e5   : > { %v3513_v21 = vpop.f32.mrf.mxu1  ;;  %v3754_v25 = vpop.f32.mrf.mxu0 }
 0x2e6   : > { %v10749_v44 = vadd.f32 %v3744_v8, %v3513_v21  ;;  %v10799_v21 = vld [vmem:[#allocation3 + $0x15a] sm:$0xff] }
 0x2e7   : > { %v7779_v34 = vpop.f32.mrf.mxu1  ;;  %v7832_v26 = vpop.f32.mrf.mxu0  ;;  %8078 = vmatmul.mubr.msk.f32.gmra.mxu1 %vm3143_vm3, %v10719_v15  ;;  %8131 = vmatmul.mubr.msk.f32.gmra.mxu0 %vm3143_vm3, %v10751_v46 }
 0x2e8   : > { %v10759_v9 = vadd.f32 %v7829_v30, %v7779_v34  ;;  %8080 = vmatprep.mubr.msk.f32.mxu1 %vm3143_vm3, %v10725_v36  ;;  %8133 = vmatprep.mubr.msk.f32.mxu0 %vm3143_vm3, %v10757_v1 }
 0x2e9   : > { %v3523_v43 = vpop.f32.mrf.mxu1  ;;  %v3764_v63 = vpop.f32.mrf.mxu0 }
 0x2ea   : > { %v10765_v57 = vadd.f32 %v3754_v25, %v3523_v43 }
 0x2eb   : > { %v7782_v60 = vpop.f32.mrf.mxu1  ;;  %v7835_v53 = vpop.f32.mrf.mxu0  ;;  %8081 = vmatmul.mubr.msk.f32.gmra.mxu1 %vm3143_vm3, %v10735_v52  ;;  %8134 = vmatmul.mubr.msk.f32.gmra.mxu0 %vm3143_vm3, %v10767_v14 }
 0x2ec   : > { %v10775_v32 = vadd.f32 %v7832_v26, %v7782_v60  ;;  %8083 = vmatprep.mubr.msk.f32.mxu1 %vm3143_vm3, %v10741_v54  ;;  %8136 = vmatprep.mubr.msk.f32.mxu0 %vm3143_vm3, %v10773_v11  ;;  %v10805_v26 = vld [vmem:[#allocation3 + $0x16a] sm:$0xff] }
 0x2ed   : > { %v3533_v49 = vpop.f32.mrf.mxu1  ;;  %v3774_v27 = vpop.f32.mrf.mxu0  ;;  %11701 = vst [vmem:[#allocation4_spill] sm:$0xff] %v10805_v26 }
 0x2ee   : > { %v10781_v39 = vadd.f32 %v3764_v63, %v3533_v49  ;;  %v10815_v49 = vld [vmem:[#allocation3 + $0x172] sm:$0xff] }
 0x2ef   : > { %v7785_v13 = vpop.f32.mrf.mxu1  ;;  %v7838_v7 = vpop.f32.mrf.mxu0  ;;  %8084 = vmatmul.mubr.msk.f32.gmra.mxu1 %vm3143_vm3, %v10751_v46  ;;  %8137 = vmatmul.mubr.msk.f32.gmra.mxu0 %vm3143_vm3, %v10783_v20  ;;  %11704 = vst [vmem:[#allocation9_spill] sm:$0xff] %v10815_v49 }
 0x2f0   : > { %v10791_v47 = vadd.f32 %v7835_v53, %v7785_v13  ;;  %8086 = vmatprep.mubr.msk.f32.mxu1 %vm3143_vm3, %v10757_v1  ;;  %8139 = vmatprep.mubr.msk.f32.mxu0 %vm3143_vm3, %v10789_v41 }
 0x2f1   : > { %v3543_v8 = vpop.f32.mrf.mxu1  ;;  %v3784_v31 = vpop.f32.mrf.mxu0 }
 0x2f2   : > { %v10797_v30 = vadd.f32 %v3774_v27, %v3543_v8 }
 0x2f3   : > { %v7788_v25 = vpop.f32.mrf.mxu1  ;;  %v7841_v34 = vpop.f32.mrf.mxu0  ;;  %8087 = vmatmul.mubr.msk.f32.gmra.mxu1 %vm3143_vm3, %v10767_v14  ;;  %8140 = vmatmul.mubr.msk.f32.gmra.mxu0 %vm3143_vm3, %v10799_v21 }
 0x2f4   : > { %11700 = vst [vmem:[#allocation5_spill] sm:$0xff] %v10797_v30  ;;  %v10807_v43 = vadd.f32 %v7838_v7, %v7788_v25  ;;  %8089 = vmatprep.mubr.msk.f32.mxu1 %vm3143_vm3, %v10773_v11  ;;  %8142 = vmatprep.mubr.msk.f32.mxu0 %vm3143_vm3, %v10805_v26  ;;  %v10821_v7 = vld [vmem:[#allocation3 + $0x182] sm:$0xff] }
 0x2f5   : > { %v3553_v63 = vpop.f32.mrf.mxu1  ;;  %v3794_v60 = vpop.f32.mrf.mxu0  ;;  %11705 = vst [vmem:[#allocation8_spill] sm:$0xff] %v10821_v7 }
 0x2f6   : > { %11702 = vst [vmem:[#allocation7_spill] sm:$0xff] %v10807_v43  ;;  %v10813_v53 = vadd.f32 %v3784_v31, %v3553_v63 }
 0x2f7   : > { %v7791_v27 = vpop.f32.mrf.mxu1  ;;  %v7844_v13 = vpop.f32.mrf.mxu0  ;;  %8090 = vmatmul.mubr.msk.f32.gmra.mxu1 %vm3143_vm3, %v10783_v20  ;;  %8143 = vmatmul.mubr.msk.f32.gmra.mxu0 %vm3143_vm3, %v10815_v49 }
 0x2f8   : > { %11703 = vst [vmem:[#allocation6_spill] sm:$0xff] %v10813_v53  ;;  %v10823_v8 = vadd.f32 %v7841_v34, %v7791_v27  ;;  %8092 = vmatprep.mubr.msk.f32.mxu1 %vm3143_vm3, %v10789_v41  ;;  %8145 = vmatprep.mubr.msk.f32.mxu0 %vm3143_vm3, %v10821_v7  ;;  %v10831_v53 = vld [vmem:[#allocation3 + $0x18a] sm:$0xff] }
 0x2f9   : > { %v3563_v31 = vpop.f32.mrf.mxu1  ;;  %v3804_v25 = vpop.f32.mrf.mxu0  ;;  %11708 = vst [vmem:[#allocation13_spill] sm:$0xff] %v10831_v53 }
 0x2fa   : > { %11706 = vst [vmem:[#allocation11_spill] sm:$0xff] %v10823_v8  ;;  %v10829_v63 = vadd.f32 %v3794_v60, %v3563_v31 }
 0x2fb   : > { %v7794_v43 = vpop.f32.mrf.mxu1  ;;  %v7847_v30 = vpop.f32.mrf.mxu0  ;;  %8093 = vmatmul.mubr.msk.f32.gmra.mxu1 %vm3143_vm3, %v10799_v21  ;;  %8146 = vmatmul.mubr.msk.f32.gmra.mxu0 %vm3143_vm3, %v10831_v53 }
 0x2fc   : > { %11707 = vst [vmem:[#allocation10_spill] sm:$0xff] %v10829_v63  ;;  %v10837_v34 = vadd.f32 %v7844_v13, %v7794_v43  ;;  %8095 = vmatprep.mubr.msk.f32.mxu1 %vm3143_vm3, %v10805_v26  ;;  %v3670_v13 = vadd.f32 %v10598_v3, %v10611_v22 }
 0x2fd   : > { %v3573_v27 = vpop.f32.mrf.mxu1  ;;  %v3814_v7 = vpop.f32.mrf.mxu0 }
 0x2fe   : > { %11709 = vst [vmem:[#allocation12_spill] sm:$0xff] %v10837_v34  ;;  %v10841_v8 = vadd.f32 %v3804_v25, %v3573_v27 }
 0x2ff   : > { %v7797_v60 = vpop.f32.mrf.mxu1  ;;  %v7902_v31 = vpop.f32.mrf.mxu0  ;;  %8096 = vmatmul.mubr.msk.f32.gmra.mxu1 %vm3143_vm3, %v10815_v49 }
 0x300   : > { %11710 = vst [vmem:[#allocation82_spill] sm:$0xff] %v10841_v8  ;;  %v10845_v63 = vadd.f32 %v7847_v30, %v7797_v60  ;;  %8150 = vmatprep.mubr.msk.f32.mxu1 %vm3143_vm3, %v10604_v10 }
 0x301   : > { %v3583_v53 = vpop.f32.mrf.mxu1  ;;  %v4288_v43 = vpop.f32.mrf.mxu0 }
 0x302   : > { %11711 = vst [vmem:[#allocation16_spill] sm:$0xff] %v10845_v63  ;;  %v10851_v34 = vadd.f32 %v3814_v7, %v3583_v53 }
 0x303   : > { %v7852_v26 = vpop.f32.mrf.mxu1  ;;  %v7905_v25 = vpop.f32.mrf.mxu0  ;;  %8151 = vmatmul.mubr.msk.f32.vlgmr.msra.gmra.mxu1 %vm3143_vm3, %v10609_v62 }
 0x304   : > { %v4057_v27 = vadd.f32 %v7852_v26, %v3670_v13  ;;  %8153 = vmatprep.mubr.msk.f32.mxu1 %vm3143_vm3, %v10618_v48 }
 0x305   : > { %v3897_v30 = vpop.f32.mrf.mxu1  ;;  %v4298_v60 = vpop.f32.mrf.mxu0 }
 0x306   : > { %v4056_v10 = vadd.f32 %v3897_v30, %v10622_v16  ;;  %v10858_v63 = vadd.f32 %v7902_v31, %v4057_v27 }
 0x307   : > { %v7855_v8 = vpop.f32.mrf.mxu1  ;;  %v7908_v49 = vpop.f32.mrf.mxu0  ;;  %8154 = vmatmul.mubr.msk.f32.gmra.mxu1 %vm3143_vm3, %v10624_v55 }
 0x308   : > { %v4059_v3 = vadd.f32 %v7855_v8, %v10631_v51  ;;  %8156 = vmatprep.mubr.msk.f32.mxu1 %vm3143_vm3, %v10629_v58  ;;  %v10865_v62 = vadd.f32 %v4288_v43, %v4056_v10 }
 0x309   : > { %v3907_v22 = vpop.f32.mrf.mxu1  ;;  %v4308_v48 = vpop.f32.mrf.mxu0 }
 0x30a   : > { %v4058_v26 = vadd.f32 %v3907_v22, %v10637_v23  ;;  %v10868_v53 = vadd.f32 %v7905_v25, %v4059_v3 }
 0x30b   : > { %v7858_v16 = vpop.f32.mrf.mxu1  ;;  %v7911_v7 = vpop.f32.mrf.mxu0  ;;  %8157 = vmatmul.mubr.msk.f32.gmra.mxu1 %vm3143_vm3, %v10639_v42 }
 0x30c   : > { %v4061_v55 = vadd.f32 %v7858_v16, %v10647_v33  ;;  %8159 = vmatprep.mubr.msk.f32.mxu1 %vm3143_vm3, %v10645_v2  ;;  %v10875_v51 = vadd.f32 %v4298_v60, %v4058_v26 }
 0x30d   : > { %v3917_v58 = vpop.f32.mrf.mxu1  ;;  %v4318_v8 = vpop.f32.mrf.mxu0 }
 0x30e   : > { %v4060_v31 = vadd.f32 %v3917_v58, %v10653_v56  ;;  %v10878_v43 = vadd.f32 %v7908_v49, %v4061_v55 }
 0x30f   : > { %v7861_v23 = vpop.f32.mrf.mxu1  ;;  %v7914_v13 = vpop.f32.mrf.mxu0  ;;  %8160 = vmatmul.mubr.msk.f32.gmra.mxu1 %vm3143_vm3, %v10655_v59 }
 0x310   : > { %v4063_v42 = vadd.f32 %v7861_v23, %v10663_v29  ;;  %8162 = vmatprep.mubr.msk.f32.mxu1 %vm3143_vm3, %v10661_v24  ;;  %v10885_v33 = vadd.f32 %v4308_v48, %v4060_v31 }
 0x311   : > { %v3927_v2 = vpop.f32.mrf.mxu1  ;;  %v4328_v25 = vpop.f32.mrf.mxu0 }
 0x312   : > { %v4062_v27 = vadd.f32 %v3927_v2, %v10669_v0  ;;  %v10888_v30 = vadd.f32 %v7911_v7, %v4063_v42 }
 0x313   : > { %v7864_v56 = vpop.f32.mrf.mxu1  ;;  %v7917_v49 = vpop.f32.mrf.mxu0  ;;  %8163 = vmatmul.mubr.msk.f32.gmra.mxu1 %vm3143_vm3, %v10671_v18 }
 0x314   : > { %v4065_v59 = vadd.f32 %v7864_v56, %v10679_v17  ;;  %8165 = vmatprep.mubr.msk.f32.mxu1 %vm3143_vm3, %v10677_v50  ;;  %v10895_v29 = vadd.f32 %v4318_v8, %v4062_v27 }
 0x315   : > { %v3937_v24 = vpop.f32.mrf.mxu1  ;;  %v4338_v60 = vpop.f32.mrf.mxu0 }
 0x316   : > { %v4064_v10 = vadd.f32 %v3937_v24, %v10685_v4  ;;  %v10898_v3 = vadd.f32 %v7914_v13, %v4065_v59 }
 0x317   : > { %v7867_v0 = vpop.f32.mrf.mxu1  ;;  %v7920_v22 = vpop.f32.mrf.mxu0  ;;  %8166 = vmatmul.mubr.msk.f32.gmra.mxu1 %vm3143_vm3, %v10687_v12 }
 0x318   : > { %v4067_v18 = vadd.f32 %v7867_v0, %v10695_v45  ;;  %8168 = vmatprep.mubr.msk.f32.mxu1 %vm3143_vm3, %v10693_v37  ;;  %v10905_v17 = vadd.f32 %v4328_v25, %v4064_v10 }
 0x319   : > { %v3947_v50 = vpop.f32.mrf.mxu1  ;;  %v4348_v48 = vpop.f32.mrf.mxu0 }
 0x31a   : > { %v4066_v26 = vadd.f32 %v3947_v50, %v10701_v38  ;;  %v10908_v16 = vadd.f32 %v7917_v49, %v4067_v18 }
 0x31b   : > { %v7870_v4 = vpop.f32.mrf.mxu1  ;;  %v7923_v7 = vpop.f32.mrf.mxu0  ;;  %8169 = vmatmul.mubr.msk.f32.gmra.mxu1 %vm3143_vm3, %v10703_v6 }
 0x31c   : > { %v4069_v12 = vadd.f32 %v7870_v4, %v10711_v19  ;;  %8171 = vmatprep.mubr.msk.f32.mxu1 %vm3143_vm3, %v10709_v61  ;;  %v10915_v45 = vadd.f32 %v4338_v60, %v4066_v26  ;;  %v11712_v26 = vld [vmem:[#allocation5_spill] sm:$0xff] }
 0x31d   : > { %v3957_v37 = vpop.f32.mrf.mxu1  ;;  %v4358_v55 = vpop.f32.mrf.mxu0 }
 0x31e   : > { %v4068_v58 = vadd.f32 %v3957_v37, %v10717_v35  ;;  %v10918_v8 = vadd.f32 %v7920_v22, %v4069_v12  ;;  %v11713_v37 = vld [vmem:[#allocation7_spill] sm:$0xff] }
 0x31f   : > { %v7873_v38 = vpop.f32.mrf.mxu1  ;;  %v7926_v31 = vpop.f32.mrf.mxu0  ;;  %8172 = vmatmul.mubr.msk.f32.gmra.mxu1 %vm3143_vm3, %v10719_v15 }
 0x320   : > { %v4071_v6 = vadd.f32 %v7873_v38, %v10727_v5  ;;  %8174 = vmatprep.mubr.msk.f32.mxu1 %vm3143_vm3, %v10725_v36  ;;  %v10925_v19 = vadd.f32 %v4348_v48, %v4068_v58  ;;  %v11715_v38 = vld [vmem:[#allocation6_spill] sm:$0xff] }
 0x321   : > { %v3967_v61 = vpop.f32.mrf.mxu1  ;;  %v4368_v23 = vpop.f32.mrf.mxu0 }
 0x322   : > { %v4070_v13 = vadd.f32 %v3967_v61, %v10733_v28  ;;  %v10928_v42 = vadd.f32 %v7923_v7, %v4071_v6 }
 0x323   : > { %v7876_v35 = vpop.f32.mrf.mxu1  ;;  %v7929_v2 = vpop.f32.mrf.mxu0  ;;  %8175 = vmatmul.mubr.msk.f32.gmra.mxu1 %vm3143_vm3, %v10735_v52 }
 0x324   : > { %v4073_v15 = vadd.f32 %v7876_v35, %v10743_v40  ;;  %8177 = vmatprep.mubr.msk.f32.mxu1 %vm3143_vm3, %v10741_v54  ;;  %v10935_v5 = vadd.f32 %v4358_v55, %v4070_v13  ;;  %v11714_v55 = vld [vmem:[#allocation4_spill] sm:$0xff]  ;;  %v11716_v13 = vld [vmem:[#allocation9_spill] sm:$0xff]  ;;  %v11717_v35 = vld [vmem:[#allocation11_spill] sm:$0xff] }
 0x325   : > { %v3977_v36 = vpop.f32.mrf.mxu1  ;;  %v4378_v25 = vpop.f32.mrf.mxu0 }
 0x326   : > { %v4072_v27 = vadd.f32 %v3977_v36, %v10749_v44  ;;  %v10938_v56 = vadd.f32 %v7926_v31, %v4073_v15 }
 0x327   : > { %v7879_v28 = vpop.f32.mrf.mxu1  ;;  %v7932_v49 = vpop.f32.mrf.mxu0  ;;  %8178 = vmatmul.mubr.msk.f32.gmra.mxu1 %vm3143_vm3, %v10751_v46 }
 0x328   : > { %v4075_v52 = vadd.f32 %v7879_v28, %v10759_v9  ;;  %8180 = vmatprep.mubr.msk.f32.mxu1 %vm3143_vm3, %v10757_v1  ;;  %v10945_v40 = vadd.f32 %v4368_v23, %v4072_v27  ;;  %v5043_v27 = vld [vmem:[#allocation3 + $0x19a] sm:$0xff] }
 0x329   : > { %v3987_v54 = vpop.f32.mrf.mxu1  ;;  %v4388_v59 = vpop.f32.mrf.mxu0  ;;  %v11719_v28 = vld [vmem:[#allocation10_spill] sm:$0xff] }
 0x32a   : > { %v4074_v24 = vadd.f32 %v3987_v54, %v10765_v57  ;;  %v10948_v60 = vadd.f32 %v7929_v2, %v4075_v52  ;;  %v11718_v2 = vld [vmem:[#allocation8_spill] sm:$0xff] }
 0x32b   : > { %v7882_v44 = vpop.f32.mrf.mxu1  ;;  %v7935_v10 = vpop.f32.mrf.mxu0  ;;  %8181 = vmatmul.mubr.msk.f32.gmra.mxu1 %vm3143_vm3, %v10767_v14 }
 0x32c   : > { %v4077_v46 = vadd.f32 %v7882_v44, %v10775_v32  ;;  %8183 = vmatprep.mubr.msk.f32.mxu1 %vm3143_vm3, %v10773_v11  ;;  %v10955_v9 = vadd.f32 %v4378_v25, %v4074_v24  ;;  %v11720_v24 = vld [vmem:[#allocation13_spill] sm:$0xff]  ;;  %v11721_v44 = vld [vmem:[#allocation12_spill] sm:$0xff] }
 0x32d   : > { %v3997_v1 = vpop.f32.mrf.mxu1  ;;  %v4398_v0 = vpop.f32.mrf.mxu0 }
 0x32e   : > { %v4076_v22 = vadd.f32 %v3997_v1, %v10781_v39  ;;  %v10958_v18 = vadd.f32 %v7932_v49, %v4077_v46  ;;  %v5044_v46 = vld [vmem:[#allocation3 + $0x1a2] sm:$0xff] }
 0x32f   : > { %v7885_v57 = vpop.f32.mrf.mxu1  ;;  %v7938_v50 = vpop.f32.mrf.mxu0  ;;  %8184 = vmatmul.mubr.msk.f32.gmra.mxu1 %vm3143_vm3, %v10783_v20 }
 0x330   : > { %v4079_v14 = vadd.f32 %v7885_v57, %v10791_v47  ;;  %8186 = vmatprep.mubr.msk.f32.mxu1 %vm3143_vm3, %v10789_v41  ;;  %v10965_v32 = vadd.f32 %v4388_v59, %v4076_v22  ;;  %v11722_v57 = vld [vmem:[#allocation82_spill] sm:$0xff] }
 0x331   : > { %v4007_v11 = vpop.f32.mrf.mxu1  ;;  %v4408_v48 = vpop.f32.mrf.mxu0 }
 0x332   : > { %v4078_v4 = vadd.f32 %v4007_v11, %v11712_v26  ;;  %v10968_v7 = vadd.f32 %v7935_v10, %v4079_v14  ;;  %v11723_v26 = vld [vmem:[#allocation16_spill] sm:$0xff] }
 0x333   : > { %v7888_v39 = vpop.f32.mrf.mxu1  ;;  %v7941_v12 = vpop.f32.mrf.mxu0  ;;  %8187 = vmatmul.mubr.msk.f32.gmra.mxu1 %vm3143_vm3, %v10799_v21 }
 0x334   : > { %v4081_v20 = vadd.f32 %v7888_v39, %v11713_v37  ;;  %8189 = vmatprep.mubr.msk.f32.mxu1 %vm3143_vm3, %v11714_v55  ;;  %v10975_v47 = vadd.f32 %v4398_v0, %v4078_v4 }
 0x335   : > { %v4017_v41 = vpop.f32.mrf.mxu1  ;;  %v4418_v58 = vpop.f32.mrf.mxu0 }
 0x336   : > { %v4080_v31 = vadd.f32 %v4017_v41, %v11715_v38  ;;  %v10978_v6 = vadd.f32 %v7938_v50, %v4081_v20 }
 0x337   : > { %v7891_v61 = vpop.f32.mrf.mxu1  ;;  %v7944_v23 = vpop.f32.mrf.mxu0  ;;  %8190 = vmatmul.mubr.msk.f32.gmra.mxu1 %vm3143_vm3, %v11716_v13 }
 0x338   : > { %v4083_v21 = vadd.f32 %v7891_v61, %v11717_v35  ;;  %8192 = vmatprep.mubr.msk.f32.mxu1 %vm3143_vm3, %v11718_v2  ;;  %v10985_v15 = vadd.f32 %v4408_v48, %v4080_v31 }
 0x339   : > { %v4027_v36 = vpop.f32.mrf.mxu1  ;;  %v4428_v25 = vpop.f32.mrf.mxu0 }
 0x33a   : > { %v4082_v49 = vadd.f32 %v4027_v36, %v11719_v28  ;;  %v10988_v52 = vadd.f32 %v7941_v12, %v4083_v21 }
 0x33b   : > { %v7894_v54 = vpop.f32.mrf.mxu1  ;;  %v7947_v59 = vpop.f32.mrf.mxu0  ;;  %8193 = vmatmul.mubr.msk.f32.gmra.mxu1 %vm3143_vm3, %v11720_v24 }
 0x33c   : > { %v4085_v10 = vadd.f32 %v7894_v54, %v11721_v44  ;;  %8195 = vmatprep.mubr.msk.f32.mxu1 %vm3143_vm3, %v5043_v27  ;;  %v10994_v1 = vadd.f32 %v4418_v58, %v4082_v49 }
 0x33d   : > { %v4037_v0 = vpop.f32.mrf.mxu1  ;;  %v4438_v22 = vpop.f32.mrf.mxu0 }
 0x33e   : > { %v4084_v50 = vadd.f32 %v4037_v0, %v11722_v57  ;;  %v10997_v14 = vadd.f32 %v7944_v23, %v4085_v10 }
 0x33f   : > { %v7897_v11 = vpop.f32.mrf.mxu1  ;;  %v10999_v48 = vpop.f32.mrf.mxu0  ;;  %8196 = vmatmul.mubr.msk.f32.gmra.mxu1 %vm3143_vm3, %v5044_v46 }
 0x340   : > { %v4087_v4 = vadd.f32 %v7897_v11, %v11723_v26  ;;  %v11003_v39 = vadd.f32 %v4428_v25, %v4084_v50 }
 0x341   : > { %v4047_v12 = vpop.f32.mrf.mxu1  ;;  %v11005_v37 = vpop.f32.mrf.mxu0 }
 0x342   : > { %v4086_v20 = vadd.f32 %v4047_v12, %v10851_v34  ;;  %v11008_v55 = vadd.f32 %v7947_v59, %v4087_v4 }
 0x343   : > { %v7952_v41 = vpop.f32.mrf.mxu1  ;;  %v11010_v58 = vpop.f32.mrf.mxu0 }
 0x344   : > { %v11013_v38 = vadd.f32 %v7952_v41, %v10858_v63  ;;  %v11015_v31 = vadd.f32 %v4438_v22, %v4086_v20 }
 0x345   : > { %v4553_v61 = vpop.f32.mrf.mxu1  ;;  %v11017_v23 = vpop.f32.mrf.mxu0 }
 0x346   : > { %v11020_v13 = vadd.f32 %v4553_v61, %v10865_v62 }
 0x347   : > { %v7955_v35 = vpop.f32.mrf.mxu1  ;;  %v11022_v21 = vpop.f32.mrf.mxu0 }
 0x348   : > { %v11025_v34 = vadd.f32 %v7955_v35, %v10868_v53 }
 0x349   : > { %v4563_v2 = vpop.f32.mrf.mxu1  ;;  %v11027_v36 = vpop.f32.mrf.mxu0 }
 0x34a   : > { %v11030_v63 = vadd.f32 %v4563_v2, %v10875_v51 }
 0x34b   : > { %v7958_v25 = vpop.f32.mrf.mxu1  ;;  %v11032_v27 = vpop.f32.mrf.mxu0 }
 0x34c   : > { %v11035_v28 = vadd.f32 %v7958_v25, %v10878_v43 }
 0x34d   : > { %v4573_v62 = vpop.f32.mrf.mxu1  ;;  %v11037_v49 = vpop.f32.mrf.mxu0 }
 0x34e   : > { %v11040_v54 = vadd.f32 %v4573_v62, %v10885_v33 }
 0x34f   : > { %v7961_v53 = vpop.f32.mrf.mxu1  ;;  %v11042_v59 = vpop.f32.mrf.mxu0 }
 0x350   : > { %v11045_v24 = vadd.f32 %v7961_v53, %v10888_v30 }
 0x351   : > { %v4583_v51 = vpop.f32.mrf.mxu1  ;;  %v11047_v44 = vpop.f32.mrf.mxu0 }
 0x352   : > { %v11050_v10 = vadd.f32 %v4583_v51, %v10895_v29 }
 0x353   : > { %v7964_v43 = vpop.f32.mrf.mxu1  ;;  %v11052_v46 = vpop.f32.mrf.mxu0 }
 0x354   : > { %v11055_v0 = vadd.f32 %v7964_v43, %v10898_v3 }
 0x355   : > { %v4593_v33 = vpop.f32.mrf.mxu1  ;;  %v11057_v22 = vpop.f32.mrf.mxu0 }
 0x356   : > { %v11060_v57 = vadd.f32 %v4593_v33, %v10905_v17 }
 0x357   : > { %v7967_v30 = vpop.f32.mrf.mxu1  ;;  %v11062_v50 = vpop.f32.mrf.mxu0 }
 0x358   : > { %v11065_v11 = vadd.f32 %v7967_v30, %v10908_v16 }
 0x359   : > { %v4603_v29 = vpop.f32.mrf.mxu1  ;;  %v11067_v26 = vpop.f32.mrf.mxu0 }
 0x35a   : > { %v11070_v4 = vadd.f32 %v4603_v29, %v10915_v45 }
 0x35b   : > { %v7970_v3 = vpop.f32.mrf.mxu1  ;;  %v11072_v12 = vpop.f32.mrf.mxu0 }
 0x35c   : > { %11724 = vst [vmem:[#allocation14_spill] sm:$0xff] %v11072_v12  ;;  %v11075_v20 = vadd.f32 %v7970_v3, %v10918_v8 }
 0x35d   : > { %v4613_v17 = vpop.f32.mrf.mxu1  ;;  %v11077_v41 = vpop.f32.mrf.mxu0 }
 0x35e   : > { %11725 = vst [vmem:[#allocation37_spill] sm:$0xff] %v11077_v41  ;;  %v11080_v61 = vadd.f32 %v4613_v17, %v10925_v19 }
 0x35f   : > { %v7973_v16 = vpop.f32.mrf.mxu1  ;;  %v11082_v35 = vpop.f32.mrf.mxu0 }
 0x360   : > { %11726 = vst [vmem:[#allocation43_spill] sm:$0xff] %v11082_v35  ;;  %v11085_v2 = vadd.f32 %v7973_v16, %v10928_v42 }
 0x361   : > { %v4623_v45 = vpop.f32.mrf.mxu1  ;;  %v11087_v25 = vpop.f32.mrf.mxu0 }
 0x362   : > { %11727 = vst [vmem:[#allocation85_spill] sm:$0xff] %v11085_v2  ;;  %11728 = vst [vmem:[#allocation79_spill] sm:$0xff] %v11087_v25  ;;  %v11090_v62 = vadd.f32 %v4623_v45, %v10935_v5 }
 0x363   : > { %v7976_v8 = vpop.f32.mrf.mxu1  ;;  %v11092_v53 = vpop.f32.mrf.mxu0 }
 0x364   : > { %11729 = vst [vmem:[#allocation18_spill] sm:$0xff] %v11090_v62  ;;  %11730 = vst [vmem:[#allocation17_spill] sm:$0xff] %v11092_v53  ;;  %v11095_v51 = vadd.f32 %v7976_v8, %v10938_v56 }
 0x365   : > { %v4633_v19 = vpop.f32.mrf.mxu1  ;;  %v11097_v43 = vpop.f32.mrf.mxu0 }
 0x366   : > { %11731 = vst [vmem:[#allocation22_spill] sm:$0xff] %v11095_v51  ;;  %11732 = vst [vmem:[#allocation20_spill] sm:$0xff] %v11097_v43  ;;  %v11100_v33 = vadd.f32 %v4633_v19, %v10945_v40 }
 0x367   : > { %v7979_v42 = vpop.f32.mrf.mxu1  ;;  %v11102_v30 = vpop.f32.mrf.mxu0 }
 0x368   : > { %11733 = vst [vmem:[#allocation42_spill] sm:$0xff] %v11100_v33  ;;  %11734 = vst [vmem:[#allocation38_spill] sm:$0xff] %v11102_v30  ;;  %v11105_v29 = vadd.f32 %v7979_v42, %v10948_v60 }
 0x369   : > { %v4643_v5 = vpop.f32.mrf.mxu1  ;;  %v11107_v3 = vpop.f32.mrf.mxu0 }
 0x36a   : > { %11735 = vst [vmem:[#allocation88_spill] sm:$0xff] %v11105_v29  ;;  %11736 = vst [vmem:[#allocation80_spill] sm:$0xff] %v11107_v3  ;;  %v11110_v17 = vadd.f32 %v4643_v5, %v10955_v9 }
 0x36b   : > { %v7982_v56 = vpop.f32.mrf.mxu1  ;;  %v11112_v16 = vpop.f32.mrf.mxu0 }
 0x36c   : > { %11737 = vst [vmem:[#allocation39_spill] sm:$0xff] %v11110_v17  ;;  %11738 = vst [vmem:[#allocation47_spill] sm:$0xff] %v11112_v16  ;;  %v11115_v45 = vadd.f32 %v7982_v56, %v10958_v18 }
 0x36d   : > { %v4653_v40 = vpop.f32.mrf.mxu1  ;;  %v11117_v8 = vpop.f32.mrf.mxu0 }
 0x36e   : > { %11739 = vst [vmem:[#allocation81_spill] sm:$0xff] %v11115_v45  ;;  %11740 = vst [vmem:[#allocation91_spill] sm:$0xff] %v11117_v8  ;;  %v11120_v19 = vadd.f32 %v4653_v40, %v10965_v32 }
 0x36f   : > { %v7985_v60 = vpop.f32.mrf.mxu1  ;;  %v11122_v42 = vpop.f32.mrf.mxu0 }
 0x370   : > { %11741 = vst [vmem:[#allocation40_spill] sm:$0xff] %v11120_v19  ;;  %11742 = vst [vmem:[#allocation24_spill] sm:$0xff] %v11122_v42  ;;  %v11125_v3 = vadd.f32 %v7985_v60, %v10968_v7 }
 0x371   : > { %v4663_v9 = vpop.f32.mrf.mxu1  ;;  %v11127_v5 = vpop.f32.mrf.mxu0 }
 0x372   : > { %11743 = vst [vmem:[#allocation21_spill] sm:$0xff] %v11125_v3  ;;  %11744 = vst [vmem:[#allocation25_spill] sm:$0xff] %v11127_v5  ;;  %v11130_v16 = vadd.f32 %v4663_v9, %v10975_v47 }
 0x373   : > { %v7988_v18 = vpop.f32.mrf.mxu1  ;;  %v11132_v56 = vpop.f32.mrf.mxu0 }
 0x374   : > { %11745 = vst [vmem:[#allocation46_spill] sm:$0xff] %v11130_v16  ;;  %11746 = vst [vmem:[#allocation41_spill] sm:$0xff] %v11132_v56  ;;  %v11135_v8 = vadd.f32 %v7988_v18, %v10978_v6 }
 0x375   : > { %v4673_v32 = vpop.f32.mrf.mxu1  ;;  %v11137_v40 = vpop.f32.mrf.mxu0 }
 0x376   : > { %11747 = vst [vmem:[#allocation83_spill] sm:$0xff] %v11135_v8  ;;  %11748 = vst [vmem:[#allocation94_spill] sm:$0xff] %v11137_v40  ;;  %v11140_v42 = vadd.f32 %v4673_v32, %v10985_v15 }
 0x377   : > { %v7991_v7 = vpop.f32.mrf.mxu1  ;;  %v11142_v60 = vpop.f32.mrf.mxu0 }
 0x378   : > { %11749 = vst [vmem:[#allocation44_spill] sm:$0xff] %v11140_v42  ;;  %11750 = vst [vmem:[#allocation51_spill] sm:$0xff] %v11142_v60  ;;  %v11145_v5 = vadd.f32 %v7991_v7, %v10988_v52 }
 0x379   : > { %v4683_v47 = vpop.f32.mrf.mxu1  ;;  %v11147_v9 = vpop.f32.mrf.mxu0 }
 0x37a   : > { %11751 = vst [vmem:[#allocation97_spill] sm:$0xff] %v11145_v5  ;;  %11752 = vst [vmem:[#allocation84_spill] sm:$0xff] %v11147_v9  ;;  %v11150_v56 = vadd.f32 %v4683_v47, %v10994_v1 }
 0x37b   : > { %v7994_v6 = vpop.f32.mrf.mxu1  ;;  %v11152_v18 = vpop.f32.mrf.mxu0 }
 0x37c   : > { %11753 = vst [vmem:[#allocation23_spill] sm:$0xff] %v11150_v56  ;;  %11754 = vst [vmem:[#allocation27_spill] sm:$0xff] %v11152_v18  ;;  %v11155_v40 = vadd.f32 %v7994_v6, %v10997_v14 }
 0x37d   : > { %v4693_v15 = vpop.f32.mrf.mxu1  ;;  %v11160_v60 = vpop.f32.mrf.mxu0 }
 0x37e   : > { %11755 = vst [vmem:[#allocation50_spill] sm:$0xff] %v11155_v40  ;;  %v11158_v32 = vadd.f32 %v4693_v15, %v11003_v39  ;;  %11757 = vst [vmem:[#allocation86_spill] sm:$0xff] %v11160_v60 }
 0x37f   : > { %v7997_v52 = vpop.f32.mrf.mxu1  ;;  %v8102_v47 = vpop.f32.mrf.mxu0 }
 0x380   : > { %11756 = vst [vmem:[#allocation45_spill] sm:$0xff] %v11158_v32  ;;  %v11163_v7 = vadd.f32 %v7997_v52, %v11008_v55 }
 0x381   : > { %v4703_v9 = vpop.f32.mrf.mxu1  ;;  %v5474_v5 = vpop.f32.mrf.mxu0 }
 0x382   : > { %11758 = vst [vmem:[#allocation48_spill] sm:$0xff] %v11163_v7  ;;  %v11166_v1 = vadd.f32 %v4703_v9, %v11015_v31 }
 0x383   : > { %v8052_v56 = vpop.f32.mrf.mxu1  ;;  %v8105_v40 = vpop.f32.mrf.mxu0 }
 0x384   : > { %11759 = vst [vmem:[#allocation55_spill] sm:$0xff] %v11166_v1 }
 0x385   : > { %v5209_v18 = vpop.f32.mrf.mxu1  ;;  %v11168_v15 = vpop.f32.mrf.mxu0 }
 0x387   : > { %v8055_v14 = vpop.f32.mrf.mxu1  ;;  %v11174_v55 = vpop.f32.mrf.mxu0 }
 0x389   : > { %v5219_v6 = vpop.f32.mrf.mxu1  ;;  %v11180_v9 = vpop.f32.mrf.mxu0 }
 0x38b   : > { %v8058_v42 = vpop.f32.mrf.mxu1  ;;  %v11186_v8 = vpop.f32.mrf.mxu0 }
 0x38d   : > { %v5229_v39 = vpop.f32.mrf.mxu1  ;;  %v11192_v19 = vpop.f32.mrf.mxu0 }
 0x38f   : > { %v11170_v60 = vpop.f32.mrf.mxu1  ;;  %v11198_v43 = vpop.f32.mrf.mxu0 }
 0x391   : > { %v11172_v32 = vpop.f32.mrf.mxu1  ;;  %v11204_v29 = vpop.f32.mrf.mxu0 }
 0x393   : > { %v11176_v52 = vpop.f32.mrf.mxu1  ;;  %v11210_v35 = vpop.f32.mrf.mxu0 }
 0x395   : > { %v11178_v31 = vpop.f32.mrf.mxu1 }
 0x397   : > { %v11182_v1 = vpop.f32.mrf.mxu1 }
 0x399   : > { %v11184_v7 = vpop.f32.mrf.mxu1 }
 0x39b   : > { %v11188_v16 = vpop.f32.mrf.mxu1 }
 0x39d   : > { %v11190_v3 = vpop.f32.mrf.mxu1 }
 0x39f   : > { %v11194_v30 = vpop.f32.mrf.mxu1 }
 0x3a0   : > { %11760 = vst [vmem:[#allocation87_spill] sm:$0xff] %v11194_v30  ;;  %v11216_v30 = vpop.f32.mrf.mxu0 }
 0x3a1   : > { %v11196_v45 = vpop.f32.mrf.mxu1 }
 0x3a2   : > { %11761 = vst [vmem:[#allocation19_spill] sm:$0xff] %v11196_v45 }
 0x3a3   : > { %v11200_v17 = vpop.f32.mrf.mxu1 }
 0x3a4   : > { %11762 = vst [vmem:[#allocation26_spill] sm:$0xff] %v11200_v17  ;;  %v11222_v17 = vpop.f32.mrf.mxu0 }
 0x3a5   : > { %v11202_v53 = vpop.f32.mrf.mxu1  ;;  %11770 = vst [vmem:[#allocation28_spill] sm:$0xff] %v11222_v17 }
 0x3a6   : > { %11763 = vst [vmem:[#allocation29_spill] sm:$0xff] %v11202_v53 }
 0x3a7   : > { %v11206_v25 = vpop.f32.mrf.mxu1 }
 0x3a8   : > { %11764 = vst [vmem:[#allocation54_spill] sm:$0xff] %v11206_v25  ;;  %v11228_v25 = vpop.f32.mrf.mxu0 }
 0x3a9   : > { %v11208_v33 = vpop.f32.mrf.mxu1  ;;  %11773 = vst [vmem:[#allocation53_spill] sm:$0xff] %v11228_v25 }
 0x3aa   : > { %11765 = vst [vmem:[#allocation49_spill] sm:$0xff] %v11208_v33 }
 0x3ab   : > { %v11212_v51 = vpop.f32.mrf.mxu1 }
 0x3ac   : > { %11766 = vst [vmem:[#allocation89_spill] sm:$0xff] %v11212_v51  ;;  %v11234_v51 = vpop.f32.mrf.mxu0 }
 0x3ad   : > { %v11214_v41 = vpop.f32.mrf.mxu1  ;;  %11776 = vst [vmem:[#allocation63_spill] sm:$0xff] %v11234_v51 }
 0x3ae   : > { %11767 = vst [vmem:[#allocation52_spill] sm:$0xff] %v11214_v41 }
 0x3af   : > { %v11218_v45 = vpop.f32.mrf.mxu1 }
 0x3b0   : > { %11768 = vst [vmem:[#allocation59_spill] sm:$0xff] %v11218_v45  ;;  %v4978_v45 = vadd.f32 %v10999_v48, %v11013_v38  ;;  %v4979_v48 = vadd.f32 %v11017_v23, %v11030_v63  ;;  %v4981_v23 = vadd.f32 %v11027_v36, %v11040_v54 }
 0x3b1   : > { %v11220_v62 = vpop.f32.mrf.mxu1 }
 0x3b2   : > { %11769 = vst [vmem:[#allocation90_spill] sm:$0xff] %v11220_v62  ;;  %v5369_v17 = vadd.f32 %v8052_v56, %v4978_v45  ;;  %v4982_v45 = vadd.f32 %v11022_v21, %v11035_v28 }
 0x3b3   : > { %v11224_v53 = vpop.f32.mrf.mxu1 }
 0x3b4   : > { %11771 = vst [vmem:[#allocation31_spill] sm:$0xff] %v11224_v53  ;;  %v4977_v53 = vadd.f32 %v11005_v37, %v11020_v13  ;;  %v5634_v38 = vadd.f32 %v8102_v47, %v5369_v17  ;;  %v4984_v47 = vadd.f32 %v11032_v27, %v11045_v24  ;;  %v4983_v27 = vadd.f32 %v11037_v49, %v11050_v10 }
 0x3b5   : > { %v11226_v12 = vpop.f32.mrf.mxu1 }
 0x3b6   : > { %11772 = vst [vmem:[#allocation58_spill] sm:$0xff] %v11226_v12  ;;  %v11244_v12 = vpop.f32.mrf.mxu0  ;;  %v5374_v10 = vadd.f32 %v11172_v32, %v4983_v27 }
 0x3b7   : > { %v11230_v33 = vpop.f32.mrf.mxu1 }
 0x3b8   : > { %11774 = vst [vmem:[#allocation92_spill] sm:$0xff] %v11230_v33  ;;  %v5368_v33 = vadd.f32 %v5209_v18, %v4977_v53  ;;  %v11256_v37 = vpop.f32.mrf.mxu0  ;;  %v11261_v53 = vld [vmem:[%s11488_s4] ss:$0 sm:$0xff]  ;;  %v5372_v18 = vadd.f32 %v5229_v39, %v4981_v23  ;;  %v4988_v23 = vadd.f32 %v11052_v46, %v11065_v11 }
 0x3b9   : > { %v11232_v2 = vpop.f32.mrf.mxu1 }
 0x3ba   : > { %11775 = vst [vmem:[#allocation56_spill] sm:$0xff] %v11232_v2  ;;  %v4980_v2 = vadd.f32 %v11010_v58, %v11025_v34  ;;  %v5370_v58 = vadd.f32 %v5219_v6, %v4979_v48  ;;  %v5633_v56 = vadd.f32 %v5474_v5, %v5368_v33  ;;  %v5637_v49 = vadd.f32 %v11180_v9, %v5372_v18 }
 0x3bb   : > { %v11236_v41 = vpop.f32.mrf.mxu1  ;;  %v5379_v46 = vadd.f32 %v11182_v1, %v4988_v23 }
 0x3bc   : > { %11777 = vst [vmem:[#allocation93_spill] sm:$0xff] %v11236_v41  ;;  %v5371_v41 = vadd.f32 %v8055_v14, %v4980_v2  ;;  %v5373_v2 = vadd.f32 %v8058_v42, %v4982_v45  ;;  %v11268_v14 = vpop.f32.mrf.mxu0 }
 0x3bd   : > { %v11240_v62 = vpop.f32.mrf.mxu1  ;;  %v5644_v27 = vadd.f32 %v11210_v35, %v5379_v46  ;;  %v11790_v46 = vld [vmem:[#allocation79_spill] sm:$0xff] }
 0x3be   : > { %v5636_v28 = vadd.f32 %v8105_v40, %v5371_v41  ;;  %v5635_v41 = vadd.f32 %v11168_v15, %v5370_v58  ;;  %v5638_v5 = vadd.f32 %v11174_v55, %v5373_v2  ;;  %v5375_v40 = vadd.f32 %v11170_v60, %v4984_v47  ;;  %v11288_v45 = vpop.f32.mrf.mxu0 }
 0x3bf   : > { %v11246_v25 = vpop.f32.mrf.mxu1 }
 0x3c1   : > { %v11250_v51 = vpop.f32.mrf.mxu1 }
 0x3c3   : > { %v8152_v13 = vpop.f32.mrf.mxu1 }
 0x3c4   : > { %v5899_v34 = vadd.f32 %v8152_v13, %v5634_v38  ;;  %v4986_v38 = vadd.f32 %v11042_v59, %v11055_v0 }
 0x3c5   : > { %v5739_v63 = vpop.f32.mrf.mxu1 }
 0x3c6   : > { %v5938_v17 = vadd.f32 %v11261_v53, %v5899_v34  ;;  %v5898_v21 = vadd.f32 %v5739_v63, %v5633_v56  ;;  %v5377_v58 = vadd.f32 %v11176_v52, %v4986_v38  ;;  %v4985_v34 = vadd.f32 %v11047_v44, %v11060_v57  ;;  %v11305_v63 = vpop.f32.mrf.mxu0 }
 0x3c7   : > { %v8155_v33 = vpop.f32.mrf.mxu1  ;;  %v5640_v56 = vadd.f32 %v11186_v8, %v5375_v40  ;;  %v4987_v8 = vadd.f32 %v11057_v22, %v11070_v4  ;;  %v11779_v40 = vld [vmem:[#allocation14_spill] sm:$0xff] }
 0x3c8   : > { %v5970_v36 = vmax.f32 %v5938_v17, 0.0  ;;  %v5937_v54 = vadd.f32 %v11261_v53, %v5898_v21  ;;  %v5901_v42 = vadd.f32 %v8155_v33, %v5636_v28  ;;  %v5376_v2 = vadd.f32 %v11178_v31, %v4985_v34 }
 0x3c9   : > { %v5749_v24 = vpop.f32.mrf.mxu1  ;;  %v5639_v21 = vadd.f32 %v11192_v19, %v5374_v10  ;;  %v5642_v31 = vadd.f32 %v11198_v43, %v5377_v58  ;;  %v4990_v33 = vadd.f32 %v11062_v50, %v11075_v20  ;;  %v5378_v4 = vadd.f32 %v11184_v7, %v4987_v8  ;;  %v11788_v8 = vld [vmem:[#allocation26_spill] sm:$0xff] }
 0x3ca   : > { %6002 = vst.msk [vmem:[%s11275_s21 + $0x8] sm:$0xff] %vm3143_vm3, %v5970_v36  ;;  %v5969_v6 = vmax.f32 %v5937_v54, 0.0  ;;  %v5940_v39 = vadd.f32 %v11261_v53, %v5901_v42  ;;  %v5900_v48 = vadd.f32 %v5749_v24, %v5635_v41  ;;  %v11320_v36 = vpop.f32.mrf.mxu0  ;;  %v5641_v22 = vadd.f32 %v11204_v29, %v5376_v2  ;;  %v11786_v2 = vld [vmem:[#allocation53_spill] sm:$0xff] }
 0x3cb   : > { %v8158_v15 = vpop.f32.mrf.mxu1  ;;  %v5381_v42 = vadd.f32 %v11188_v16, %v4990_v33  ;;  %v4989_v41 = vadd.f32 %v11067_v26, %v11080_v61  ;;  %v5643_v38 = vadd.f32 %v11216_v30, %v5378_v4 }
 0x3cc   : > { %6001 = vst.msk [vmem:[%s11275_s21] sm:$0xff] %vm3143_vm3, %v5969_v6  ;;  %v5972_v60 = vmax.f32 %v5940_v39, 0.0  ;;  %v5939_v55 = vadd.f32 %v11261_v53, %v5900_v48  ;;  %v5903_v13 = vadd.f32 %v8158_v15, %v5638_v5  ;;  %v11778_v5 = vld [vmem:[#allocation85_spill] sm:$0xff]  ;;  %v11337_v39 = vpop.f32.mrf.mxu0  ;;  %v11780_v15 = vld [vmem:[#allocation18_spill] sm:$0xff] }
 0x3cd   : > { %v5759_v59 = vpop.f32.mrf.mxu1  ;;  %v5380_v24 = vadd.f32 %v11190_v3, %v4989_v41  ;;  %v4992_v6 = vadd.f32 %v11779_v40, %v11778_v5  ;;  %v11782_v3 = vld [vmem:[#allocation28_spill] sm:$0xff]  ;;  %v11795_v5 = vld [vmem:[#allocation39_spill] sm:$0xff] }
 0x3ce   : > { %6004 = vst.msk [vmem:[%s11275_s21 + $0x18] sm:$0xff] %vm3143_vm3, %v5972_v60  ;;  %v5971_v0 = vmax.f32 %v5939_v55, 0.0  ;;  %v5942_v9 = vadd.f32 %v11261_v53, %v5903_v13  ;;  %v5902_v32 = vadd.f32 %v5759_v59, %v5637_v49  ;;  %v11781_v49 = vld [vmem:[#allocation37_spill] sm:$0xff]  ;;  %v5646_v60 = vadd.f32 %v11782_v3, %v5381_v42  ;;  %v11783_v55 = vld [vmem:[#allocation87_spill] sm:$0xff]  ;;  %v11796_v40 = vld [vmem:[#allocation20_spill] sm:$0xff] }
 0x3cf   : > { %v8161_v52 = vpop.f32.mrf.mxu1  ;;  %v4991_v35 = vadd.f32 %v11781_v49, %v11780_v15  ;;  %v5383_v13 = vadd.f32 %v11783_v55, %v4992_v6  ;;  %v5645_v23 = vadd.f32 %v11786_v2, %v5380_v24  ;;  %v11794_v42 = vld [vmem:[#allocation17_spill] sm:$0xff]  ;;  %v4995_v6 = vadd.f32 %v11796_v40, %v11795_v5 }
 0x3d0   : > { %6003 = vst.msk [vmem:[%s11275_s21 + $0x10] sm:$0xff] %vm3143_vm3, %v5971_v0  ;;  %v5974_v44 = vmax.f32 %v5942_v9, 0.0  ;;  %v5941_v57 = vadd.f32 %v11261_v53, %v5902_v32  ;;  %v5905_v17 = vadd.f32 %v8161_v52, %v5640_v56  ;;  %v11784_v0 = vld [vmem:[#allocation22_spill] sm:$0xff]  ;;  %v11785_v9 = vld [vmem:[#allocation43_spill] sm:$0xff]  ;;  %v11352_v56 = vpop.f32.mrf.mxu0 }
 0x3d1   : > { %v5769_v28 = vpop.f32.mrf.mxu1  ;;  %v4994_v32 = vadd.f32 %v11785_v9, %v11784_v0  ;;  %v11787_v52 = vld [vmem:[#allocation19_spill] sm:$0xff]  ;;  %v11801_v0 = vld [vmem:[#allocation89_spill] sm:$0xff] }
 0x3d2   : > { %6006 = vst.msk [vmem:[%s11275_s21 + $0x28] sm:$0xff] %vm3143_vm3, %v5974_v44  ;;  %v5973_v11 = vmax.f32 %v5941_v57, 0.0  ;;  %v5944_v18 = vadd.f32 %v11261_v53, %v5905_v17  ;;  %v5904_v47 = vadd.f32 %v5769_v28, %v5639_v21  ;;  %v5382_v44 = vadd.f32 %v11787_v52, %v4991_v35  ;;  %v11798_v35 = vld [vmem:[#allocation81_spill] sm:$0xff] }
 0x3d3   : > { %v8164_v19 = vpop.f32.mrf.mxu1  ;;  %v5385_v28 = vadd.f32 %v11788_v8, %v4994_v32  ;;  %v11802_v32 = vld [vmem:[#allocation40_spill] sm:$0xff]  ;;  %v11805_v8 = vld [vmem:[#allocation21_spill] sm:$0xff] }
 0x3d4   : > { %6005 = vst.msk [vmem:[%s11275_s21 + $0x20] sm:$0xff] %vm3143_vm3, %v5973_v11  ;;  %v5976_v43 = vmax.f32 %v5944_v18, 0.0  ;;  %v5943_v1 = vadd.f32 %v11261_v53, %v5904_v47  ;;  %v5907_v54 = vadd.f32 %v8164_v19, %v5642_v31  ;;  %v11789_v31 = vld [vmem:[#allocation42_spill] sm:$0xff]  ;;  %v5647_v24 = vadd.f32 %v11244_v12, %v5382_v44 }
 0x3d5   : > { %v5779_v50 = vpop.f32.mrf.mxu1  ;;  %v4993_v11 = vadd.f32 %v11790_v46, %v11789_v31 }
 0x3d6   : > { %6008 = vst.msk [vmem:[%s11275_s21 + $0x38] sm:$0xff] %vm3143_vm3, %v5976_v43  ;;  %v5975_v20 = vmax.f32 %v5943_v1, 0.0  ;;  %v5946_v29 = vadd.f32 %v11261_v53, %v5907_v54  ;;  %v5906_v7 = vadd.f32 %v5779_v50, %v5641_v22  ;;  %v11791_v22 = vld [vmem:[#allocation63_spill] sm:$0xff]  ;;  %v11792_v43 = vld [vmem:[#allocation29_spill] sm:$0xff]  ;;  %v11793_v54 = vld [vmem:[#allocation88_spill] sm:$0xff]  ;;  %v11369_v50 = vpop.f32.mrf.mxu0 }
 0x3d7   : > { %v8167_v16 = vpop.f32.mrf.mxu1  ;;  %v5648_v4 = vadd.f32 %v11791_v22, %v5383_v13  ;;  %v5384_v1 = vadd.f32 %v11792_v43, %v4993_v11  ;;  %v4996_v41 = vadd.f32 %v11794_v42, %v11793_v54  ;;  %v11800_v13 = vld [vmem:[#allocation49_spill] sm:$0xff]  ;;  %v11807_v22 = vld [vmem:[#allocation46_spill] sm:$0xff]  ;;  %v11809_v54 = vld [vmem:[#allocation59_spill] sm:$0xff] }
 0x3d8   : > { %6007 = vst.msk [vmem:[%s11275_s21 + $0x30] sm:$0xff] %vm3143_vm3, %v5975_v20  ;;  %v5978_v26 = vmax.f32 %v5946_v29, 0.0  ;;  %v5945_v61 = vadd.f32 %v11261_v53, %v5906_v7  ;;  %v5909_v48 = vadd.f32 %v8167_v16, %v5644_v27 }
 0x3d9   : > { %v5789_v10 = vpop.f32.mrf.mxu1  ;;  %v5649_v55 = vadd.f32 %v11268_v14, %v5384_v1 }
 0x3da   : > { %6010 = vst.msk [vmem:[%s11275_s21 + $0x48] sm:$0xff] %vm3143_vm3, %v5978_v26  ;;  %v5977_v58 = vmax.f32 %v5945_v61, 0.0  ;;  %v5948_v34 = vadd.f32 %v11261_v53, %v5909_v48  ;;  %v5908_v59 = vadd.f32 %v5789_v10, %v5643_v38  ;;  %v5650_v26 = vadd.f32 %v11256_v37, %v5385_v28  ;;  %v11797_v61 = vld [vmem:[#allocation54_spill] sm:$0xff]  ;;  %v11806_v28 = vld [vmem:[#allocation47_spill] sm:$0xff] }
 0x3db   : > { %v8170_v30 = vpop.f32.mrf.mxu1  ;;  %v5387_v48 = vadd.f32 %v11797_v61, %v4996_v41  ;;  %v11799_v10 = vld [vmem:[#allocation38_spill] sm:$0xff]  ;;  %v5000_v31 = vadd.f32 %v11806_v28, %v11805_v8 }
 0x3dc   : > { %6009 = vst.msk [vmem:[%s11275_s21 + $0x40] sm:$0xff] %vm3143_vm3, %v5977_v58  ;;  %v5980_v57 = vmax.f32 %v5948_v34, 0.0  ;;  %v5947_v17 = vadd.f32 %v11261_v53, %v5908_v59  ;;  %v5911_v21 = vadd.f32 %v8170_v30, %v5646_v60  ;;  %v4998_v3 = vadd.f32 %v11799_v10, %v11798_v35  ;;  %v8138_v60 = vpop.f32.mrf.mxu0  ;;  %v11803_v30 = vld [vmem:[#allocation80_spill] sm:$0xff] }
 0x3dd   : > { %v5799_v18 = vpop.f32.mrf.mxu1  ;;  %v5386_v58 = vadd.f32 %v11800_v13, %v4995_v6  ;;  %v4997_v2 = vadd.f32 %v11803_v30, %v11802_v32  ;;  %v5391_v42 = vadd.f32 %v11809_v54, %v5000_v31  ;;  %v11812_v6 = vld [vmem:[#allocation90_spill] sm:$0xff] }
 0x3de   : > { %6012 = vst.msk [vmem:[%s11275_s21 + $0x58] sm:$0xff] %vm3143_vm3, %v5980_v57  ;;  %v5979_v47 = vmax.f32 %v5947_v17, 0.0  ;;  %v5950_v33 = vadd.f32 %v11261_v53, %v5911_v21  ;;  %v5910_v19 = vadd.f32 %v5799_v18, %v5645_v23  ;;  %v5389_v9 = vadd.f32 %v11801_v0, %v4998_v3  ;;  %v11804_v17 = vld [vmem:[#allocation52_spill] sm:$0xff]  ;;  %v5594_v46 = vpop.f32.mrf.mxu0  ;;  %v11816_v13 = vld [vmem:[#allocation58_spill] sm:$0xff] }
 0x3df   : > { %v8173_v20 = vpop.f32.mrf.mxu1  ;;  %v5652_v57 = vadd.f32 %v11288_v45, %v5387_v48  ;;  %v5388_v21 = vadd.f32 %v11804_v17, %v4997_v2  ;;  %v11813_v48 = vld [vmem:[#allocation31_spill] sm:$0xff]  ;;  %v11821_v17 = vld [vmem:[#allocation92_spill] sm:$0xff] }
 0x3e0   : > { %6011 = vst.msk [vmem:[%s11275_s21 + $0x50] sm:$0xff] %vm3143_vm3, %v5979_v47  ;;  %v5982_v29 = vmax.f32 %v5950_v33, 0.0  ;;  %v5949_v7 = vadd.f32 %v11261_v53, %v5910_v19  ;;  %v5913_v27 = vadd.f32 %v8173_v20, %v5648_v4  ;;  %v5651_v19 = vadd.f32 %v11305_v63, %v5386_v58  ;;  %v11808_v4 = vld [vmem:[#allocation91_spill] sm:$0xff]  ;;  %v8141_v5 = vpop.f32.mrf.mxu0 }
 0x3e1   : > { %v5809_v16 = vpop.f32.mrf.mxu1  ;;  %v4999_v43 = vadd.f32 %v11808_v4, %v11807_v22  ;;  %v5654_v1 = vadd.f32 %v11320_v36, %v5389_v9  ;;  %v5653_v40 = vadd.f32 %v11337_v39, %v5388_v21  ;;  %v11824_v22 = vld [vmem:[#allocation56_spill] sm:$0xff] }
 0x3e2   : > { %6014 = vst.msk [vmem:[%s11275_s21 + $0x68] sm:$0xff] %vm3143_vm3, %v5982_v29  ;;  %v5981_v38 = vmax.f32 %v5949_v7, 0.0  ;;  %v5952_v15 = vadd.f32 %v11261_v53, %v5913_v27  ;;  %v5912_v49 = vadd.f32 %v5809_v16, %v5647_v24  ;;  %v11810_v7 = vld [vmem:[#allocation83_spill] sm:$0xff]  ;;  %v11811_v27 = vld [vmem:[#allocation24_spill] sm:$0xff] }
 0x3e3   : > { %v8176_v12 = vpop.f32.mrf.mxu1  ;;  %v5002_v24 = vadd.f32 %v11811_v27, %v11810_v7  ;;  %v5390_v16 = vadd.f32 %v11812_v6, %v4999_v43  ;;  %v11828_v6 = vld [vmem:[#allocation48_spill] sm:$0xff] }
 0x3e4   : > { %6013 = vst.msk [vmem:[%s11275_s21 + $0x60] sm:$0xff] %vm3143_vm3, %v5981_v38  ;;  %v5984_v37 = vmax.f32 %v5952_v15, 0.0  ;;  %v5951_v34 = vadd.f32 %v11261_v53, %v5912_v49  ;;  %v5915_v59 = vadd.f32 %v8176_v12, %v5650_v26  ;;  %v11814_v15 = vld [vmem:[#allocation44_spill] sm:$0xff]  ;;  %v11815_v49 = vld [vmem:[#allocation25_spill] sm:$0xff] }
 0x3e5   : > { %v5819_v23 = vpop.f32.mrf.mxu1  ;;  %v5393_v38 = vadd.f32 %v11813_v48, %v5002_v24  ;;  %v5001_v35 = vadd.f32 %v11815_v49, %v11814_v15  ;;  %v11830_v49 = vld [vmem:[#allocation55_spill] sm:$0xff] }
 0x3e6   : > { %6016 = vst.msk [vmem:[%s11275_s21 + $0x78] sm:$0xff] %vm3143_vm3, %v5984_v37  ;;  %v5983_v52 = vmax.f32 %v5951_v34, 0.0  ;;  %v5954_v14 = vadd.f32 %v11261_v53, %v5915_v59  ;;  %v5914_v44 = vadd.f32 %v5819_v23, %v5649_v55  ;;  %v5656_v55 = vadd.f32 %v11352_v56, %v5391_v42  ;;  %v5604_v37 = vpop.f32.mrf.mxu0  ;;  %v11817_v34 = vld [vmem:[#allocation97_spill] sm:$0xff] }
 0x3e7   : > { %v8179_v11 = vpop.f32.mrf.mxu1  ;;  %v5392_v58 = vadd.f32 %v11816_v13, %v5001_v35  ;;  %v11818_v59 = vld [vmem:[#allocation41_spill] sm:$0xff]  ;;  %v5655_v23 = vadd.f32 %v11369_v50, %v5390_v16  ;;  %v11829_v16 = vld [vmem:[#allocation27_spill] sm:$0xff]  ;;  %v11831_v35 = vld [vmem:[#allocation86_spill] sm:$0xff] }
 0x3e8   : > { %6015 = vst.msk [vmem:[%s11275_s21 + $0x70] sm:$0xff] %vm3143_vm3, %v5983_v52  ;;  %v5986_v18 = vmax.f32 %v5954_v14, 0.0  ;;  %v5953_v47 = vadd.f32 %v11261_v53, %v5914_v44  ;;  %v5917_v33 = vadd.f32 %v8179_v11, %v5652_v57  ;;  %v5004_v0 = vadd.f32 %v11818_v59, %v11817_v34  ;;  %v11819_v52 = vld [vmem:[#allocation23_spill] sm:$0xff]  ;;  %v11820_v14 = vld [vmem:[#allocation94_spill] sm:$0xff]  ;;  %v8144_v11 = vpop.f32.mrf.mxu0  ;;  %v11826_v42 = vld [vmem:[#allocation45_spill] sm:$0xff] }
 0x3e9   : > { %v5829_v45 = vpop.f32.mrf.mxu1  ;;  %v5003_v44 = vadd.f32 %v11820_v14, %v11819_v52  ;;  %v5658_v57 = vadd.f32 %v8138_v60, %v5393_v38  ;;  %v5657_v50 = vadd.f32 %v5594_v46, %v5392_v58 }
 0x3ea   : > { %6018 = vst.msk [vmem:[%s11275_s21 + $0x88] sm:$0xff] %vm3143_vm3, %v5986_v18  ;;  %v5985_v41 = vmax.f32 %v5953_v47, 0.0  ;;  %v5956_v20 = vadd.f32 %v11261_v53, %v5917_v33  ;;  %v5916_v29 = vadd.f32 %v5829_v45, %v5651_v19  ;;  %v5395_v21 = vadd.f32 %v11821_v17, %v5004_v0  ;;  %v11822_v18 = vld [vmem:[#allocation50_spill] sm:$0xff]  ;;  %v11823_v47 = vld [vmem:[#allocation51_spill] sm:$0xff] }
 0x3eb   : > { %v8182_v63 = vpop.f32.mrf.mxu1  ;;  %v5006_v33 = vadd.f32 %v11823_v47, %v11822_v18  ;;  %v5394_v4 = vadd.f32 %v11824_v22, %v5003_v44 }
 0x3ec   : > { %6017 = vst.msk [vmem:[%s11275_s21 + $0x80] sm:$0xff] %vm3143_vm3, %v5985_v41  ;;  %v5988_v36 = vmax.f32 %v5956_v20, 0.0  ;;  %v5955_v26 = vadd.f32 %v11261_v53, %v5916_v29  ;;  %v5919_v61 = vadd.f32 %v8182_v63, %v5654_v1  ;;  %v11825_v1 = vld [vmem:[#allocation93_spill] sm:$0xff]  ;;  %v11827_v41 = vld [vmem:[#allocation84_spill] sm:$0xff]  ;;  %v5660_v24 = vadd.f32 %v8141_v5, %v5395_v21  ;;  %v5614_v63 = vpop.f32.mrf.mxu0 }
 0x3ed   : > { %v5839_v10 = vpop.f32.mrf.mxu1  ;;  %v5397_v54 = vadd.f32 %v11825_v1, %v5006_v33  ;;  %v5005_v20 = vadd.f32 %v11827_v41, %v11826_v42  ;;  %v5659_v15 = vadd.f32 %v5604_v37, %v5394_v4 }
 0x3ee   : > { %6020 = vst.msk [vmem:[%s11275_s21 + $0x98] sm:$0xff] %vm3143_vm3, %v5988_v36  ;;  %v5987_v3 = vmax.f32 %v5955_v26, 0.0  ;;  %v5958_v39 = vadd.f32 %v11261_v53, %v5919_v61  ;;  %v5918_v12 = vadd.f32 %v5839_v10, %v5653_v40  ;;  %v5008_v36 = vadd.f32 %v11829_v16, %v11828_v6  ;;  %v8147_v13 = vpop.f32.mrf.mxu0 }
 0x3ef   : > { %v8185_v9 = vpop.f32.mrf.mxu1  ;;  %v5396_v40 = vadd.f32 %v11240_v62, %v5005_v20  ;;  %v5007_v10 = vadd.f32 %v11831_v35, %v11830_v49  ;;  %v5662_v5 = vadd.f32 %v8144_v11, %v5397_v54 }
 0x3f0   : > { %6019 = vst.msk [vmem:[%s11275_s21 + $0x90] sm:$0xff] %vm3143_vm3, %v5987_v3  ;;  %v5990_v32 = vmax.f32 %v5958_v39, 0.0  ;;  %v5957_v30 = vadd.f32 %v11261_v53, %v5918_v12  ;;  %v5921_v2 = vadd.f32 %v8185_v9, %v5656_v55  ;;  %v5399_v62 = vadd.f32 %v11246_v25, %v5008_v36  ;;  %v5624_v52 = vpop.f32.mrf.mxu0 }
 0x3f1   : > { %v5849_v56 = vpop.f32.mrf.mxu1  ;;  %v5661_v34 = vadd.f32 %v5614_v63, %v5396_v40  ;;  %v5398_v37 = vadd.f32 %v11250_v51, %v5007_v10 }
 0x3f2   : > { %6022 = vst.msk [vmem:[%s11275_s21 + $0xa8] sm:$0xff] %vm3143_vm3, %v5990_v32  ;;  %v5989_v8 = vmax.f32 %v5957_v30, 0.0  ;;  %v5960_v28 = vadd.f32 %v11261_v53, %v5921_v2  ;;  %v5920_v31 = vadd.f32 %v5849_v56, %v5655_v23  ;;  %v5664_v23 = vadd.f32 %v8147_v13, %v5399_v62 }
 0x3f3   : > { %v8188_v19 = vpop.f32.mrf.mxu1 }
 0x3f4   : > { %6021 = vst.msk [vmem:[%s11275_s21 + $0xa0] sm:$0xff] %vm3143_vm3, %v5989_v8  ;;  %v5992_v60 = vmax.f32 %v5960_v28, 0.0  ;;  %v5959_v43 = vadd.f32 %v11261_v53, %v5920_v31  ;;  %v5923_v45 = vadd.f32 %v8188_v19, %v5658_v57  ;;  %v5663_v57 = vadd.f32 %v5624_v52, %v5398_v37 }
 0x3f5   : > { %v5859_v29 = vpop.f32.mrf.mxu1 }
 0x3f6   : > { %6024 = vst.msk [vmem:[%s11275_s21 + $0xb8] sm:$0xff] %vm3143_vm3, %v5992_v60  ;;  %v5991_v7 = vmax.f32 %v5959_v43, 0.0  ;;  %v5962_v46 = vadd.f32 %v11261_v53, %v5923_v45  ;;  %v5922_v27 = vadd.f32 %v5859_v29, %v5657_v50 }
 0x3f7   : > { %v8191_v26 = vpop.f32.mrf.mxu1 }
 0x3f8   : > { %6023 = vst.msk [vmem:[%s11275_s21 + $0xb0] sm:$0xff] %vm3143_vm3, %v5991_v7  ;;  %v5994_v61 = vmax.f32 %v5962_v46, 0.0  ;;  %v5961_v48 = vadd.f32 %v11261_v53, %v5922_v27  ;;  %v5925_v38 = vadd.f32 %v8191_v26, %v5660_v24 }
 0x3f9   : > { %v5869_v3 = vpop.f32.mrf.mxu1 }
 0x3fa   : > { %6026 = vst.msk [vmem:[%s11275_s21 + $0xc8] sm:$0xff] %vm3143_vm3, %v5994_v61  ;;  %v5993_v39 = vmax.f32 %v5961_v48, 0.0  ;;  %v5964_v12 = vadd.f32 %v11261_v53, %v5925_v38  ;;  %v5924_v55 = vadd.f32 %v5869_v3, %v5659_v15 }
 0x3fb   : > { %v8194_v58 = vpop.f32.mrf.mxu1 }
 0x3fc   : > { %6025 = vst.msk [vmem:[%s11275_s21 + $0xc0] sm:$0xff] %vm3143_vm3, %v5993_v39  ;;  %v5996_v59 = vmax.f32 %v5964_v12, 0.0  ;;  %v5963_v0 = vadd.f32 %v11261_v53, %v5924_v55  ;;  %v5927_v9 = vadd.f32 %v8194_v58, %v5662_v5 }
 0x3fd   : > { %v5879_v25 = vpop.f32.mrf.mxu1 }
 0x3fe   : > { %6028 = vst.msk [vmem:[%s11275_s21 + $0xd8] sm:$0xff] %vm3143_vm3, %v5996_v59  ;;  %v5995_v32 = vmax.f32 %v5963_v0, 0.0  ;;  %v5966_v30 = vadd.f32 %v11261_v53, %v5927_v9  ;;  %v5926_v2 = vadd.f32 %v5879_v25, %v5661_v34 }
 0x3ff   : > { %v8197_v14 = vpop.f32.mrf.mxu1 }
 0x400   : > { %6027 = vst.msk [vmem:[%s11275_s21 + $0xd0] sm:$0xff] %vm3143_vm3, %v5995_v32  ;;  %v5998_v51 = vmax.f32 %v5966_v30, 0.0  ;;  %v5965_v44 = vadd.f32 %v11261_v53, %v5926_v2  ;;  %v5929_v56 = vadd.f32 %v8197_v14, %v5664_v23 }
 0x401   : > { %v5889_v17 = vpop.f32.mrf.mxu1 }
 0x402   : > { %6030 = vst.msk [vmem:[%s11275_s21 + $0xe8] sm:$0xff] %vm3143_vm3, %v5998_v51  ;;  %v5997_v21 = vmax.f32 %v5965_v44, 0.0  ;;  %v5968_v8 = vadd.f32 %v11261_v53, %v5929_v56  ;;  %v5928_v28 = vadd.f32 %v5889_v17, %v5663_v57 }
 0x404   : > { %6029 = vst.msk [vmem:[%s11275_s21 + $0xe0] sm:$0xff] %vm3143_vm3, %v5997_v21  ;;  %v6000_v31 = vmax.f32 %v5968_v8, 0.0  ;;  %v5967_v11 = vadd.f32 %v11261_v53, %v5928_v28 }
 0x406   : > { %6032 = vst.msk [vmem:[%s11275_s21 + $0xf8] sm:$0xff] %vm3143_vm3, %v6000_v31  ;;  %v5999_v18 = vmax.f32 %v5967_v11, 0.0 }
 0x408   : > { %6031 = vst.msk [vmem:[%s11275_s21 + $0xf0] sm:$0xff] %vm3143_vm3, %v5999_v18 }
 0x409 PF: > { %s15_s18 = sadd.s32 1, %s8213_s18  }
 0x40a   : > { %p12_p4 = scmp.ge.s32.totalorder %s15_s18, 4  }
 0x40c   :  { %14 = sbr.rel (!%p12_p4) target bundleno = 1 (0x1), region = 88 }

</bundles_post_ra>
